<compile_context>
chip_gen: v6e
topology: v6e:2x2x1
jax: 0.10.0
libtpu: 0.0.40
codegen_flags: <defaults>
</compile_context>

<pallas_src>
import functools

import jax
import jax.numpy as jnp
from jax.experimental import pallas as pl
from jax.experimental.pallas import tpu as pltpu

C_PAD = 128   # lane-dense channel width for activations, weights and logits
HALO = 8      # sublane-aligned offset of the image inside the halo scratch


# ---------------------------------------------------------------------------
# Fused kernel: conv-stem -> residual basic block -> GAP -> FC, per image
# ---------------------------------------------------------------------------
def fused_forward_kernel(x_ref, w0_ref, b0_ref, w1_ref, b1_ref, w2_ref, b2_ref,
                         fcw_ref, fcb_ref, o_ref, pad_ref, *, H, W):
    """Full forward pass for one image; all intermediates stay in VMEM.

    x_ref  : (1, H, W, C)            f32  input image (channels zero-padded to C)
    w*_ref : (9*C, C)                bf16 3x3 conv weights in im2col layout
    b*_ref : (1, C)                  f32  conv biases
    fcw_ref: (C, C)                  bf16 classifier weights (classes zero-padded)
    fcb_ref: (1, C)                  f32  classifier bias
    o_ref  : (1, 1, C)               f32  logits (lane-dense; sliced in wrapper)
    pad_ref: (H+2*HALO, W+2*HALO, C) f32  VMEM halo buffer shared by the 3 convs
    """
    C = C_PAD
    HW = H * W

    def conv3x3(x_hwc, w_ref, b_ref):
        # 'same' 3x3 conv as a single im2col matmul on the MXU (K = 9*C).
        pad_ref[HALO:HALO + H, HALO:HALO + W, :] = x_hwc          # aligned interior store
        cols = [
            pad_ref[HALO - 1 + kh:HALO - 1 + kh + H,
                    HALO - 1 + kw:HALO - 1 + kw + W, :].reshape(HW, C)
            for kh in range(3) for kw in range(3)
        ]
        patches = jnp.concatenate(cols, axis=1)                   # (HW, 9C), lane-aligned
        y = jnp.dot(patches.astype(jnp.bfloat16), w_ref[...],
                    preferred_element_type=jnp.float32)           # (HW, C) f32 accumulate
        return (y + b_ref[...]).reshape(H, W, C)                  # f32 bias epilogue

    # Zero the halo buffer once per image; only the interior is ever overwritten,
    # so the zero border serves all three convolutions.
    pad_ref[...] = jnp.zeros_like(pad_ref)

    x = x_ref[0]                                                   # (H, W, C) f32
    a0 = jnp.maximum(conv3x3(x, w0_ref, b0_ref), 0.0)              # stem conv + ReLU
    h = jnp.maximum(conv3x3(a0, w1_ref, b1_ref), 0.0)              # block conv1 + ReLU
    y = jnp.maximum(conv3x3(h, w2_ref, b2_ref) + a0, 0.0)          # block conv2 + skip + ReLU

    pooled = jnp.mean(y.reshape(HW, C), axis=0, keepdims=True)     # global average pool (1, C)
    logits = jnp.dot(pooled.astype(jnp.bfloat16), fcw_ref[...],
                     preferred_element_type=jnp.float32)           # tiny FC, f32 out
    o_ref[0] = logits + fcb_ref[...]


# ---------------------------------------------------------------------------
# Pallas wrapper (single pallas_call for the whole forward pass)
# ---------------------------------------------------------------------------
def fused_forward(x_nhwc, packed):
    """x_nhwc: (N, H, W, C_PAD) f32.  Returns (N, 1, C_PAD) f32 logits."""
    N, H, W, C = x_nhwc.shape
    assert C == C_PAD

    def full_spec(shape):
        return pl.BlockSpec(shape, lambda n: (0,) * len(shape))

    kern = functools.partial(fused_forward_kernel, H=H, W=W)
    return pl.pallas_call(
        kern,
        out_shape=jax.ShapeDtypeStruct((N, 1, C_PAD), jnp.float32),
        grid=(N,),
        in_specs=[
            pl.BlockSpec((1, H, W, C_PAD), lambda n: (n, 0, 0, 0)),
            full_spec((9 * C_PAD, C_PAD)), full_spec((1, C_PAD)),
            full_spec((9 * C_PAD, C_PAD)), full_spec((1, C_PAD)),
            full_spec((9 * C_PAD, C_PAD)), full_spec((1, C_PAD)),
            full_spec((C_PAD, C_PAD)), full_spec((1, C_PAD)),
        ],
        out_specs=pl.BlockSpec((1, 1, C_PAD), lambda n: (n, 0, 0)),
        scratch_shapes=[
            pltpu.VMEM((H + 2 * HALO, W + 2 * HALO, C_PAD), jnp.float32),
        ],
        compiler_params=pltpu.CompilerParams(
            dimension_semantics=("parallel",)),   # batch axis -> both v7x TensorCores
    )(x_nhwc,
      packed["w0"], packed["b0"], packed["w1"], packed["b1"],
      packed["w2"], packed["b2"], packed["fcw"], packed["fcb"])


# ---------------------------------------------------------------------------
# Parameters: logical (small) weights + packing to lane-dense / im2col / bf16
# ---------------------------------------------------------------------------
def init_params(key, in_ch=3, stem_ch=16, num_classes=10):
    ks = jax.random.split(key, 4)

    def conv_w(k, cin, cout):
        fan_in = 9 * cin
        return jax.random.normal(k, (3, 3, cin, cout), jnp.float32) * (2.0 / fan_in) ** 0.5

    return {
        "stem_w": conv_w(ks[0], in_ch, stem_ch),
        "stem_b": jnp.zeros((stem_ch,), jnp.float32),
        "b1c1_w": conv_w(ks[1], stem_ch, stem_ch),
        "b1c1_b": jnp.zeros((stem_ch,), jnp.float32),
        "b1c2_w": conv_w(ks[2], stem_ch, stem_ch),
        "b1c2_b": jnp.zeros((stem_ch,), jnp.float32),
        "fc_w": jax.random.normal(ks[3], (stem_ch, num_classes), jnp.float32)
                * (1.0 / stem_ch) ** 0.5,
        "fc_b": jnp.zeros((num_classes,), jnp.float32),
    }


def pack_params(params):
    """Zero-pad channels to C_PAD, flatten 3x3 taps for im2col, cast MXU weights to bf16.

    Zero padding is numerically identical to the unpadded model (pad channels stay
    zero through bias/ReLU/residual/GAP and contribute nothing to the FC).
    """
    def pack_conv(w, b):
        kh, kw, cin, cout = w.shape
        wp = jnp.zeros((kh, kw, C_PAD, C_PAD), jnp.float32).at[:, :, :cin, :cout].set(w)
        bp = jnp.zeros((1, C_PAD), jnp.float32).at[0, :cout].set(b)
        return wp.reshape(kh * kw * C_PAD, C_PAD).astype(jnp.bfloat16), bp

    w0, b0 = pack_conv(params["stem_w"], params["stem_b"])
    w1, b1 = pack_conv(params["b1c1_w"], params["b1c1_b"])
    w2, b2 = pack_conv(params["b1c2_w"], params["b1c2_b"])
    cin, k = params["fc_w"].shape
    fcw = (jnp.zeros((C_PAD, C_PAD), jnp.float32)
           .at[:cin, :k].set(params["fc_w"]).astype(jnp.bfloat16))
    fcb = jnp.zeros((1, C_PAD), jnp.float32).at[0, :k].set(params["fc_b"])
    return {"w0": w0, "b0": b0, "w1": w1, "b1": b1, "w2": w2, "b2": b2,
            "fcw": fcw, "fcb": fcb}


# ---------------------------------------------------------------------------
# Forward
# ---------------------------------------------------------------------------
@functools.partial(jax.jit, static_argnames=("num_classes",))
def model_forward(packed, x_nchw, num_classes):
    N, cin, H, W = x_nchw.shape
    x = jnp.transpose(x_nchw, (0, 2, 3, 1)).astype(jnp.float32)     # NCHW -> NHWC
    x = jnp.pad(x, ((0, 0), (0, 0), (0, 0), (0, C_PAD - cin)))      # lane-dense channels
    logits = fused_forward(x, packed)                               # (N, 1, C_PAD) f32
    return logits.reshape(N, C_PAD)[:, :num_classes]                # keep logits in f32


if __name__ == "__main__":
    key = jax.random.PRNGKey(0)
    k_param, k_data = jax.random.split(key)

    num_classes = 10
    params = init_params(k_param, in_ch=3, stem_ch=16, num_classes=num_classes)
    packed = pack_params(params)

    # small image batch, NCHW like the PyTorch reference
    x = jax.random.normal(k_data, (2, 3, 16, 16), jnp.float32)

    logits = model_forward(packed, x, num_classes)
    jax.block_until_ready(logits)

    assert logits.shape == (2, num_classes), logits.shape
    assert bool(jnp.all(jnp.isfinite(logits)))
    print("KERNEL_OK")
</pallas_src>

<mosaic_0001>
module attributes {stable_mosaic.version = 11 : i64} {
  func.func @fused_forward_kernel(%arg0: i32, %arg1: memref<1x16x16x128xf32, #tpu.memory_space<vmem>>, %arg2: memref<1152x128xbf16, #tpu.memory_space<vmem>>, %arg3: memref<1x128xf32, #tpu.memory_space<vmem>>, %arg4: memref<1152x128xbf16, #tpu.memory_space<vmem>>, %arg5: memref<1x128xf32, #tpu.memory_space<vmem>>, %arg6: memref<1152x128xbf16, #tpu.memory_space<vmem>>, %arg7: memref<1x128xf32, #tpu.memory_space<vmem>>, %arg8: memref<128x128xbf16, #tpu.memory_space<vmem>>, %arg9: memref<1x128xf32, #tpu.memory_space<vmem>>, %arg10: memref<1x1x128xf32, #tpu.memory_space<vmem>>, %arg11: memref<32x32x128xf32, #tpu.memory_space<vmem>>) attributes {dimension_semantics = [#tpu.dimension_semantics<parallel>], iteration_bounds = array<i64: 2>, scalar_prefetch = 0 : i64, scratch_operands = 1 : i64, tpu.core_type = #tpu.core_type<tc>, window_params = [{transform_indices = @transform_0, window_bounds = array<i64: 1, 16, 16, 128>}, {pipeline_mode = #tpu.pipeline_mode<synchronous>, transform_indices = @transform_1, window_bounds = array<i64: 1152, 128>}, {pipeline_mode = #tpu.pipeline_mode<synchronous>, transform_indices = @transform_2, window_bounds = array<i64: 1, 128>}, {pipeline_mode = #tpu.pipeline_mode<synchronous>, transform_indices = @transform_3, window_bounds = array<i64: 1152, 128>}, {pipeline_mode = #tpu.pipeline_mode<synchronous>, transform_indices = @transform_4, window_bounds = array<i64: 1, 128>}, {pipeline_mode = #tpu.pipeline_mode<synchronous>, transform_indices = @transform_5, window_bounds = array<i64: 1152, 128>}, {pipeline_mode = #tpu.pipeline_mode<synchronous>, transform_indices = @transform_6, window_bounds = array<i64: 1, 128>}, {pipeline_mode = #tpu.pipeline_mode<synchronous>, transform_indices = @transform_7, window_bounds = array<i64: 128, 128>}, {pipeline_mode = #tpu.pipeline_mode<synchronous>, transform_indices = @transform_8, window_bounds = array<i64: 1, 128>}, {transform_indices = @transform_9, window_bounds = array<i64: 1, 1, 128>}]} {
    %cst = arith.constant 0.000000e+00 : f32
    %0 = vector.broadcast %cst : f32 to vector<32x32x128xf32>
    %c0 = arith.constant 0 : index
    %c0_0 = arith.constant 0 : index
    %c0_1 = arith.constant 0 : index
    %1 = vector.load %arg11[%c0, %c0_0, %c0_1] : memref<32x32x128xf32, #tpu.memory_space<vmem>>, vector<32x32x128xf32>
    tpu.vector_store %arg11[%c0, %c0_0, %c0_1], %0 {strides = array<i32>} : memref<32x32x128xf32, #tpu.memory_space<vmem>>, vector<32x32x128xf32>,
    %c0_2 = arith.constant 0 : index
    %c0_3 = arith.constant 0 : index
    %c0_4 = arith.constant 0 : index
    %c0_5 = arith.constant 0 : index
    %2 = vector.load %arg1[%c0_2, %c0_3, %c0_4, %c0_5] : memref<1x16x16x128xf32, #tpu.memory_space<vmem>>, vector<1x16x16x128xf32>
    %3 = vector.shape_cast %2 : vector<1x16x16x128xf32> to vector<16x16x128xf32>
    %c8 = arith.constant 8 : index
    %c8_6 = arith.constant 8 : index
    %c0_7 = arith.constant 0 : index
    %4 = vector.load %arg11[%c8, %c8_6, %c0_7] : memref<32x32x128xf32, #tpu.memory_space<vmem>>, vector<16x16x128xf32>
    tpu.vector_store %arg11[%c8, %c8_6, %c0_7], %3 {strides = array<i32>} : memref<32x32x128xf32, #tpu.memory_space<vmem>>, vector<16x16x128xf32>,
    %c7 = arith.constant 7 : index
    %c7_8 = arith.constant 7 : index
    %c0_9 = arith.constant 0 : index
    %5 = vector.load %arg11[%c7, %c7_8, %c0_9] : memref<32x32x128xf32, #tpu.memory_space<vmem>>, vector<16x16x128xf32>
    %6 = vector.shape_cast %5 : vector<16x16x128xf32> to vector<256x128xf32>
    %c7_10 = arith.constant 7 : index
    %c8_11 = arith.constant 8 : index
    %c0_12 = arith.constant 0 : index
    %7 = vector.load %arg11[%c7_10, %c8_11, %c0_12] : memref<32x32x128xf32, #tpu.memory_space<vmem>>, vector<16x16x128xf32>
    %8 = vector.shape_cast %7 : vector<16x16x128xf32> to vector<256x128xf32>
    %c7_13 = arith.constant 7 : index
    %c9 = arith.constant 9 : index
    %c0_14 = arith.constant 0 : index
    %9 = vector.load %arg11[%c7_13, %c9, %c0_14] : memref<32x32x128xf32, #tpu.memory_space<vmem>>, vector<16x16x128xf32>
    %10 = vector.shape_cast %9 : vector<16x16x128xf32> to vector<256x128xf32>
    %c8_15 = arith.constant 8 : index
    %c7_16 = arith.constant 7 : index
    %c0_17 = arith.constant 0 : index
    %11 = vector.load %arg11[%c8_15, %c7_16, %c0_17] : memref<32x32x128xf32, #tpu.memory_space<vmem>>, vector<16x16x128xf32>
    %12 = vector.shape_cast %11 : vector<16x16x128xf32> to vector<256x128xf32>
    %c8_18 = arith.constant 8 : index
    %c8_19 = arith.constant 8 : index
    %c0_20 = arith.constant 0 : index
    %13 = vector.load %arg11[%c8_18, %c8_19, %c0_20] : memref<32x32x128xf32, #tpu.memory_space<vmem>>, vector<16x16x128xf32>
    %14 = vector.shape_cast %13 : vector<16x16x128xf32> to vector<256x128xf32>
    %c8_21 = arith.constant 8 : index
    %c9_22 = arith.constant 9 : index
    %c0_23 = arith.constant 0 : index
    %15 = vector.load %arg11[%c8_21, %c9_22, %c0_23] : memref<32x32x128xf32, #tpu.memory_space<vmem>>, vector<16x16x128xf32>
    %16 = vector.shape_cast %15 : vector<16x16x128xf32> to vector<256x128xf32>
    %c9_24 = arith.constant 9 : index
    %c7_25 = arith.constant 7 : index
    %c0_26 = arith.constant 0 : index
    %17 = vector.load %arg11[%c9_24, %c7_25, %c0_26] : memref<32x32x128xf32, #tpu.memory_space<vmem>>, vector<16x16x128xf32>
    %18 = vector.shape_cast %17 : vector<16x16x128xf32> to vector<256x128xf32>
    %c9_27 = arith.constant 9 : index
    %c8_28 = arith.constant 8 : index
    %c0_29 = arith.constant 0 : index
    %19 = vector.load %arg11[%c9_27, %c8_28, %c0_29] : memref<32x32x128xf32, #tpu.memory_space<vmem>>, vector<16x16x128xf32>
    %20 = vector.shape_cast %19 : vector<16x16x128xf32> to vector<256x128xf32>
    %c9_30 = arith.constant 9 : index
    %c9_31 = arith.constant 9 : index
    %c0_32 = arith.constant 0 : index
    %21 = vector.load %arg11[%c9_30, %c9_31, %c0_32] : memref<32x32x128xf32, #tpu.memory_space<vmem>>, vector<16x16x128xf32>
    %22 = vector.shape_cast %21 : vector<16x16x128xf32> to vector<256x128xf32>
    %23 = tpu.concatenate %6, %8, %10, %12, %14, %16, %18, %20, %22 in 1 : vector<256x128xf32>, vector<256x128xf32>, vector<256x128xf32>, vector<256x128xf32>, vector<256x128xf32>, vector<256x128xf32>, vector<256x128xf32>, vector<256x128xf32>, vector<256x128xf32> -> vector<256x1152xf32>
    %24 = arith.truncf %23 : vector<256x1152xf32> to vector<256x1152xbf16>
    %c0_33 = arith.constant 0 : index
    %c0_34 = arith.constant 0 : index
    %25 = vector.load %arg2[%c0_33, %c0_34] : memref<1152x128xbf16, #tpu.memory_space<vmem>>, vector<1152x128xbf16>
    %cst_35 = arith.constant dense<0.000000e+00> : vector<256x128xf32>
    %26 = tpu.matmul %24, %25, %cst_35 {dimension_numbers = #tpu.dot_dimension_numbers<[1], [0], [0], [1], [0, 0, 1, 1], [], []>} : vector<256x1152xbf16>, vector<1152x128xbf16>, vector<256x128xf32> -> vector<256x128xf32>
    %c0_36 = arith.constant 0 : index
    %c0_37 = arith.constant 0 : index
    %27 = vector.load %arg3[%c0_36, %c0_37] : memref<1x128xf32, #tpu.memory_space<vmem>>, vector<1x128xf32>
    %28 = vector.broadcast %27 : vector<1x128xf32> to vector<256x128xf32>
    %29 = arith.addf %26, %28 : vector<256x128xf32>
    %30 = vector.shape_cast %29 : vector<256x128xf32> to vector<16x16x128xf32>
    %cst_38 = arith.constant 0.000000e+00 : f32
    %31 = vector.broadcast %cst_38 : f32 to vector<16x16x128xf32>
    %32 = arith.maximumf %30, %31 : vector<16x16x128xf32>
    %c8_39 = arith.constant 8 : index
    %c8_40 = arith.constant 8 : index
    %c0_41 = arith.constant 0 : index
    %33 = vector.load %arg11[%c8_39, %c8_40, %c0_41] : memref<32x32x128xf32, #tpu.memory_space<vmem>>, vector<16x16x128xf32>
    tpu.vector_store %arg11[%c8_39, %c8_40, %c0_41], %32 {strides = array<i32>} : memref<32x32x128xf32, #tpu.memory_space<vmem>>, vector<16x16x128xf32>,
    %c7_42 = arith.constant 7 : index
    %c7_43 = arith.constant 7 : index
    %c0_44 = arith.constant 0 : index
    %34 = vector.load %arg11[%c7_42, %c7_43, %c0_44] : memref<32x32x128xf32, #tpu.memory_space<vmem>>, vector<16x16x128xf32>
    %35 = vector.shape_cast %34 : vector<16x16x128xf32> to vector<256x128xf32>
    %c7_45 = arith.constant 7 : index
    %c8_46 = arith.constant 8 : index
    %c0_47 = arith.constant 0 : index
    %36 = vector.load %arg11[%c7_45, %c8_46, %c0_47] : memref<32x32x128xf32, #tpu.memory_space<vmem>>, vector<16x16x128xf32>
    %37 = vector.shape_cast %36 : vector<16x16x128xf32> to vector<256x128xf32>
    %c7_48 = arith.constant 7 : index
    %c9_49 = arith.constant 9 : index
    %c0_50 = arith.constant 0 : index
    %38 = vector.load %arg11[%c7_48, %c9_49, %c0_50] : memref<32x32x128xf32, #tpu.memory_space<vmem>>, vector<16x16x128xf32>
    %39 = vector.shape_cast %38 : vector<16x16x128xf32> to vector<256x128xf32>
    %c8_51 = arith.constant 8 : index
    %c7_52 = arith.constant 7 : index
    %c0_53 = arith.constant 0 : index
    %40 = vector.load %arg11[%c8_51, %c7_52, %c0_53] : memref<32x32x128xf32, #tpu.memory_space<vmem>>, vector<16x16x128xf32>
    %41 = vector.shape_cast %40 : vector<16x16x128xf32> to vector<256x128xf32>
    %c8_54 = arith.constant 8 : index
    %c8_55 = arith.constant 8 : index
    %c0_56 = arith.constant 0 : index
    %42 = vector.load %arg11[%c8_54, %c8_55, %c0_56] : memref<32x32x128xf32, #tpu.memory_space<vmem>>, vector<16x16x128xf32>
    %43 = vector.shape_cast %42 : vector<16x16x128xf32> to vector<256x128xf32>
    %c8_57 = arith.constant 8 : index
    %c9_58 = arith.constant 9 : index
    %c0_59 = arith.constant 0 : index
    %44 = vector.load %arg11[%c8_57, %c9_58, %c0_59] : memref<32x32x128xf32, #tpu.memory_space<vmem>>, vector<16x16x128xf32>
    %45 = vector.shape_cast %44 : vector<16x16x128xf32> to vector<256x128xf32>
    %c9_60 = arith.constant 9 : index
    %c7_61 = arith.constant 7 : index
    %c0_62 = arith.constant 0 : index
    %46 = vector.load %arg11[%c9_60, %c7_61, %c0_62] : memref<32x32x128xf32, #tpu.memory_space<vmem>>, vector<16x16x128xf32>
    %47 = vector.shape_cast %46 : vector<16x16x128xf32> to vector<256x128xf32>
    %c9_63 = arith.constant 9 : index
    %c8_64 = arith.constant 8 : index
    %c0_65 = arith.constant 0 : index
    %48 = vector.load %arg11[%c9_63, %c8_64, %c0_65] : memref<32x32x128xf32, #tpu.memory_space<vmem>>, vector<16x16x128xf32>
    %49 = vector.shape_cast %48 : vector<16x16x128xf32> to vector<256x128xf32>
    %c9_66 = arith.constant 9 : index
    %c9_67 = arith.constant 9 : index
    %c0_68 = arith.constant 0 : index
    %50 = vector.load %arg11[%c9_66, %c9_67, %c0_68] : memref<32x32x128xf32, #tpu.memory_space<vmem>>, vector<16x16x128xf32>
    %51 = vector.shape_cast %50 : vector<16x16x128xf32> to vector<256x128xf32>
    %52 = tpu.concatenate %35, %37, %39, %41, %43, %45, %47, %49, %51 in 1 : vector<256x128xf32>, vector<256x128xf32>, vector<256x128xf32>, vector<256x128xf32>, vector<256x128xf32>, vector<256x128xf32>, vector<256x128xf32>, vector<256x128xf32>, vector<256x128xf32> -> vector<256x1152xf32>
    %53 = arith.truncf %52 : vector<256x1152xf32> to vector<256x1152xbf16>
    %c0_69 = arith.constant 0 : index
    %c0_70 = arith.constant 0 : index
    %54 = vector.load %arg4[%c0_69, %c0_70] : memref<1152x128xbf16, #tpu.memory_space<vmem>>, vector<1152x128xbf16>
    %cst_71 = arith.constant dense<0.000000e+00> : vector<256x128xf32>
    %55 = tpu.matmul %53, %54, %cst_71 {dimension_numbers = #tpu.dot_dimension_numbers<[1], [0], [0], [1], [0, 0, 1, 1], [], []>} : vector<256x1152xbf16>, vector<1152x128xbf16>, vector<256x128xf32> -> vector<256x128xf32>
    %c0_72 = arith.constant 0 : index
    %c0_73 = arith.constant 0 : index
    %56 = vector.load %arg5[%c0_72, %c0_73] : memref<1x128xf32, #tpu.memory_space<vmem>>, vector<1x128xf32>
    %57 = vector.broadcast %56 : vector<1x128xf32> to vector<256x128xf32>
    %58 = arith.addf %55, %57 : vector<256x128xf32>
    %59 = vector.shape_cast %58 : vector<256x128xf32> to vector<16x16x128xf32>
    %cst_74 = arith.constant 0.000000e+00 : f32
    %60 = vector.broadcast %cst_74 : f32 to vector<16x16x128xf32>
    %61 = arith.maximumf %59, %60 : vector<16x16x128xf32>
    %c8_75 = arith.constant 8 : index
    %c8_76 = arith.constant 8 : index
    %c0_77 = arith.constant 0 : index
    %62 = vector.load %arg11[%c8_75, %c8_76, %c0_77] : memref<32x32x128xf32, #tpu.memory_space<vmem>>, vector<16x16x128xf32>
    tpu.vector_store %arg11[%c8_75, %c8_76, %c0_77], %61 {strides = array<i32>} : memref<32x32x128xf32, #tpu.memory_space<vmem>>, vector<16x16x128xf32>,
    %c7_78 = arith.constant 7 : index
    %c7_79 = arith.constant 7 : index
    %c0_80 = arith.constant 0 : index
    %63 = vector.load %arg11[%c7_78, %c7_79, %c0_80] : memref<32x32x128xf32, #tpu.memory_space<vmem>>, vector<16x16x128xf32>
    %64 = vector.shape_cast %63 : vector<16x16x128xf32> to vector<256x128xf32>
    %c7_81 = arith.constant 7 : index
    %c8_82 = arith.constant 8 : index
    %c0_83 = arith.constant 0 : index
    %65 = vector.load %arg11[%c7_81, %c8_82, %c0_83] : memref<32x32x128xf32, #tpu.memory_space<vmem>>, vector<16x16x128xf32>
    %66 = vector.shape_cast %65 : vector<16x16x128xf32> to vector<256x128xf32>
    %c7_84 = arith.constant 7 : index
    %c9_85 = arith.constant 9 : index
    %c0_86 = arith.constant 0 : index
    %67 = vector.load %arg11[%c7_84, %c9_85, %c0_86] : memref<32x32x128xf32, #tpu.memory_space<vmem>>, vector<16x16x128xf32>
    %68 = vector.shape_cast %67 : vector<16x16x128xf32> to vector<256x128xf32>
    %c8_87 = arith.constant 8 : index
    %c7_88 = arith.constant 7 : index
    %c0_89 = arith.constant 0 : index
    %69 = vector.load %arg11[%c8_87, %c7_88, %c0_89] : memref<32x32x128xf32, #tpu.memory_space<vmem>>, vector<16x16x128xf32>
    %70 = vector.shape_cast %69 : vector<16x16x128xf32> to vector<256x128xf32>
    %c8_90 = arith.constant 8 : index
    %c8_91 = arith.constant 8 : index
    %c0_92 = arith.constant 0 : index
    %71 = vector.load %arg11[%c8_90, %c8_91, %c0_92] : memref<32x32x128xf32, #tpu.memory_space<vmem>>, vector<16x16x128xf32>
    %72 = vector.shape_cast %71 : vector<16x16x128xf32> to vector<256x128xf32>
    %c8_93 = arith.constant 8 : index
    %c9_94 = arith.constant 9 : index
    %c0_95 = arith.constant 0 : index
    %73 = vector.load %arg11[%c8_93, %c9_94, %c0_95] : memref<32x32x128xf32, #tpu.memory_space<vmem>>, vector<16x16x128xf32>
    %74 = vector.shape_cast %73 : vector<16x16x128xf32> to vector<256x128xf32>
    %c9_96 = arith.constant 9 : index
    %c7_97 = arith.constant 7 : index
    %c0_98 = arith.constant 0 : index
    %75 = vector.load %arg11[%c9_96, %c7_97, %c0_98] : memref<32x32x128xf32, #tpu.memory_space<vmem>>, vector<16x16x128xf32>
    %76 = vector.shape_cast %75 : vector<16x16x128xf32> to vector<256x128xf32>
    %c9_99 = arith.constant 9 : index
    %c8_100 = arith.constant 8 : index
    %c0_101 = arith.constant 0 : index
    %77 = vector.load %arg11[%c9_99, %c8_100, %c0_101] : memref<32x32x128xf32, #tpu.memory_space<vmem>>, vector<16x16x128xf32>
    %78 = vector.shape_cast %77 : vector<16x16x128xf32> to vector<256x128xf32>
    %c9_102 = arith.constant 9 : index
    %c9_103 = arith.constant 9 : index
    %c0_104 = arith.constant 0 : index
    %79 = vector.load %arg11[%c9_102, %c9_103, %c0_104] : memref<32x32x128xf32, #tpu.memory_space<vmem>>, vector<16x16x128xf32>
    %80 = vector.shape_cast %79 : vector<16x16x128xf32> to vector<256x128xf32>
    %81 = tpu.concatenate %64, %66, %68, %70, %72, %74, %76, %78, %80 in 1 : vector<256x128xf32>, vector<256x128xf32>, vector<256x128xf32>, vector<256x128xf32>, vector<256x128xf32>, vector<256x128xf32>, vector<256x128xf32>, vector<256x128xf32>, vector<256x128xf32> -> vector<256x1152xf32>
    %82 = arith.truncf %81 : vector<256x1152xf32> to vector<256x1152xbf16>
    %c0_105 = arith.constant 0 : index
    %c0_106 = arith.constant 0 : index
    %83 = vector.load %arg6[%c0_105, %c0_106] : memref<1152x128xbf16, #tpu.memory_space<vmem>>, vector<1152x128xbf16>
    %cst_107 = arith.constant dense<0.000000e+00> : vector<256x128xf32>
    %84 = tpu.matmul %82, %83, %cst_107 {dimension_numbers = #tpu.dot_dimension_numbers<[1], [0], [0], [1], [0, 0, 1, 1], [], []>} : vector<256x1152xbf16>, vector<1152x128xbf16>, vector<256x128xf32> -> vector<256x128xf32>
    %c0_108 = arith.constant 0 : index
    %c0_109 = arith.constant 0 : index
    %85 = vector.load %arg7[%c0_108, %c0_109] : memref<1x128xf32, #tpu.memory_space<vmem>>, vector<1x128xf32>
    %86 = vector.broadcast %85 : vector<1x128xf32> to vector<256x128xf32>
    %87 = arith.addf %84, %86 : vector<256x128xf32>
    %88 = vector.shape_cast %87 : vector<256x128xf32> to vector<16x16x128xf32>
    %89 = arith.addf %88, %32 : vector<16x16x128xf32>
    %cst_110 = arith.constant 0.000000e+00 : f32
    %90 = vector.broadcast %cst_110 : f32 to vector<16x16x128xf32>
    %91 = arith.maximumf %89, %90 : vector<16x16x128xf32>
    %92 = vector.shape_cast %91 : vector<16x16x128xf32> to vector<256x128xf32>
    %cst_111 = arith.constant dense<0.000000e+00> : vector<128xf32>
    %93 = vector.multi_reduction <add>, %92, %cst_111 [0] : vector<256x128xf32> to vector<128xf32>
    %94 = vector.shape_cast %93 : vector<128xf32> to vector<1x128xf32>
    %cst_112 = arith.constant 2.560000e+02 : f32
    %95 = vector.broadcast %cst_112 : f32 to vector<1x128xf32>
    %96 = arith.divf %94, %95 : vector<1x128xf32>
    %97 = arith.truncf %96 : vector<1x128xf32> to vector<1x128xbf16>
    %c0_113 = arith.constant 0 : index
    %c0_114 = arith.constant 0 : index
    %98 = vector.load %arg8[%c0_113, %c0_114] : memref<128x128xbf16, #tpu.memory_space<vmem>>, vector<128x128xbf16>
    %cst_115 = arith.constant dense<0.000000e+00> : vector<1x128xf32>
    %99 = tpu.matmul %97, %98, %cst_115 {dimension_numbers = #tpu.dot_dimension_numbers<[1], [0], [0], [1], [0, 0, 1, 1], [], []>} : vector<1x128xbf16>, vector<128x128xbf16>, vector<1x128xf32> -> vector<1x128xf32>
    %c0_116 = arith.constant 0 : index
    %c0_117 = arith.constant 0 : index
    %100 = vector.load %arg9[%c0_116, %c0_117] : memref<1x128xf32, #tpu.memory_space<vmem>>, vector<1x128xf32>
    %101 = arith.addf %99, %100 : vector<1x128xf32>
    %c0_118 = arith.constant 0 : index
    %c0_119 = arith.constant 0 : index
    %c0_120 = arith.constant 0 : index
    %102 = vector.load %arg10[%c0_118, %c0_119, %c0_120] : memref<1x1x128xf32, #tpu.memory_space<vmem>>, vector<1x1x128xf32>
    %103 = vector.shape_cast %102 : vector<1x1x128xf32> to vector<1x128xf32>
    %104 = vector.shape_cast %101 : vector<1x128xf32> to vector<1x1x128xf32>
    tpu.vector_store %arg10[%c0_118, %c0_119, %c0_120], %104 {strides = array<i32>} : memref<1x1x128xf32, #tpu.memory_space<vmem>>, vector<1x1x128xf32>,
    return
  }
  func.func @transform_0(%arg0: i32) -> (i32, i32, i32, i32) {
    %c0_i32 = arith.constant 0 : i32
    %c0_i32_0 = arith.constant 0 : i32
    %c0_i32_1 = arith.constant 0 : i32
    %c0_i32_2 = arith.constant 0 : i32
    return %arg0, %c0_i32, %c0_i32_0, %c0_i32_1 : i32, i32, i32, i32
  }
  func.func @transform_1(%arg0: i32) -> (i32, i32) {
    %c0_i32 = arith.constant 0 : i32
    %c0_i32_0 = arith.constant 0 : i32
    %c0_i32_1 = arith.constant 0 : i32
    return %c0_i32, %c0_i32_0 : i32, i32
  }
  func.func @transform_2(%arg0: i32) -> (i32, i32) {
    %c0_i32 = arith.constant 0 : i32
    %c0_i32_0 = arith.constant 0 : i32
    %c0_i32_1 = arith.constant 0 : i32
    return %c0_i32, %c0_i32_0 : i32, i32
  }
  func.func @transform_3(%arg0: i32) -> (i32, i32) {
    %c0_i32 = arith.constant 0 : i32
    %c0_i32_0 = arith.constant 0 : i32
    %c0_i32_1 = arith.constant 0 : i32
    return %c0_i32, %c0_i32_0 : i32, i32
  }
  func.func @transform_4(%arg0: i32) -> (i32, i32) {
    %c0_i32 = arith.constant 0 : i32
    %c0_i32_0 = arith.constant 0 : i32
    %c0_i32_1 = arith.constant 0 : i32
    return %c0_i32, %c0_i32_0 : i32, i32
  }
  func.func @transform_5(%arg0: i32) -> (i32, i32) {
    %c0_i32 = arith.constant 0 : i32
    %c0_i32_0 = arith.constant 0 : i32
    %c0_i32_1 = arith.constant 0 : i32
    return %c0_i32, %c0_i32_0 : i32, i32
  }
  func.func @transform_6(%arg0: i32) -> (i32, i32) {
    %c0_i32 = arith.constant 0 : i32
    %c0_i32_0 = arith.constant 0 : i32
    %c0_i32_1 = arith.constant 0 : i32
    return %c0_i32, %c0_i32_0 : i32, i32
  }
  func.func @transform_7(%arg0: i32) -> (i32, i32) {
    %c0_i32 = arith.constant 0 : i32
    %c0_i32_0 = arith.constant 0 : i32
    %c0_i32_1 = arith.constant 0 : i32
    return %c0_i32, %c0_i32_0 : i32, i32
  }
  func.func @transform_8(%arg0: i32) -> (i32, i32) {
    %c0_i32 = arith.constant 0 : i32
    %c0_i32_0 = arith.constant 0 : i32
    %c0_i32_1 = arith.constant 0 : i32
    return %c0_i32, %c0_i32_0 : i32, i32
  }
  func.func @transform_9(%arg0: i32) -> (i32, i32, i32) {
    %c0_i32 = arith.constant 0 : i32
    %c0_i32_0 = arith.constant 0 : i32
    %c0_i32_1 = arith.constant 0 : i32
    return %arg0, %c0_i32, %c0_i32_0 : i32, i32, i32
  }
}

</mosaic_0001>

<bundles_post_ra>
// kernel: model_forward.1
= control target key start
LH: loop header
LB: loop body
LE: loop exit
PB: predicated region body
PF: predicated region fallthrough
CT: control target
= control target key end

     0   :  { %14 = vsyncpa [#allocation4], 0  ;;  %s11339_s0 = inlined_call_operand.vmem [shape: f32[2,16,16,128], index: 0, kind: input, shape index: {}]   ;;  %s11340_s1 = inlined_call_operand.vmem [shape: bf16[1152,128], index: 1, kind: input, shape index: {}]   ;;  %s11341_s2 = inlined_call_operand.vmem [shape: f32[1,128], index: 2, kind: input, shape index: {}]   ;;  %s11342_s3 = inlined_call_operand.vmem [shape: bf16[1152,128], index: 3, kind: input, shape index: {}]   ;;  %s11343_s4 = inlined_call_operand.vmem [shape: f32[1,128], index: 4, kind: input, shape index: {}]   ;;  %s11344_s5 = inlined_call_operand.hbm [shape: bf16[1152,128], index: 5, kind: input, shape index: {}]   ;;  %s11345_s6 = inlined_call_operand.vmem [shape: f32[1,128], index: 6, kind: input, shape index: {}]   ;;  %s11346_s7 = inlined_call_operand.vmem [shape: bf16[128,128], index: 7, kind: input, shape index: {}]   ;;  %s11347_s8 = inlined_call_operand.vmem [shape: f32[1,128], index: 8, kind: input, shape index: {}]   ;;  %s11348_s9 = inlined_call_operand.hbm [shape: f32[2,1,128], index: 9, kind: output, shape index: {}]  }
   0x1   :  { %15 = vsyncpa [#allocation5], 0 }
   0x2   :  { %17 = vsyncpa [#allocation5 + $0x1], 0  ;;  %s8694_s30 = smov 0   ;;  %s8696_s10 = smov 0  }
   0x3   :  { %s8698_s11 = smov 0   ;;  %s8700_s12 = smov 0  }
   0x4 LB: > { %s8715_s13 = sadd.s32 4294967295, %s8635_s12   ;;  %s6419_s14 = sadd.s32 4294967294, %s8635_s12   ;;  %s8635_s12 = sphi %s8700_s12, %s11640_s12   ;;  %s8631_s11 = sphi %s8698_s11, %s11639_s11   ;;  %s8627_s10 = sphi %s8696_s10, %s11638_s10   ;;  %s8623_s30 = sphi %s8694_s30, %s11637_s30  }
   0x5   : > { %s8719_s15 = sadd.s32 1, %s8635_s12   ;;  %s224_s16 = sadd.s32 1, %s8631_s11 }
   0x6   : > { %s221_s17 = ssub.s32 %s8635_s12, %s8719_s15  ;;  %p234_p0 = scmp.ne.s32.totalorder %s8631_s11, %s8627_s10 }
   0x7   : > { %p222_p1 = scmp.eq.s32.totalorder %s221_s17, 0  ;;  %p235_p2 = scmp.eq.s32.totalorder %s8715_s13, 1 }
   0x8   : > { %p240_p3 = scmp.ne.s32.totalorder %s8627_s10, %s8623_s30  ;;  %p241_p4 = scmp.eq.s32.totalorder %s6419_s14, 1 }
   0x9   : > { %s8730_s18 = scalar_select %p222_p1, %s8631_s11, %s224_s16  }
   0xa   : > { %p8732_p5 = por %p235_p2, %p234_p0  ;;  %p8736_p6 = por %p241_p4, %p240_p3 }
   0xb   : > { %p6420_p7 = scmp.ge.s32.totalorder %s8635_s12, 1  ;;  %p248_p8 = scmp.lt.s32.totalorder %s8635_s12, 3 }
   0xc   : > { %s11384_s20 = scalar_select %p8736_p6, 1, 0 }
   0xd   : > { %p8277_p9 = scmp.eq.s32.totalorder %s8715_s13, 0  ;;  %p8743_p10 = pnand %p6420_p7, %p248_p8 }
   0xe   : > { %s8637_s22 = smov [#allocation3]  }
   0xf   : > { %s272_s23 = sshll.u32 %s8637_s22, 4  ;;  %p8269_p11 = pneg %p8743_p10  ;;  %s273_s23 = int_to_ptr.vmem [resolvable:$true] %s272_s23 }
  0x10   : > { %s8556_s24 = scalar_lea.vmem %s273_s23, 9216  ;;  %p8564_p3 = scmp.lt.s32.totalorder %s273_s23, %s273_s23 }
  0x11   : > { %p8270_p12 = pnand %p8277_p9, %p8269_p11  ;;  %p8557_p0 = scmp.ne.s32.totalorder %s273_s23, %s8556_s24 }
  0x12   : > { %p8565_p4 = scmp.lt.s32.totalorder %s8556_s24, %s8556_s24 }
  0x13   : > { %p8547_p13 = pneg %p8270_p12 }
  0x14   : > { %p8566_p6 = por %p8565_p4, %p8564_p3 }
  0x15   : > { %p8559_p1 = pnand %p8557_p0, %p8547_p13 }
  0x17   : > { %p8560_p2 = pneg %p8559_p1 }
  0x19   : > { %p8567_p7 = pnand %p8566_p6, %p8560_p2 }
  0x1b   : > { %8570 = shalt.err (!%p8567_p7)
}
  0x1c   : > { %s8638_s25 = smov 64   ;;  %s8639_s26 = smov 4  }
  0x1d   : > { %8272 = dma.hbm_to_vmem [thread:$0]  (!%p8270_p12), %s11344_s5, 9216, %s273_s23, [#allocation4], %s8638_s25, %s8638_s25, %s8639_s26  }
  0x1e   : > { %305 = sbr.rel (%p8743_p10) target bundleno = 1740 (0x6cc), region = 56 }
  0x23   : > { %8614 = dma.done.wait (%p8277_p9), [#allocation4], 9216  }
  0x24   : > { %8616 = vsyncadd (%p8277_p9), [#allocation4], 4294958080  ;;  %v8640_v0 = vmov 0.0   ;;  %v8641_v1 = vmov 0.0|0.0   ;;  %v8317_v2 = vld [vmem:[%s11340_s1 + $0x78] sm:$0xff]   ;;  %v8321_v6 = vld [vmem:[%s11340_s1 + $0x70] sm:$0xff]  }
  0x25   : > { %346 = vst [vmem:[#allocation2] sm:$0xff] %v8640_v0  ;;  %374 = vst [vmem:[#allocation2 + $0xe0] sm:$0xff] %v8640_v0  ;;  %1588 = vmatprep.mubr.bf16.mxu0 %v8641_v1  ;;  %v8318_v3 = vld [vmem:[%s11340_s1 + $0xf8] sm:$0xff]   ;;  %6658 = vmatprep.subr.bf16.mxu0 %v8317_v2  ;;  %v8322_v7 = vld [vmem:[%s11340_s1 + $0xf0] sm:$0xff]   ;;  %p340_p6 = scmp.lt.s32.totalorder %s8715_s13, 1  ;;  %vm8642_vm0 = vmmov 0  }
  0x26   : > { %375 = vst [vmem:[#allocation2 + $0xe8] sm:$0xff] %v8640_v0  ;;  %376 = vst [vmem:[#allocation2 + $0xf0] sm:$0xff] %v8640_v0  ;;  %v8319_v4 = vld [vmem:[%s11340_s1 + $0x38] sm:$0xff]   ;;  %6770 = vmatprep.subr.bf16.mxu1 %v8318_v3  ;;  %v8323_v8 = vld [vmem:[%s11340_s1 + $0x30] sm:$0xff]   ;;  %s338_s26 = sand.u32 1, %s8627_s10   ;;  %s6654_s29 = sshll.u32 %s8715_s13, 4 }
  0x27   : > { %377 = vst [vmem:[#allocation2 + $0xf8] sm:$0xff] %v8640_v0  ;;  %378 = vst [vmem:[#allocation2 + $0x100] sm:$0xff] %v8640_v0  ;;  %v8320_v5 = vld [vmem:[%s11340_s1 + $0xb8] sm:$0xff]   ;;  %6659 = vmatpush3.bf16.msra.mxu0 %v8319_v4  ;;  %v8324_v9 = vld [vmem:[%s11340_s1 + $0xb0] sm:$0xff]   ;;  %s341_s27 = scalar_select %p340_p6, %s8715_s13, 1 }
  0x28   : > { %381 = vst [vmem:[#allocation2 + $0x118] sm:$0xff] %v8640_v0  ;;  %382 = vst [vmem:[#allocation2 + $0x120] sm:$0xff] %v8640_v0  ;;  %6771 = vmatpush3.bf16.msra.mxu1 %v8320_v5  ;;  %6660 = vmatprep.subr.bf16.mxu0 %v8321_v6  ;;  %v8325_v10 = vld [vmem:[%s11340_s1 + $0x68] sm:$0xff]   ;;  %v8329_v14 = vld [vmem:[%s11340_s1 + $0x60] sm:$0xff]   ;;  %s11298_s21 = scalar_lea.hbm %s11348_s9, %s6654_s29  ;;  %s8643_s13 = smov [#allocation6]  }
  0x29   : > { %385 = vst [vmem:[#allocation2 + $0x138] sm:$0xff] %v8640_v0  ;;  %386 = vst [vmem:[#allocation2 + $0x140] sm:$0xff] %v8640_v0  ;;  %6772 = vmatprep.subr.bf16.mxu1 %v8322_v7  ;;  %v8326_v11 = vld [vmem:[%s11340_s1 + $0xe8] sm:$0xff]   ;;  %v8330_v15 = vld [vmem:[%s11340_s1 + $0xe0] sm:$0xff]   ;;  %s6657_s24 = sshll.u32 %s341_s27, 8  ;;  %s6340_s27 = scalar_lea.sflag [#allocation5], %s338_s26 }
  0x2a   : > { %389 = vst [vmem:[#allocation2 + $0x158] sm:$0xff] %v8640_v0  ;;  %390 = vst [vmem:[#allocation2 + $0x160] sm:$0xff] %v8640_v0  ;;  %v8327_v12 = vld [vmem:[%s11340_s1 + $0x28] sm:$0xff]   ;;  %v8331_v16 = vld [vmem:[%s11340_s1 + $0x20] sm:$0xff]   ;;  %s8855_s22 = scalar_lea.vmem %s11339_s0, %s6657_s24  ;;  %s8575_s25 = sshll.u32 %s8643_s13, 4  ;;  %s8576_s25 = int_to_ptr.vmem [resolvable:$false] %s8575_s25 }
  0x2b   : > { %393 = vst [vmem:[#allocation2 + $0x178] sm:$0xff] %v8640_v0  ;;  %394 = vst [vmem:[#allocation2 + $0x180] sm:$0xff] %v8640_v0  ;;  %6661 = vmatpush3.bf16.msra.mxu0 %v8323_v8  ;;  %v8328_v13 = vld [vmem:[%s11340_s1 + $0xa8] sm:$0xff]   ;;  %v8332_v17 = vld [vmem:[%s11340_s1 + $0xa0] sm:$0xff]   ;;  %s8577_s24 = scalar_lea.vmem %s8576_s25, 32 }
  0x2c   : > { %397 = vst [vmem:[#allocation2 + $0x198] sm:$0xff] %v8640_v0  ;;  %398 = vst [vmem:[#allocation2 + $0x1a0] sm:$0xff] %v8640_v0  ;;  %6773 = vmatpush3.bf16.msra.mxu1 %v8324_v9  ;;  %6662 = vmatprep.subr.bf16.mxu0 %v8325_v10  ;;  %v8333_v18 = vld [vmem:[%s11340_s1 + $0x58] sm:$0xff]   ;;  %v8337_v22 = vld [vmem:[%s11340_s1 + $0x50] sm:$0xff]  }
  0x2d   : > { %401 = vst [vmem:[#allocation2 + $0x1b8] sm:$0xff] %v8640_v0  ;;  %402 = vst [vmem:[#allocation2 + $0x1c0] sm:$0xff] %v8640_v0  ;;  %6774 = vmatprep.subr.bf16.mxu1 %v8326_v11  ;;  %v8334_v19 = vld [vmem:[%s11340_s1 + $0xd8] sm:$0xff]   ;;  %v8338_v23 = vld [vmem:[%s11340_s1 + $0xd0] sm:$0xff]  }
  0x2e   : > { %405 = vst [vmem:[#allocation2 + $0x1d8] sm:$0xff] %v8640_v0  ;;  %406 = vst [vmem:[#allocation2 + $0x1e0] sm:$0xff] %v8640_v0  ;;  %v8335_v20 = vld [vmem:[%s11340_s1 + $0x18] sm:$0xff]   ;;  %v8339_v24 = vld [vmem:[%s11340_s1 + $0x10] sm:$0xff]  }
  0x2f   : > { %409 = vst [vmem:[#allocation2 + $0x1f8] sm:$0xff] %v8640_v0  ;;  %410 = vst [vmem:[#allocation2 + $0x200] sm:$0xff] %v8640_v0  ;;  %6663 = vmatpush3.bf16.msra.mxu0 %v8327_v12  ;;  %v8336_v21 = vld [vmem:[%s11340_s1 + $0x98] sm:$0xff]   ;;  %v8340_v25 = vld [vmem:[%s11340_s1 + $0x90] sm:$0xff]  }
  0x30   : > { %413 = vst [vmem:[#allocation2 + $0x218] sm:$0xff] %v8640_v0  ;;  %414 = vst [vmem:[#allocation2 + $0x220] sm:$0xff] %v8640_v0  ;;  %6775 = vmatpush3.bf16.msra.mxu1 %v8328_v13  ;;  %6664 = vmatprep.subr.bf16.mxu0 %v8329_v14  ;;  %v8341_v26 = vld [vmem:[%s11340_s1 + $0x48] sm:$0xff]   ;;  %v8345_v30 = vld [vmem:[%s11340_s1 + $0x40] sm:$0xff]  }
  0x31   : > { %417 = vst [vmem:[#allocation2 + $0x238] sm:$0xff] %v8640_v0  ;;  %418 = vst [vmem:[#allocation2 + $0x240] sm:$0xff] %v8640_v0  ;;  %6776 = vmatprep.subr.bf16.mxu1 %v8330_v15  ;;  %v8342_v27 = vld [vmem:[%s11340_s1 + $0xc8] sm:$0xff]   ;;  %v8346_v31 = vld [vmem:[%s11340_s1 + $0xc0] sm:$0xff]  }
  0x32   : > { %421 = vst [vmem:[#allocation2 + $0x258] sm:$0xff] %v8640_v0  ;;  %422 = vst [vmem:[#allocation2 + $0x260] sm:$0xff] %v8640_v0  ;;  %v8343_v28 = vld [vmem:[%s11340_s1 + $0x8] sm:$0xff]   ;;  %v8347_v32 = vld [vmem:[%s11340_s1] sm:$0xff]  }
  0x33   : > { %425 = vst [vmem:[#allocation2 + $0x278] sm:$0xff] %v8640_v0  ;;  %426 = vst [vmem:[#allocation2 + $0x280] sm:$0xff] %v8640_v0  ;;  %6665 = vmatpush3.bf16.msra.mxu0 %v8331_v16  ;;  %v8344_v29 = vld [vmem:[%s11340_s1 + $0x88] sm:$0xff]   ;;  %v8348_v33 = vld [vmem:[%s11340_s1 + $0x80] sm:$0xff]  }
  0x34   : > { %429 = vst [vmem:[#allocation2 + $0x298] sm:$0xff] %v8640_v0  ;;  %430 = vst [vmem:[#allocation2 + $0x2a0] sm:$0xff] %v8640_v0  ;;  %6777 = vmatpush3.bf16.msra.mxu1 %v8332_v17  ;;  %6666 = vmatprep.subr.bf16.mxu0 %v8333_v18  ;;  %v474_v34 = vld [vmem:[%s8855_s22] sm:$0xff]  ;;  %v475_v35 = vld [vmem:[%s8855_s22 + $0x8] sm:$0xff] }
  0x35   : > { %433 = vst [vmem:[#allocation2 + $0x2b8] sm:$0xff] %v8640_v0  ;;  %434 = vst [vmem:[#allocation2 + $0x2c0] sm:$0xff] %v8640_v0  ;;  %6778 = vmatprep.subr.bf16.mxu1 %v8334_v19  ;;  %v540_v36 = vld [vmem:[#allocation2 + $0xe7] sm:$0xff]  ;;  %v541_v37 = vld [vmem:[#allocation2 + $0xef] sm:$0xff]  ;;  %v8865_v38 = vpack.c.bf16 %v475_v35, %v474_v34 }
  0x36   : > { %437 = vst [vmem:[#allocation2 + $0x2d8] sm:$0xff] %v8640_v0  ;;  %438 = vst [vmem:[#allocation2 + $0x2e0] sm:$0xff] %v8640_v0  ;;  %v829_v39 = vpack.c.bf16 %v541_v37, %v540_v36  ;;  %v8349_v40 = vld [vmem:[%s11340_s1 + $0x178] sm:$0xff]   ;;  %v604_v41 = vld [vmem:[#allocation2 + $0xe9] sm:$0xff] }
  0x37   : > { %441 = vst [vmem:[#allocation2 + $0x2f8] sm:$0xff] %v8640_v0  ;;  %442 = vst [vmem:[#allocation2 + $0x300] sm:$0xff] %v8640_v0  ;;  %6667 = vmatpush3.bf16.msra.mxu0 %v8335_v20  ;;  %v605_v42 = vld [vmem:[#allocation2 + $0xf1] sm:$0xff]  ;;  %v478_v46 = vld [vmem:[%s8855_s22 + $0x20] sm:$0xff] }
  0x38   : > { %443 = vst [vmem:[#allocation2 + $0x308] sm:$0xff] %v8640_v0  ;;  %444 = vst [vmem:[#allocation2 + $0x310] sm:$0xff] %v8640_v0  ;;  %6779 = vmatpush3.bf16.msra.mxu1 %v8336_v21  ;;  %6668 = vmatprep.subr.bf16.mxu0 %v8337_v22  ;;  %v8350_v43 = vld [vmem:[%s11340_s1 + $0x138] sm:$0xff]   ;;  %v476_v44 = vld [vmem:[%s8855_s22 + $0x10] sm:$0xff]  ;;  %v831_v54 = vpack.c.bf16 %v605_v42, %v604_v41 }
  0x39   : > { %445 = vst [vmem:[#allocation2 + $0x318] sm:$0xff] %v8640_v0  ;;  %6780 = vmatprep.subr.bf16.mxu1 %v8338_v23  ;;  %507 = vst [vmem:[#allocation2 + $0x108] sm:$0xff] %v474_v34  ;;  %v477_v45 = vld [vmem:[%s8855_s22 + $0x18] sm:$0xff]  ;;  %v479_v47 = vld [vmem:[%s8855_s22 + $0x28] sm:$0xff] }
  0x3a   : > { %508 = vst [vmem:[#allocation2 + $0x110] sm:$0xff] %v475_v35  ;;  %509 = vst [vmem:[#allocation2 + $0x128] sm:$0xff] %v476_v44  ;;  %v8351_v48 = vld [vmem:[%s11340_s1 + $0x170] sm:$0xff]   ;;  %v8888_v51 = vld [vmem:[%s8855_s22 + $0x38] sm:$0xff]  ;;  %v8892_v56 = vpack.c.bf16 %v477_v45, %v476_v44  ;;  %v8926_v9 = vpack.c.bf16 %v479_v47, %v478_v46 }
  0x3b   : > { %6669 = vmatpush3.bf16.msra.mxu0 %v8339_v24  ;;  %510 = vst [vmem:[#allocation2 + $0x130] sm:$0xff] %v477_v45  ;;  %511 = vst [vmem:[#allocation2 + $0x148] sm:$0xff] %v478_v46  ;;  %v8352_v49 = vld [vmem:[%s11340_s1 + $0x130] sm:$0xff]   ;;  %v8895_v57 = vld [vmem:[%s8855_s22 + $0x40] sm:$0xff] }
  0x3c   : > { %6781 = vmatpush3.bf16.msra.mxu1 %v8340_v25  ;;  %6670 = vmatprep.subr.bf16.mxu0 %v8341_v26  ;;  %512 = vst [vmem:[#allocation2 + $0x150] sm:$0xff] %v479_v47  ;;  %v8885_v50 = vld [vmem:[%s8855_s22 + $0x30] sm:$0xff]  ;;  %514 = vst [vmem:[#allocation2 + $0x170] sm:$0xff] %v8888_v51  ;;  %v8898_v58 = vld [vmem:[%s8855_s22 + $0x48] sm:$0xff] }
  0x3d   : > { %6782 = vmatprep.subr.bf16.mxu1 %v8342_v27  ;;  %513 = vst [vmem:[#allocation2 + $0x168] sm:$0xff] %v8885_v50  ;;  %515 = vst [vmem:[#allocation2 + $0x188] sm:$0xff] %v8895_v57  ;;  %v8353_v59 = vld [vmem:[%s11340_s1 + $0x168] sm:$0xff]   ;;  %v8912_v4 = vld [vmem:[%s8855_s22 + $0x50] sm:$0xff]  ;;  %v8969_v24 = vpack.c.bf16 %v8888_v51, %v8885_v50 }
  0x3e   : > { %516 = vst [vmem:[#allocation2 + $0x190] sm:$0xff] %v8898_v58  ;;  %v8354_v60 = vld [vmem:[%s11340_s1 + $0x128] sm:$0xff]   ;;  %517 = vst [vmem:[#allocation2 + $0x1a8] sm:$0xff] %v8912_v4  ;;  %v8919_v6 = vld [vmem:[%s8855_s22 + $0x58] sm:$0xff] }
  0x3f   : > { %6671 = vmatpush3.bf16.msra.mxu0 %v8343_v28  ;;  %v8922_v7 = vld [vmem:[%s8855_s22 + $0x60] sm:$0xff]  ;;  %518 = vst [vmem:[#allocation2 + $0x1b0] sm:$0xff] %v8919_v6  ;;  %v8931_v10 = vld [vmem:[%s8855_s22 + $0x68] sm:$0xff]  ;;  %v8943_v16 = vld [vmem:[%s8855_s22 + $0x70] sm:$0xff] }
  0x40   : > { %6783 = vmatpush3.bf16.msra.mxu1 %v8344_v29  ;;  %6672 = vmatprep.subr.bf16.mxu0 %v8345_v30  ;;  %v636_v52 = vld [vmem:[#allocation2 + $0x107] sm:$0xff]  ;;  %519 = vst [vmem:[#allocation2 + $0x1c8] sm:$0xff] %v8922_v7  ;;  %520 = vst [vmem:[#allocation2 + $0x1d0] sm:$0xff] %v8931_v10  ;;  %v8948_v17 = vld [vmem:[%s8855_s22 + $0x78] sm:$0xff] }
  0x41   : > { %6784 = vmatprep.subr.bf16.mxu1 %v8346_v31  ;;  %v637_v53 = vld [vmem:[#allocation2 + $0x10f] sm:$0xff]  ;;  %v638_v61 = vld [vmem:[#allocation2 + $0x127] sm:$0xff]  ;;  %521 = vst [vmem:[#allocation2 + $0x1e8] sm:$0xff] %v8943_v16  ;;  %522 = vst [vmem:[#allocation2 + $0x1f0] sm:$0xff] %v8948_v17 }
  0x42   : > { %v832_v55 = vpack.c.bf16 %v637_v53, %v636_v52  ;;  %v639_v62 = vld [vmem:[#allocation2 + $0x12f] sm:$0xff]  ;;  %v640_v2 = vld [vmem:[#allocation2 + $0x147] sm:$0xff]  ;;  %v8357_v21 = vld [vmem:[%s11340_s1 + $0x158] sm:$0xff]  }
  0x43   : > { %6673 = vmatpush3.bf16.msra.mxu0 %v8347_v32  ;;  %v8908_v63 = vpack.c.bf16 %v639_v62, %v638_v61  ;;  %v606_v0 = vld [vmem:[#allocation2 + $0x109] sm:$0xff]  ;;  %v607_v1 = vld [vmem:[#allocation2 + $0x111] sm:$0xff]  ;;  %v8355_v13 = vld [vmem:[%s11340_s1 + $0x160] sm:$0xff]  }
  0x44   : > { %6785 = vmatpush3.bf16.msra.mxu1 %v8348_v33  ;;  %6882 = vmatprep.subr.bf16.mxu0 %v8349_v40  ;;  %v641_v3 = vld [vmem:[#allocation2 + $0x14f] sm:$0xff]  ;;  %v8916_v5 = vpack.c.bf16 %v607_v1, %v606_v0  ;;  %v642_v14 = vld [vmem:[#allocation2 + $0x167] sm:$0xff]  ;;  %v8358_v25 = vld [vmem:[%s11340_s1 + $0x1f8] sm:$0xff]  }
  0x45   : > { %1749 = vmatprep.mubr.bf16.mxu1 %v832_v55  ;;  %v8924_v8 = vpack.c.bf16 %v641_v3, %v640_v2  ;;  %v608_v11 = vld [vmem:[#allocation2 + $0x129] sm:$0xff]  ;;  %v609_v12 = vld [vmem:[#allocation2 + $0x131] sm:$0xff]  ;;  %v8356_v15 = vld [vmem:[%s11340_s1 + $0x120] sm:$0xff]   ;;  %6994 = vmatprep.subr.bf16.mxu1 %v8358_v25 }
  0x46   : > { %1589 = vmatmul.mubr.bf16.vlgmr.msra.gmra.mxu0 %v829_v39  ;;  %v8952_v18 = vld [vmem:[%s8855_s22 + $0x80] sm:$0xff]  ;;  %v8955_v19 = vld [vmem:[%s8855_s22 + $0x88] sm:$0xff]  ;;  %v8963_v22 = vpack.c.bf16 %v609_v12, %v608_v11  ;;  %v8359_v26 = vld [vmem:[%s11340_s1 + $0x118] sm:$0xff]   ;;  %v9004_v39 = vpack.c.bf16 %v8898_v58, %v8895_v57  ;;  %v9081_v11 = vpack.c.bf16 %v8931_v10, %v8922_v7 }
  0x47   : > { %6883 = vmatpush3.bf16.msra.mxu0 %v8350_v43  ;;  %1596 = vmatprep.mubr.bf16.mxu0 %v8865_v38  ;;  %v643_v20 = vld [vmem:[#allocation2 + $0x16f] sm:$0xff]  ;;  %523 = vst [vmem:[#allocation2 + $0x208] sm:$0xff] %v8952_v18  ;;  %524 = vst [vmem:[#allocation2 + $0x210] sm:$0xff] %v8955_v19  ;;  %v8360_v27 = vld [vmem:[%s11340_s1 + $0x1b8] sm:$0xff]  }
  0x48   : > { %6884 = vmatprep.subr.bf16.mxu0 %v8351_v48  ;;  %1750 = vmatmul.mubr.bf16.vlgmr.msra.gmra.mxu1 %v831_v54  ;;  %v8965_v23 = vpack.c.bf16 %v643_v20, %v642_v14  ;;  %v610_v28 = vld [vmem:[#allocation2 + $0x149] sm:$0xff]  ;;  %v611_v29 = vld [vmem:[#allocation2 + $0x151] sm:$0xff]  ;;  %v8995_v35 = vld [vmem:[%s8855_s22 + $0xa0] sm:$0xff]  ;;  %v9046_v54 = vpack.c.bf16 %v8919_v6, %v8912_v4 }
  0x49   : > { %1757 = vmatprep.mubr.bf16.mxu1 %v8908_v63  ;;  %v644_v30 = vld [vmem:[#allocation2 + $0x187] sm:$0xff]  ;;  %v645_v31 = vld [vmem:[#allocation2 + $0x18f] sm:$0xff]  ;;  %6995 = vmatpush3.bf16.msra.mxu1 %v8360_v27  ;;  %v8988_v33 = vld [vmem:[%s8855_s22 + $0x98] sm:$0xff]  ;;  %v8991_v34 = vpack.c.bf16 %v611_v29, %v610_v28  ;;  %527 = vst [vmem:[#allocation2 + $0x248] sm:$0xff] %v8995_v35 }
  0x4a   : > { %v8985_v32 = vld [vmem:[%s8855_s22 + $0x90] sm:$0xff]  ;;  %526 = vst [vmem:[#allocation2 + $0x230] sm:$0xff] %v8988_v33  ;;  %v8998_v36 = vld [vmem:[%s8855_s22 + $0xa8] sm:$0xff]  ;;  %v9000_v37 = vpack.c.bf16 %v645_v31, %v644_v30  ;;  %v9028_v48 = vld [vmem:[%s8855_s22 + $0xb8] sm:$0xff] }
  0x4b   : > { %6885 = vmatpush3.bf16.msra.mxu0 %v8352_v49  ;;  %525 = vst [vmem:[#allocation2 + $0x228] sm:$0xff] %v8985_v32  ;;  %528 = vst [vmem:[#allocation2 + $0x250] sm:$0xff] %v8998_v36  ;;  %v8361_v40 = vld [vmem:[%s11340_s1 + $0x150] sm:$0xff]   ;;  %v646_v45 = vld [vmem:[#allocation2 + $0x1a7] sm:$0xff] }
  0x4c   : > { %6886 = vmatprep.subr.bf16.mxu0 %v8353_v59  ;;  %v8362_v41 = vld [vmem:[%s11340_s1 + $0x1f0] sm:$0xff]   ;;  %v9032_v49 = vld [vmem:[%s8855_s22 + $0xc0] sm:$0xff]  ;;  %v9035_v50 = vld [vmem:[%s8855_s22 + $0xc8] sm:$0xff]  ;;  %530 = vst [vmem:[#allocation2 + $0x270] sm:$0xff] %v9028_v48 }
  0x4d   : > { %v612_v42 = vld [vmem:[#allocation2 + $0x169] sm:$0xff]  ;;  %v613_v43 = vld [vmem:[#allocation2 + $0x171] sm:$0xff]  ;;  %6996 = vmatprep.subr.bf16.mxu1 %v8362_v41  ;;  %531 = vst [vmem:[#allocation2 + $0x288] sm:$0xff] %v9032_v49  ;;  %532 = vst [vmem:[#allocation2 + $0x290] sm:$0xff] %v9035_v50 }
  0x4e   : > { %1597 = vmatmul.mubr.bf16.gmra.mxu0 %v832_v55  ;;  %v8363_v44 = vld [vmem:[%s11340_s1 + $0x110] sm:$0xff]   ;;  %v9040_v52 = vpack.c.bf16 %v613_v43, %v612_v42  ;;  %v8365_v55 = vld [vmem:[%s11340_s1 + $0x148] sm:$0xff]   ;;  %v9068_v2 = vld [vmem:[%s8855_s22 + $0xd8] sm:$0xff] }
  0x4f   : > { %1604 = vmatprep.mubr.bf16.mxu0 %v8892_v56  ;;  %6887 = vmatpush3.bf16.msra.mxu0 %v8354_v60  ;;  %v8364_v46 = vld [vmem:[%s11340_s1 + $0x1b0] sm:$0xff]   ;;  %v8366_v57 = vld [vmem:[%s11340_s1 + $0x1e8] sm:$0xff]   ;;  %534 = vst [vmem:[#allocation2 + $0x2b0] sm:$0xff] %v9068_v2  ;;  %v8369_v4 = vld [vmem:[%s11340_s1 + $0x1e0] sm:$0xff]  }
  0x50   : > { %1758 = vmatmul.mubr.bf16.gmra.mxu1 %v8916_v5  ;;  %6888 = vmatprep.subr.bf16.mxu0 %v8355_v13  ;;  %v9023_v47 = vld [vmem:[%s8855_s22 + $0xb0] sm:$0xff]  ;;  %v8367_v58 = vld [vmem:[%s11340_s1 + $0x108] sm:$0xff]   ;;  %v8370_v12 = vld [vmem:[%s11340_s1 + $0x1a0] sm:$0xff]  }
  0x51   : > { %1765 = vmatprep.mubr.bf16.mxu1 %v8924_v8  ;;  %529 = vst [vmem:[#allocation2 + $0x268] sm:$0xff] %v9023_v47  ;;  %v647_v51 = vld [vmem:[#allocation2 + $0x1af] sm:$0xff]  ;;  %6997 = vmatpush3.bf16.msra.mxu1 %v8364_v46  ;;  %v648_v62 = vld [vmem:[#allocation2 + $0x1c7] sm:$0xff]  ;;  %v8372_v10 = vld [vmem:[%s11340_s1 + $0x1d8] sm:$0xff]  }
  0x52   : > { %v9042_v53 = vpack.c.bf16 %v647_v51, %v646_v45  ;;  %v8368_v59 = vld [vmem:[%s11340_s1 + $0x1a8] sm:$0xff]   ;;  %v615_v61 = vld [vmem:[#allocation2 + $0x191] sm:$0xff]  ;;  %6998 = vmatprep.subr.bf16.mxu1 %v8366_v57  ;;  %v502_v13 = vld [vmem:[%s8855_s22 + $0xe0] sm:$0xff] }
  0x53   : > { %6889 = vmatpush3.bf16.msra.mxu0 %v8356_v15  ;;  %v614_v60 = vld [vmem:[#allocation2 + $0x189] sm:$0xff]  ;;  %v617_v20 = vld [vmem:[#allocation2 + $0x1b1] sm:$0xff]  ;;  %535 = vst [vmem:[#allocation2 + $0x2c8] sm:$0xff] %v502_v13 }
  0x54   : > { %6890 = vmatprep.subr.bf16.mxu0 %v8357_v21  ;;  %v649_v0 = vld [vmem:[#allocation2 + $0x1cf] sm:$0xff]  ;;  %v9071_v3 = vpack.c.bf16 %v615_v61, %v614_v60  ;;  %v8371_v21 = vld [vmem:[%s11340_s1 + $0x140] sm:$0xff]   ;;  %v8374_v28 = vld [vmem:[%s11340_s1 + $0x198] sm:$0xff]   ;;  %v9152_v60 = vpack.c.bf16 %v8955_v19, %v8952_v18 }
  0x55   : > { %v9065_v1 = vld [vmem:[%s8855_s22 + $0xd0] sm:$0xff]  ;;  %6999 = vmatpush3.bf16.msra.mxu1 %v8368_v59  ;;  %v9077_v6 = vpack.c.bf16 %v649_v0, %v648_v62  ;;  %v503_v14 = vld [vmem:[%s8855_s22 + $0xe8] sm:$0xff]  ;;  %v9124_v45 = vld [vmem:[%s8855_s22 + $0xf8] sm:$0xff] }
  0x56   : > { %1605 = vmatmul.mubr.bf16.gmra.mxu0 %v8908_v63  ;;  %533 = vst [vmem:[#allocation2 + $0x2a8] sm:$0xff] %v9065_v1  ;;  %7000 = vmatprep.subr.bf16.mxu1 %v8369_v4  ;;  %v616_v15 = vld [vmem:[#allocation2 + $0x1a9] sm:$0xff]  ;;  %536 = vst [vmem:[#allocation2 + $0x2d0] sm:$0xff] %v503_v14  ;;  %v9091_v25 = vpack.c.bf16 %v503_v14, %v502_v13  ;;  %v8380_v61 = vld [vmem:[%s11340_s1 + $0x180] sm:$0xff]   ;;  %v9169_v13 = vpack.c.bf16 %v8988_v33, %v8985_v32 }
  0x57   : > { %1612 = vmatprep.mubr.bf16.mxu0 %v8926_v9  ;;  %6891 = vmatpush3.bf16.msra.mxu0 %v8359_v26  ;;  %v650_v7 = vld [vmem:[#allocation2 + $0x1e7] sm:$0xff]  ;;  %v651_v27 = vld [vmem:[#allocation2 + $0x1ef] sm:$0xff]  ;;  %v9106_v29 = vpack.c.bf16 %v617_v20, %v616_v15  ;;  %538 = vst [vmem:[#allocation2 + $0x2f0] sm:$0xff] %v9124_v45  ;;  %v9181_v32 = vpack.c.bf16 %v8998_v36, %v8995_v35 }
  0x58   : > { %1766 = vmatmul.mubr.bf16.gmra.mxu1 %v8963_v22  ;;  %6892 = vmatprep.subr.bf16.mxu0 %v8361_v40  ;;  %v8373_v26 = vld [vmem:[%s11340_s1 + $0x100] sm:$0xff]   ;;  %v8375_v30 = vld [vmem:[%s11340_s1 + $0x1d0] sm:$0xff]   ;;  %v9111_v31 = vpack.c.bf16 %v651_v27, %v650_v7  ;;  %v9115_v40 = vpack.c.bf16 %v8948_v17, %v8943_v16  ;;  %v8377_v16 = vld [vmem:[%s11340_s1 + $0x1c8] sm:$0xff]   ;;  %v9193_v35 = vpack.c.bf16 %v9028_v48, %v9023_v47 }
  0x59   : > { %1773 = vmatprep.mubr.bf16.mxu1 %v8965_v23  ;;  %7001 = vmatpush3.bf16.msra.mxu1 %v8370_v12  ;;  %v8376_v41 = vld [vmem:[%s11340_s1 + $0x190] sm:$0xff]   ;;  %v652_v46 = vld [vmem:[#allocation2 + $0x207] sm:$0xff]  ;;  %v9205_v47 = vpack.c.bf16 %v9035_v50, %v9032_v49  ;;  %v9217_v49 = vpack.c.bf16 %v9068_v2, %v9065_v1 }
  0x5a   : > { %7002 = vmatprep.subr.bf16.mxu1 %v8372_v10  ;;  %v9121_v42 = vld [vmem:[%s8855_s22 + $0xf0] sm:$0xff]  ;;  %v8378_v51 = vld [vmem:[%s11340_s1 + $0x188] sm:$0xff]   ;;  %s339_s22 = scalar_lea.vmem [#allocation6], %s338_s26 }
  0x5b   : > { %6893 = vmatpush3.bf16.msra.mxu0 %v8363_v44  ;;  %v618_v43 = vld [vmem:[#allocation2 + $0x1c9] sm:$0xff]  ;;  %v619_v44 = vld [vmem:[#allocation2 + $0x1d1] sm:$0xff]  ;;  %537 = vst [vmem:[#allocation2 + $0x2e8] sm:$0xff] %v9121_v42  ;;  %s6352_s14 = sshll.u32 %s339_s22, 4  ;;  %s11300_s14 = int_to_ptr.vmem [resolvable:$true] %s6352_s14 }
  0x5c   : > { %6894 = vmatprep.subr.bf16.mxu0 %v8365_v55  ;;  %v653_v17 = vld [vmem:[#allocation2 + $0x20f] sm:$0xff]  ;;  %v8379_v55 = vld [vmem:[%s11340_s1 + $0x1c0] sm:$0xff]   ;;  %v9141_v57 = vpack.c.bf16 %v619_v44, %v618_v43  ;;  %s8571_s23 = scalar_lea.vmem %s11300_s14, 16  ;;  %p8578_p11 = scmp.lt.s32.totalorder %s11300_s14, %s8576_s25 }
  0x5d   : > { %7003 = vmatpush3.bf16.msra.mxu1 %v8374_v28  ;;  %v9148_v59 = vpack.c.bf16 %v653_v17, %v652_v46  ;;  %v620_v62 = vld [vmem:[#allocation2 + $0x1e9] sm:$0xff]  ;;  %v621_v0 = vld [vmem:[#allocation2 + $0x1f1] sm:$0xff]  ;;  %p8572_p8 = scmp.ne.s32.totalorder %s11300_s14, %s8571_s23  ;;  %p8579_p12 = scmp.lt.s32.totalorder %s8577_s24, %s8571_s23 }
  0x5e   : > { %1613 = vmatmul.mubr.bf16.gmra.mxu0 %v8924_v8  ;;  %7004 = vmatprep.subr.bf16.mxu1 %v8375_v30  ;;  %v654_v4 = vld [vmem:[#allocation2 + $0x227] sm:$0xff]  ;;  %v655_v12 = vld [vmem:[#allocation2 + $0x22f] sm:$0xff]  ;;  %v9163_v18 = vpack.c.bf16 %v621_v0, %v620_v62 }
  0x5f   : > { %1620 = vmatprep.mubr.bf16.mxu0 %v8969_v24  ;;  %6895 = vmatpush3.bf16.msra.mxu0 %v8367_v58  ;;  %v9146_v58 = vld [vmem:[%s11340_s1 + $0x238] sm:$0xff]   ;;  %v9165_v19 = vpack.c.bf16 %v655_v12, %v654_v4  ;;  %v622_v14 = vld [vmem:[#allocation2 + $0x209] sm:$0xff]  ;;  %p8573_p9 = pnand %p8572_p8, %p8732_p5  ;;  %p8580_p13 = por %p8579_p12, %p8578_p11 }
  0x60   : > { %1774 = vmatmul.mubr.bf16.gmra.mxu1 %v8991_v34  ;;  %6896 = vmatprep.subr.bf16.mxu0 %v8371_v21  ;;  %v623_v15 = vld [vmem:[#allocation2 + $0x211] sm:$0xff]  ;;  %v656_v20 = vld [vmem:[#allocation2 + $0x247] sm:$0xff] }
  0x61   : > { %1781 = vmatprep.mubr.bf16.mxu1 %v9000_v37  ;;  %7005 = vmatpush3.bf16.msra.mxu1 %v8376_v41  ;;  %v657_v21 = vld [vmem:[#allocation2 + $0x24f] sm:$0xff]  ;;  %v9175_v7 = vpack.c.bf16 %v623_v15, %v622_v14  ;;  %v658_v27 = vld [vmem:[#allocation2 + $0x267] sm:$0xff]  ;;  %p8574_p10 = pneg %p8573_p9 }
  0x62   : > { %7006 = vmatprep.subr.bf16.mxu1 %v8377_v16  ;;  %v9177_v10 = vpack.c.bf16 %v657_v21, %v656_v20  ;;  %v624_v33 = vld [vmem:[#allocation2 + $0x229] sm:$0xff]  ;;  %v627_v43 = vld [vmem:[#allocation2 + $0x251] sm:$0xff] }
  0x63   : > { %6897 = vmatpush3.bf16.msra.mxu0 %v8373_v26  ;;  %v625_v26 = vld [vmem:[#allocation2 + $0x231] sm:$0xff]  ;;  %v626_v36 = vld [vmem:[#allocation2 + $0x249] sm:$0xff]  ;;  %p8581_p0 = pnand %p8580_p13, %p8574_p10 }
  0x64   : > { %8083 = vmatprep.subr.bf16.mxu0 %v9146_v58  ;;  %v659_v28 = vld [vmem:[#allocation2 + $0x26f] sm:$0xff]  ;;  %v9187_v30 = vpack.c.bf16 %v625_v26, %v624_v33  ;;  %v660_v44 = vld [vmem:[#allocation2 + $0x287] sm:$0xff]  ;;  %v9199_v16 = vpack.c.bf16 %v627_v43, %v626_v36 }
  0x65   : > { %7007 = vmatpush3.bf16.msra.mxu1 %v8378_v51  ;;  %v9189_v41 = vpack.c.bf16 %v659_v28, %v658_v27  ;;  %v661_v46 = vld [vmem:[#allocation2 + $0x28f] sm:$0xff]  ;;  %v664_v12 = vld [vmem:[#allocation2 + $0x2c7] sm:$0xff]  ;;  %v9237_v28 = vpack.c.bf16 %v9124_v45, %v9121_v42 }
  0x66   : > { %1621 = vmatmul.mubr.bf16.gmra.mxu0 %v8965_v23  ;;  %7008 = vmatprep.subr.bf16.mxu1 %v8379_v55  ;;  %v9201_v17 = vpack.c.bf16 %v661_v46, %v660_v44  ;;  %v628_v48 = vld [vmem:[#allocation2 + $0x269] sm:$0xff]  ;;  %v629_v51 = vld [vmem:[#allocation2 + $0x271] sm:$0xff] }
  0x67   : > { %1628 = vmatprep.mubr.bf16.mxu0 %v9004_v39  ;;  %v662_v55 = vld [vmem:[#allocation2 + $0x2a7] sm:$0xff]  ;;  %v9211_v62 = vpack.c.bf16 %v629_v51, %v628_v48  ;;  %v631_v4 = vld [vmem:[#allocation2 + $0x291] sm:$0xff] }
  0x68   : > { %1782 = vmatmul.mubr.bf16.gmra.mxu1 %v9040_v52  ;;  %v630_v50 = vld [vmem:[#allocation2 + $0x289] sm:$0xff]  ;;  %v633_v33 = vld [vmem:[#allocation2 + $0x2b1] sm:$0xff] }
  0x69   : > { %1789 = vmatprep.mubr.bf16.mxu1 %v9042_v53  ;;  %7009 = vmatpush3.bf16.msra.mxu1 %v8380_v61  ;;  %v663_v61 = vld [vmem:[#allocation2 + $0x2af] sm:$0xff]  ;;  %v9223_v15 = vpack.c.bf16 %v631_v4, %v630_v50  ;;  %v666_v1 = vld [vmem:[#allocation2 + $0x2e7] sm:$0xff] }
  0x6a   : > { %8247 = vmatprep.subr.bf16.mxu1 %v9146_v58  ;;  %v9213_v0 = vpack.c.bf16 %v663_v61, %v662_v55  ;;  %v665_v14 = vld [vmem:[#allocation2 + $0x2cf] sm:$0xff] }
  0x6b   : > { %v9225_v20 = vpack.c.bf16 %v665_v14, %v664_v12  ;;  %v632_v21 = vld [vmem:[#allocation2 + $0x2a9] sm:$0xff]  ;;  %v635_v43 = vld [vmem:[#allocation2 + $0x2d1] sm:$0xff] }
  0x6c   : > { %v667_v2 = vld [vmem:[#allocation2 + $0x2ef] sm:$0xff]  ;;  %v9231_v26 = vpack.c.bf16 %v633_v33, %v632_v21 }
  0x6d   : > { %v9233_v27 = vpack.c.bf16 %v667_v2, %v666_v1  ;;  %v634_v36 = vld [vmem:[#allocation2 + $0x2c9] sm:$0xff] }
  0x6e   : > { %1629 = vmatmul.mubr.bf16.gmra.mxu0 %v9000_v37  ;;  %v9243_v44 = vpack.c.bf16 %v635_v43, %v634_v36  ;;  %v8382_v46 = vld [vmem:[%s11340_s1 + $0x230] sm:$0xff]   ;;  %v8383_v42 = vld [vmem:[%s11340_s1 + $0x228] sm:$0xff]  }
  0x6f   : > { %1636 = vmatprep.mubr.bf16.mxu0 %v9046_v54 }
  0x70   : > { %1790 = vmatmul.mubr.bf16.gmra.mxu1 %v9071_v3 }
  0x71   : > { %1797 = vmatprep.mubr.bf16.mxu1 %v9077_v6 }
  0x76   : > { %1637 = vmatmul.mubr.bf16.gmra.mxu0 %v9042_v53 }
  0x77   : > { %1644 = vmatprep.mubr.bf16.mxu0 %v9081_v11 }
  0x78   : > { %1798 = vmatmul.mubr.bf16.gmra.mxu1 %v9106_v29 }
  0x79   : > { %1805 = vmatprep.mubr.bf16.mxu1 %v9111_v31 }
  0x7e   : > { %1645 = vmatmul.mubr.bf16.gmra.mxu0 %v9077_v6 }
  0x7f   : > { %1652 = vmatprep.mubr.bf16.mxu0 %v9115_v40 }
  0x80   : > { %1806 = vmatmul.mubr.bf16.gmra.mxu1 %v9141_v57 }
  0x81   : > { %1813 = vmatprep.mubr.bf16.mxu1 %v9148_v59 }
  0x86   : > { %1653 = vmatmul.mubr.bf16.gmra.mxu0 %v9111_v31 }
  0x87   : > { %1660 = vmatprep.mubr.bf16.mxu0 %v9152_v60 }
  0x88   : > { %1814 = vmatmul.mubr.bf16.gmra.mxu1 %v9163_v18 }
  0x89   : > { %1821 = vmatprep.mubr.bf16.mxu1 %v9165_v19 }
  0x8e   : > { %1661 = vmatmul.mubr.bf16.gmra.mxu0 %v9148_v59 }
  0x8f   : > { %1668 = vmatprep.mubr.bf16.mxu0 %v9169_v13 }
  0x90   : > { %1822 = vmatmul.mubr.bf16.gmra.mxu1 %v9175_v7 }
  0x91   : > { %1829 = vmatprep.mubr.bf16.mxu1 %v9177_v10 }
  0x96   : > { %1669 = vmatmul.mubr.bf16.gmra.mxu0 %v9165_v19 }
  0x97   : > { %1676 = vmatprep.mubr.bf16.mxu0 %v9181_v32 }
  0x98   : > { %1830 = vmatmul.mubr.bf16.gmra.mxu1 %v9187_v30 }
  0x99   : > { %1837 = vmatprep.mubr.bf16.mxu1 %v9189_v41 }
  0x9e   : > { %1677 = vmatmul.mubr.bf16.gmra.mxu0 %v9177_v10 }
  0x9f   : > { %1684 = vmatprep.mubr.bf16.mxu0 %v9193_v35 }
  0xa0   : > { %1838 = vmatmul.mubr.bf16.gmra.mxu1 %v9199_v16 }
  0xa1   : > { %1845 = vmatprep.mubr.bf16.mxu1 %v9201_v17 }
  0xa6   : > { %1685 = vmatmul.mubr.bf16.gmra.mxu0 %v9189_v41 }
  0xa7   : > { %1692 = vmatprep.mubr.bf16.mxu0 %v9205_v47 }
  0xa8   : > { %1846 = vmatmul.mubr.bf16.gmra.mxu1 %v9211_v62 }
  0xa9   : > { %1853 = vmatprep.mubr.bf16.mxu1 %v9213_v0 }
  0xae   : > { %1693 = vmatmul.mubr.bf16.gmra.mxu0 %v9201_v17 }
  0xaf   : > { %1700 = vmatprep.mubr.bf16.mxu0 %v9217_v49 }
  0xb0   : > { %1854 = vmatmul.mubr.bf16.gmra.mxu1 %v9223_v15 }
  0xb1   : > { %1861 = vmatprep.mubr.bf16.mxu1 %v9225_v20 }
  0xb6   : > { %1701 = vmatmul.mubr.bf16.gmra.mxu0 %v9213_v0 }
  0xb7   : > { %1708 = vmatprep.mubr.bf16.mxu0 %v9091_v25 }
  0xb8   : > { %1862 = vmatmul.mubr.bf16.gmra.mxu1 %v9231_v26 }
  0xb9   : > { %1869 = vmatprep.mubr.bf16.mxu1 %v9233_v27 }
  0xbe   : > { %1709 = vmatmul.mubr.bf16.gmra.mxu0 %v9225_v20 }
  0xbf   : > { %1910 = vmatprep.mubr.bf16.mxu0 %v8916_v5  ;;  %v8384_v5 = vld [vmem:[%s11340_s1 + $0x220] sm:$0xff]  }
  0xc0   : > { %1870 = vmatmul.mubr.bf16.gmra.mxu1 %v9243_v44 }
  0xc1   : > { %2071 = vmatprep.mubr.bf16.mxu1 %v8892_v56 }
  0xc6   : > { %1911 = vmatmul.mubr.bf16.vlgmr.msra.gmra.mxu0 %v8865_v38  ;;  %v8385_v38 = vld [vmem:[%s11340_s1 + $0x218] sm:$0xff]  }
  0xc7   : > { %8084 = vmatpush3.bf16.msra.mxu0 %v9146_v58  ;;  %1918 = vmatprep.mubr.bf16.mxu0 %v8963_v22 }
  0xc8   : > { %8085 = vmatprep.subr.bf16.mxu0 %v8382_v46  ;;  %2072 = vmatmul.mubr.bf16.vlgmr.msra.gmra.mxu1 %v8908_v63  ;;  %v8386_v63 = vld [vmem:[%s11340_s1 + $0x210] sm:$0xff]  }
  0xc9   : > { %2079 = vmatprep.mubr.bf16.mxu1 %v8926_v9  ;;  %8255 = vmatpush3.bf16.msra.mxu1 %v9146_v58 }
  0xca   : > { %8248 = vmatprep.subr.bf16.mxu1 %v8382_v46 }
  0xcb   : > { %8086 = vmatpush3.bf16.msra.mxu0 %v8382_v46 }
  0xcc   : > { %8087 = vmatprep.subr.bf16.mxu0 %v8383_v42 }
  0xcd   : > { %8256 = vmatpush3.bf16.msra.mxu1 %v8382_v46 }
  0xce   : > { %1919 = vmatmul.mubr.bf16.gmra.mxu0 %v8892_v56  ;;  %8249 = vmatprep.subr.bf16.mxu1 %v8383_v42  ;;  %v8387_v56 = vld [vmem:[%s11340_s1 + $0x208] sm:$0xff]  }
  0xcf   : > { %1926 = vmatprep.mubr.bf16.mxu0 %v8991_v34  ;;  %8088 = vmatpush3.bf16.msra.mxu0 %v8383_v42  ;;  %v9307_v34 = vld [vmem:[%s11341_s2] ss:$0 sm:$0xff] }
  0xd0   : > { %8089 = vmatprep.subr.bf16.mxu0 %v8384_v5  ;;  %2080 = vmatmul.mubr.bf16.gmra.mxu1 %v8924_v8  ;;  %v8388_v8 = vld [vmem:[%s11340_s1 + $0x200] sm:$0xff]  }
  0xd1   : > { %2087 = vmatprep.mubr.bf16.mxu1 %v8969_v24  ;;  %8257 = vmatpush3.bf16.msra.mxu1 %v8383_v42 }
  0xd2   : > { %8250 = vmatprep.subr.bf16.mxu1 %v8384_v5 }
  0xd3   : > { %8090 = vmatpush3.bf16.msra.mxu0 %v8384_v5 }
  0xd4   : > { %8091 = vmatprep.subr.bf16.mxu0 %v8385_v38 }
  0xd5   : > { %8258 = vmatpush3.bf16.msra.mxu1 %v8384_v5 }
  0xd6   : > { %1927 = vmatmul.mubr.bf16.gmra.mxu0 %v8926_v9  ;;  %8251 = vmatprep.subr.bf16.mxu1 %v8385_v38 }
  0xd7   : > { %1934 = vmatprep.mubr.bf16.mxu0 %v9040_v52  ;;  %8092 = vmatpush3.bf16.msra.mxu0 %v8385_v38 }
  0xd8   : > { %8093 = vmatprep.subr.bf16.mxu0 %v8386_v63  ;;  %2088 = vmatmul.mubr.bf16.gmra.mxu1 %v8965_v23 }
  0xd9   : > { %2095 = vmatprep.mubr.bf16.mxu1 %v9004_v39  ;;  %8259 = vmatpush3.bf16.msra.mxu1 %v8385_v38 }
  0xda   : > { %8252 = vmatprep.subr.bf16.mxu1 %v8386_v63 }
  0xdb   : > { %8094 = vmatpush3.bf16.msra.mxu0 %v8386_v63 }
  0xdc   : > { %8095 = vmatprep.subr.bf16.mxu0 %v8387_v56 }
  0xdd   : > { %8260 = vmatpush3.bf16.msra.mxu1 %v8386_v63 }
  0xde   : > { %1935 = vmatmul.mubr.bf16.gmra.mxu0 %v8969_v24  ;;  %8253 = vmatprep.subr.bf16.mxu1 %v8387_v56 }
  0xdf   : > { %1942 = vmatprep.mubr.bf16.mxu0 %v9071_v3  ;;  %8096 = vmatpush3.bf16.msra.mxu0 %v8387_v56 }
  0xe0   : > { %8097 = vmatprep.subr.bf16.mxu0 %v8388_v8  ;;  %2096 = vmatmul.mubr.bf16.gmra.mxu1 %v9000_v37 }
  0xe1   : > { %2103 = vmatprep.mubr.bf16.mxu1 %v9046_v54  ;;  %8261 = vmatpush3.bf16.msra.mxu1 %v8387_v56 }
  0xe2   : > { %8254 = vmatprep.subr.bf16.mxu1 %v8388_v8 }
  0xe3   : > { %8098 = vmatpush3.bf16.msra.mxu0 %v8388_v8 }
  0xe5   : > { %8262 = vmatpush3.bf16.msra.mxu1 %v8388_v8 }
  0xe6   : > { %1943 = vmatmul.mubr.bf16.gmra.mxu0 %v9004_v39 }
  0xe7   : > { %1950 = vmatprep.mubr.bf16.mxu0 %v9106_v29 }
  0xe8   : > { %2104 = vmatmul.mubr.bf16.gmra.mxu1 %v9042_v53 }
  0xe9   : > { %2111 = vmatprep.mubr.bf16.mxu1 %v9081_v11 }
  0xee   : > { %1951 = vmatmul.mubr.bf16.gmra.mxu0 %v9046_v54 }
  0xef   : > { %1958 = vmatprep.mubr.bf16.mxu0 %v9141_v57 }
  0xf0   : > { %2112 = vmatmul.mubr.bf16.gmra.mxu1 %v9077_v6 }
  0xf1   : > { %2119 = vmatprep.mubr.bf16.mxu1 %v9115_v40 }
  0xf6   : > { %1959 = vmatmul.mubr.bf16.gmra.mxu0 %v9081_v11 }
  0xf7   : > { %1966 = vmatprep.mubr.bf16.mxu0 %v9163_v18 }
  0xf8   : > { %2120 = vmatmul.mubr.bf16.gmra.mxu1 %v9111_v31 }
  0xf9   : > { %2127 = vmatprep.mubr.bf16.mxu1 %v9152_v60 }
  0xfe   : > { %1967 = vmatmul.mubr.bf16.gmra.mxu0 %v9115_v40 }
  0xff   : > { %1974 = vmatprep.mubr.bf16.mxu0 %v9175_v7 }
 0x100   : > { %2128 = vmatmul.mubr.bf16.gmra.mxu1 %v9148_v59 }
 0x101   : > { %2135 = vmatprep.mubr.bf16.mxu1 %v9169_v13 }
 0x106   : > { %v6674_v9 = vpop.f32.mrf.mxu0  ;;  %1975 = vmatmul.mubr.bf16.gmra.mxu0 %v9152_v60 }
 0x107   : > { %1982 = vmatprep.mubr.bf16.mxu0 %v9187_v30 }
 0x108   : > { %v6675_v22 = vpop.f32.mrf.mxu0  ;;  %v6786_v52 = vpop.f32.mrf.mxu1  ;;  %2136 = vmatmul.mubr.bf16.gmra.mxu1 %v9165_v19 }
 0x109   : > { %v6676_v23 = vadd.f32 %v6675_v22, %v6674_v9  ;;  %2143 = vmatprep.mubr.bf16.mxu1 %v9181_v32 }
 0x10a   : > { %v6677_v24 = vpop.f32.mrf.mxu0  ;;  %v6787_v3 = vpop.f32.mrf.mxu1 }
 0x10b   : > { %v1591_v54 = vadd.f32 %v6676_v23, %v9307_v34  ;;  %v6788_v11 = vadd.f32 %v6787_v3, %v6786_v52 }
 0x10c   : > { %v6678_v37 = vpop.f32.mrf.mxu0  ;;  %v6789_v31 = vpop.f32.mrf.mxu1 }
 0x10d   : > { %v6679_v39 = vadd.f32 %v6678_v37, %v6677_v24  ;;  %v9314_v45 = vadd.f32 %v6788_v11, %v1591_v54 }
 0x10e   : > { %v6680_v53 = vpop.f32.mrf.mxu0  ;;  %1983 = vmatmul.mubr.bf16.gmra.mxu0 %v9169_v13  ;;  %v6790_v58 = vpop.f32.mrf.mxu1 }
 0x10f   : > { %1990 = vmatprep.mubr.bf16.mxu0 %v9199_v16  ;;  %v1594_v57 = vadd.f32 %v6679_v39, %v9307_v34  ;;  %v6791_v60 = vadd.f32 %v6790_v58, %v6789_v31 }
 0x110   : > { %v6681_v6 = vpop.f32.mrf.mxu0  ;;  %v6792_v19 = vpop.f32.mrf.mxu1  ;;  %2144 = vmatmul.mubr.bf16.gmra.mxu1 %v9177_v10 }
 0x111   : > { %v6682_v29 = vadd.f32 %v6681_v6, %v6680_v53  ;;  %v9319_v7 = vadd.f32 %v6791_v60, %v1594_v57  ;;  %2151 = vmatprep.mubr.bf16.mxu1 %v9193_v35 }
 0x112   : > { %v6683_v40 = vpop.f32.mrf.mxu0  ;;  %v6793_v16 = vpop.f32.mrf.mxu1 }
 0x113   : > { %v1599_v30 = vadd.f32 %v6682_v29, %v9307_v34  ;;  %v6794_v51 = vadd.f32 %v6793_v16, %v6792_v19  ;;  %v731_v19 = vld [vmem:[#allocation2 + $0x2f1] sm:$0xff] }
 0x114   : > { %v6684_v59 = vpop.f32.mrf.mxu0  ;;  %v6795_v61 = vpop.f32.mrf.mxu1 }
 0x115   : > { %v6685_v18 = vadd.f32 %v6684_v59, %v6683_v40  ;;  %v9324_v4 = vadd.f32 %v6794_v51, %v1599_v30 }
 0x116   : > { %v6686_v13 = vpop.f32.mrf.mxu0  ;;  %1991 = vmatmul.mubr.bf16.gmra.mxu0 %v9181_v32  ;;  %v6796_v12 = vpop.f32.mrf.mxu1 }
 0x117   : > { %1998 = vmatprep.mubr.bf16.mxu0 %v9211_v62  ;;  %v1602_v10 = vadd.f32 %v6685_v18, %v9307_v34  ;;  %v6797_v14 = vadd.f32 %v6796_v12, %v6795_v61  ;;  %v730_v18 = vld [vmem:[#allocation2 + $0x2e9] sm:$0xff] }
 0x118   : > { %v6687_v48 = vpop.f32.mrf.mxu0  ;;  %v6798_v33 = vpop.f32.mrf.mxu1  ;;  %2152 = vmatmul.mubr.bf16.gmra.mxu1 %v9189_v41  ;;  %v9357_v51 = vpack.c.bf16 %v731_v19, %v730_v18 }
 0x119   : > { %v6688_v55 = vadd.f32 %v6687_v48, %v6686_v13  ;;  %v9329_v62 = vadd.f32 %v6797_v14, %v1602_v10  ;;  %2159 = vmatprep.mubr.bf16.mxu1 %v9205_v47 }
 0x11a   : > { %v6689_v50 = vpop.f32.mrf.mxu0  ;;  %v6799_v36 = vpop.f32.mrf.mxu1 }
 0x11b   : > { %v1607_v2 = vadd.f32 %v6688_v55, %v9307_v34  ;;  %v6800_v46 = vadd.f32 %v6799_v36, %v6798_v33 }
 0x11c   : > { %v6690_v32 = vpop.f32.mrf.mxu0  ;;  %v6801_v5 = vpop.f32.mrf.mxu1 }
 0x11d   : > { %v6691_v21 = vadd.f32 %v6690_v32, %v6689_v50  ;;  %v9334_v63 = vadd.f32 %v6800_v46, %v1607_v2  ;;  %v798_v2 = vld [vmem:[#allocation2 + $0x131] sm:$0xff] }
 0x11e   : > { %v6692_v1 = vpop.f32.mrf.mxu0  ;;  %1999 = vmatmul.mubr.bf16.gmra.mxu0 %v9193_v35  ;;  %v6802_v56 = vpop.f32.mrf.mxu1 }
 0x11f   : > { %2006 = vmatprep.mubr.bf16.mxu0 %v9223_v15  ;;  %v1610_v41 = vadd.f32 %v6691_v21, %v9307_v34  ;;  %v6803_v8 = vadd.f32 %v6802_v56, %v6801_v5  ;;  %v8541_v5 = vld [vmem:[#allocation2] sm:$0xff] }
 0x120   : > { %v6693_v43 = vpop.f32.mrf.mxu0  ;;  %v6804_v22 = vpop.f32.mrf.mxu1  ;;  %2160 = vmatmul.mubr.bf16.gmra.mxu1 %v9201_v17 }
 0x121   : > { %v6694_v42 = vadd.f32 %v6693_v43, %v6692_v1  ;;  %v9339_v15 = vadd.f32 %v6803_v8, %v1610_v41  ;;  %2167 = vmatprep.mubr.bf16.mxu1 %v9217_v49  ;;  %v797_v1 = vld [vmem:[#allocation2 + $0x129] sm:$0xff] }
 0x122   : > { %v6695_v38 = vpop.f32.mrf.mxu0  ;;  %v6805_v37 = vpop.f32.mrf.mxu1  ;;  %v837_v41 = vpack.c.bf16 %v798_v2, %v797_v1 }
 0x123   : > { %v1615_v24 = vadd.f32 %v6694_v42, %v9307_v34  ;;  %v6806_v52 = vadd.f32 %v6805_v37, %v6804_v22  ;;  %v764_v37 = vld [vmem:[#allocation2 + $0x30f] sm:$0xff] }
 0x124   : > { %v6696_v35 = vpop.f32.mrf.mxu0  ;;  %v6807_v54 = vpop.f32.mrf.mxu1 }
 0x125   : > { %v6697_v9 = vadd.f32 %v6696_v35, %v6695_v38  ;;  %v9344_v6 = vadd.f32 %v6806_v52, %v1615_v24  ;;  %v9369_v38 = vpack.c.bf16 %v8541_v5, %v8541_v5  ;;  %v763_v24 = vld [vmem:[#allocation2 + $0x307] sm:$0xff] }
 0x126   : > { %v6698_v23 = vpop.f32.mrf.mxu0  ;;  %2007 = vmatmul.mubr.bf16.gmra.mxu0 %v9205_v47  ;;  %v6808_v11 = vpop.f32.mrf.mxu1 }
 0x127   : > { %2014 = vmatprep.mubr.bf16.mxu0 %v9231_v26  ;;  %v1618_v17 = vadd.f32 %v6697_v9, %v9307_v34  ;;  %v6809_v29 = vadd.f32 %v6808_v11, %v6807_v54  ;;  %v799_v54 = vld [vmem:[#allocation2 + $0x149] sm:$0xff] }
 0x128   : > { %v6699_v39 = vpop.f32.mrf.mxu0  ;;  %v6810_v40 = vpop.f32.mrf.mxu1  ;;  %2168 = vmatmul.mubr.bf16.gmra.mxu1 %v9213_v0 }
 0x129   : > { %v6700_v53 = vadd.f32 %v6699_v39, %v6698_v23  ;;  %v9349_v26 = vadd.f32 %v6809_v29, %v1618_v17  ;;  %2175 = vmatprep.mubr.bf16.mxu1 %v9091_v25  ;;  %v801_v29 = vld [vmem:[#allocation2 + $0x169] sm:$0xff] }
 0x12a   : > { %v6701_v3 = vpop.f32.mrf.mxu0  ;;  %v6811_v59 = vpop.f32.mrf.mxu1 }
 0x12b   : > { %v1623_v58 = vadd.f32 %v6700_v53, %v9307_v34  ;;  %v6812_v13 = vadd.f32 %v6811_v59, %v6810_v40  ;;  %v813_v53 = vld [vmem:[#allocation2 + $0x229] sm:$0xff] }
 0x12c   : > { %v6702_v47 = vpop.f32.mrf.mxu0  ;;  %v6813_v16 = vpop.f32.mrf.mxu1 }
 0x12d   : > { %v6703_v31 = vadd.f32 %v6702_v47, %v6701_v3  ;;  %v9354_v0 = vadd.f32 %v6812_v13, %v1623_v58  ;;  %v800_v3 = vld [vmem:[#allocation2 + $0x151] sm:$0xff] }
 0x12e   : > { %v6704_v57 = vpop.f32.mrf.mxu0  ;;  %2015 = vmatmul.mubr.bf16.gmra.mxu0 %v9217_v49  ;;  %v6814_v55 = vpop.f32.mrf.mxu1  ;;  %v814_v47 = vld [vmem:[#allocation2 + $0x231] sm:$0xff]  ;;  %v846_v59 = vpack.c.bf16 %v800_v3, %v799_v54  ;;  %v819_v3 = vld [vmem:[#allocation2 + $0x289] sm:$0xff] }
 0x12f   : > { %2022 = vmatprep.mubr.bf16.mxu0 %v9243_v44  ;;  %v1626_v49 = vadd.f32 %v6703_v31, %v9307_v34  ;;  %v6815_v50 = vadd.f32 %v6814_v55, %v6813_v16  ;;  %v909_v19 = vpack.c.bf16 %v814_v47, %v813_v53 }
 0x130   : > { %v6705_v60 = vpop.f32.mrf.mxu0  ;;  %v6816_v12 = vpop.f32.mrf.mxu1  ;;  %2176 = vmatmul.mubr.bf16.gmra.mxu1 %v9225_v20 }
 0x131   : > { %v6706_v30 = vadd.f32 %v6705_v60, %v6704_v57  ;;  %v9361_v32 = vadd.f32 %v6815_v50, %v1626_v49  ;;  %2183 = vmatprep.mubr.bf16.mxu1 %v9237_v28  ;;  %v970_v57 = vpack.c.bf16 %v764_v37, %v763_v24  ;;  %v815_v50 = vld [vmem:[#allocation2 + $0x249] sm:$0xff] }
 0x132   : > { %v6707_v48 = vpop.f32.mrf.mxu0  ;;  %v6817_v21 = vpop.f32.mrf.mxu1 }
 0x133   : > { %v1631_v14 = vadd.f32 %v6706_v30, %v9307_v34  ;;  %v6818_v36 = vadd.f32 %v6817_v21, %v6816_v12  ;;  %v803_v21 = vld [vmem:[#allocation2 + $0x189] sm:$0xff] }
 0x134   : > { %v6708_v61 = vpop.f32.mrf.mxu0  ;;  %v6819_v46 = vpop.f32.mrf.mxu1 }
 0x135   : > { %v6709_v10 = vadd.f32 %v6708_v61, %v6707_v48  ;;  %v9366_v20 = vadd.f32 %v6818_v36, %v1631_v14  ;;  %v817_v14 = vld [vmem:[#allocation2 + $0x269] sm:$0xff]  ;;  %v818_v36 = vld [vmem:[#allocation2 + $0x271] sm:$0xff] }
 0x136   : > { %v6710_v44 = vpop.f32.mrf.mxu0  ;;  %2023 = vmatmul.mubr.bf16.gmra.mxu0 %v9091_v25  ;;  %v6820_v56 = vpop.f32.mrf.mxu1 }
 0x137   : > { %2030 = vmatprep.mubr.bf16.mxu0 %v9357_v51  ;;  %v1634_v25 = vadd.f32 %v6709_v10, %v9307_v34  ;;  %v6821_v8 = vadd.f32 %v6820_v56, %v6819_v46  ;;  %v816_v10 = vld [vmem:[#allocation2 + $0x251] sm:$0xff] }
 0x138   : > { %v6711_v33 = vpop.f32.mrf.mxu0  ;;  %v6822_v22 = vpop.f32.mrf.mxu1  ;;  %2184 = vmatmul.mubr.bf16.gmra.mxu1 %v9233_v27  ;;  %v802_v27 = vld [vmem:[#allocation2 + $0x171] sm:$0xff] }
 0x139   : > { %v6712_v43 = vadd.f32 %v6711_v33, %v6710_v44  ;;  %v9373_v39 = vadd.f32 %v6821_v8, %v1634_v25  ;;  %2191 = vmatprep.mubr.bf16.mxu1 %v9369_v38  ;;  %v855_v13 = vpack.c.bf16 %v802_v27, %v801_v29  ;;  %v804_v33 = vld [vmem:[#allocation2 + $0x191] sm:$0xff]  ;;  %v821_v27 = vld [vmem:[#allocation2 + $0x2a9] sm:$0xff] }
 0x13a   : > { %v6713_v42 = vpop.f32.mrf.mxu0  ;;  %v6823_v17 = vpop.f32.mrf.mxu1  ;;  %v806_v46 = vld [vmem:[#allocation2 + $0x1b1] sm:$0xff] }
 0x13b   : > { %v1639_v52 = vadd.f32 %v6712_v43, %v9307_v34  ;;  %v6824_v31 = vadd.f32 %v6823_v17, %v6822_v22  ;;  %v805_v43 = vld [vmem:[#allocation2 + $0x1a9] sm:$0xff]  ;;  %v927_v22 = vpack.c.bf16 %v818_v36, %v817_v14  ;;  %v820_v17 = vld [vmem:[#allocation2 + $0x291] sm:$0xff] }
 0x13c   : > { %v6714_v35 = vpop.f32.mrf.mxu0 }
 0x13d   : > { %v6715_v9 = vadd.f32 %v6714_v35, %v6713_v42  ;;  %v9377_v60 = vadd.f32 %v6824_v31, %v1639_v52  ;;  %v864_v35 = vpack.c.bf16 %v804_v33, %v803_v21  ;;  %v807_v31 = vld [vmem:[#allocation2 + $0x1c9] sm:$0xff] }
 0x13e   : > { %v6716_v23 = vpop.f32.mrf.mxu0  ;;  %2031 = vmatmul.mubr.bf16.gmra.mxu0 %v9237_v28  ;;  %v6825_v28 = vpop.f32.mrf.mxu1 }
 0x13f   : > { %8099 = vmatprep.mubr.bf16.mxu0 %v837_v41  ;;  %v1642_v18 = vadd.f32 %v6715_v9, %v9307_v34  ;;  %v918_v41 = vpack.c.bf16 %v816_v10, %v815_v50 }
 0x140   : > { %v6717_v11 = vpop.f32.mrf.mxu0  ;;  %v6826_v30 = vpop.f32.mrf.mxu1  ;;  %2192 = vmatmul.mubr.bf16.gmra.mxu1 %v970_v57 }
 0x141   : > { %v6718_v40 = vadd.f32 %v6717_v11, %v6716_v23  ;;  %v6827_v48 = vadd.f32 %v6826_v30, %v6825_v28  ;;  %8115 = vmatprep.mubr.bf16.mxu1 %v909_v19  ;;  %v873_v23 = vpack.c.bf16 %v806_v46, %v805_v43 }
 0x142   : > { %v6719_v58 = vpop.f32.mrf.mxu0  ;;  %v6828_v55 = vpop.f32.mrf.mxu1 }
 0x143   : > { %v9380_v12 = vadd.f32 %v6827_v48, %v1642_v18  ;;  %v1647_v44 = vadd.f32 %v6718_v40, %v9307_v34  ;;  %v808_v40 = vld [vmem:[#allocation2 + $0x1d1] sm:$0xff] }
 0x144   : > { %v6720_v16 = vpop.f32.mrf.mxu0  ;;  %v6829_v1 = vpop.f32.mrf.mxu1  ;;  %v810_v18 = vld [vmem:[#allocation2 + $0x1f1] sm:$0xff] }
 0x145   : > { %v6721_v49 = vadd.f32 %v6720_v16, %v6719_v58  ;;  %v6830_v42 = vadd.f32 %v6829_v1, %v6828_v55  ;;  %v822_v58 = vld [vmem:[#allocation2 + $0x2b1] sm:$0xff]  ;;  %v936_v16 = vpack.c.bf16 %v820_v17, %v819_v3 }
 0x146   : > { %v6722_v61 = vpop.f32.mrf.mxu0  ;;  %8100 = vmatmul.mubr.bf16.vlgmr.msra.gmra.mxu0 %v846_v59  ;;  %v6831_v5 = vpop.f32.mrf.mxu1  ;;  %v809_v59 = vld [vmem:[#allocation2 + $0x1e9] sm:$0xff]  ;;  %v945_v50 = vpack.c.bf16 %v822_v58, %v821_v27 }
 0x147   : > { %8103 = vmatprep.mubr.bf16.mxu0 %v855_v13  ;;  %v9383_v8 = vadd.f32 %v6830_v42, %v1647_v44  ;;  %v1650_v9 = vadd.f32 %v6721_v49, %v9307_v34  ;;  %v882_v49 = vpack.c.bf16 %v808_v40, %v807_v31  ;;  %v891_v10 = vpack.c.bf16 %v810_v18, %v809_v59  ;;  %v824_v42 = vld [vmem:[#allocation2 + $0x2d1] sm:$0xff] }
 0x148   : > { %v6723_v2 = vpop.f32.mrf.mxu0  ;;  %v6832_v24 = vpop.f32.mrf.mxu1  ;;  %8116 = vmatmul.mubr.bf16.vlgmr.msra.gmra.mxu1 %v918_v41 }
 0x149   : > { %v6724_v25 = vadd.f32 %v6723_v2, %v6722_v61  ;;  %v6833_v52 = vadd.f32 %v6832_v24, %v6831_v5  ;;  %8119 = vmatprep.mubr.bf16.mxu1 %v927_v22  ;;  %v823_v2 = vld [vmem:[#allocation2 + $0x2c9] sm:$0xff]  ;;  %v812_v5 = vld [vmem:[#allocation2 + $0x211] sm:$0xff] }
 0x14a   : > { %v6725_v56 = vpop.f32.mrf.mxu0  ;;  %v6834_v53 = vpop.f32.mrf.mxu1 }
 0x14b   : > { %v9386_v11 = vadd.f32 %v6833_v52, %v1650_v9  ;;  %v1655_v47 = vadd.f32 %v6724_v25, %v9307_v34  ;;  %v811_v25 = vld [vmem:[#allocation2 + $0x209] sm:$0xff] }
 0x14c   : > { %v6726_v37 = vpop.f32.mrf.mxu0  ;;  %v6835_v28 = vpop.f32.mrf.mxu1 }
 0x14d   : > { %v6727_v29 = vadd.f32 %v6726_v37, %v6725_v56  ;;  %v6836_v19 = vadd.f32 %v6835_v28, %v6834_v53  ;;  %v900_v37 = vpack.c.bf16 %v812_v5, %v811_v25  ;;  %v827_v28 = vld [vmem:[#allocation2 + $0x309] sm:$0xff] }
 0x14e   : > { %v6728_v54 = vpop.f32.mrf.mxu0  ;;  %8104 = vmatmul.mubr.bf16.gmra.mxu0 %v864_v35  ;;  %v6837_v30 = vpop.f32.mrf.mxu1 }
 0x14f   : > { %8107 = vmatprep.mubr.bf16.mxu0 %v873_v23  ;;  %v9389_v55 = vadd.f32 %v6836_v19, %v1655_v47  ;;  %v1658_v61 = vadd.f32 %v6727_v29, %v9307_v34  ;;  %v954_v23 = vpack.c.bf16 %v824_v42, %v823_v2 }
 0x150   : > { %v6729_v57 = vpop.f32.mrf.mxu0  ;;  %v6838_v44 = vpop.f32.mrf.mxu1  ;;  %8120 = vmatmul.mubr.bf16.gmra.mxu1 %v936_v16 }
 0x151   : > { %v6730_v13 = vadd.f32 %v6729_v57, %v6728_v54  ;;  %v6839_v21 = vadd.f32 %v6838_v44, %v6837_v30  ;;  %8123 = vmatprep.mubr.bf16.mxu1 %v945_v50  ;;  %v828_v57 = vld [vmem:[#allocation2 + $0x311] sm:$0xff] }
 0x152   : > { %v6731_v48 = vpop.f32.mrf.mxu0  ;;  %v6840_v33 = vpop.f32.mrf.mxu1  ;;  %v972_v30 = vpack.c.bf16 %v828_v57, %v827_v28  ;;  %v8389_v57 = vld [vmem:[%s11342_s3 + $0x78] sm:$0xff]  }
 0x153   : > { %v9392_v36 = vadd.f32 %v6839_v21, %v1658_v61  ;;  %v1663_v43 = vadd.f32 %v6730_v13, %v9307_v34  ;;  %7130 = vmatprep.subr.bf16.mxu1 %v8389_v57 }
 0x154   : > { %v6732_v14 = vpop.f32.mrf.mxu0  ;;  %v6841_v41 = vpop.f32.mrf.mxu1 }
 0x155   : > { %v6733_v46 = vadd.f32 %v6732_v14, %v6731_v48  ;;  %v6842_v35 = vadd.f32 %v6841_v41, %v6840_v33 }
 0x156   : > { %v6734_v1 = vpop.f32.mrf.mxu0  ;;  %8108 = vmatmul.mubr.bf16.gmra.mxu0 %v882_v49  ;;  %v6843_v22 = vpop.f32.mrf.mxu1 }
 0x157   : > { %8111 = vmatprep.mubr.bf16.mxu0 %v891_v10  ;;  %v9395_v52 = vadd.f32 %v6842_v35, %v1663_v43  ;;  %v1666_v53 = vadd.f32 %v6733_v46, %v9307_v34 }
 0x158   : > { %v6735_v56 = vpop.f32.mrf.mxu0  ;;  %v6844_v54 = vpop.f32.mrf.mxu1  ;;  %8124 = vmatmul.mubr.bf16.gmra.mxu1 %v954_v23 }
 0x159   : > { %v6736_v9 = vadd.f32 %v6735_v56, %v6734_v1  ;;  %v6845_v17 = vadd.f32 %v6844_v54, %v6843_v22  ;;  %8127 = vmatprep.mubr.bf16.mxu1 %v9357_v51 }
 0x15a   : > { %v6737_v24 = vpop.f32.mrf.mxu0  ;;  %v6846_v47 = vpop.f32.mrf.mxu1 }
 0x15b   : > { %v9398_v27 = vadd.f32 %v6845_v17, %v1666_v53  ;;  %v1671_v31 = vadd.f32 %v6736_v9, %v9307_v34 }
 0x15c   : > { %v6738_v3 = vpop.f32.mrf.mxu0  ;;  %v6847_v58 = vpop.f32.mrf.mxu1 }
 0x15d   : > { %v6739_v40 = vadd.f32 %v6738_v3, %v6737_v24  ;;  %v6848_v18 = vadd.f32 %v6847_v58, %v6846_v47 }
 0x15e   : > { %v6740_v29 = vpop.f32.mrf.mxu0  ;;  %8112 = vmatmul.mubr.bf16.gmra.mxu0 %v900_v37  ;;  %v6849_v13 = vpop.f32.mrf.mxu1 }
 0x15f   : > { %v9402_v48 = vadd.f32 %v6848_v18, %v1671_v31  ;;  %v1674_v49 = vadd.f32 %v6739_v40, %v9307_v34  ;;  %v8390_v18 = vld [vmem:[%s11342_s3 + $0x38] sm:$0xff]  }
 0x160   : > { %v6741_v59 = vpop.f32.mrf.mxu0  ;;  %v6850_v61 = vpop.f32.mrf.mxu1  ;;  %8128 = vmatmul.mubr.bf16.gmra.mxu1 %v972_v30 }
 0x161   : > { %v6742_v19 = vadd.f32 %v6741_v59, %v6740_v29  ;;  %v6851_v10 = vadd.f32 %v6850_v61, %v6849_v13  ;;  %7131 = vmatpush3.bf16.msra.mxu1 %v8390_v18  ;;  %3472 = vmatprep.mubr.bf16.mxu1 %v9369_v38 }
 0x162   : > { %v6743_v16 = vpop.f32.mrf.mxu0  ;;  %v6852_v44 = vpop.f32.mrf.mxu1 }
 0x163   : > { %v9405_v51 = vadd.f32 %v6851_v10, %v1674_v49  ;;  %v1679_v21 = vadd.f32 %v6742_v19, %v9307_v34 }
 0x164   : > { %v6744_v50 = vpop.f32.mrf.mxu0  ;;  %v6853_v1 = vpop.f32.mrf.mxu1 }
 0x165   : > { %v6745_v33 = vadd.f32 %v6744_v50, %v6743_v16  ;;  %v6854_v43 = vadd.f32 %v6853_v1, %v6852_v44  ;;  %v8391_v50 = vld [vmem:[%s11342_s3 + $0x70] sm:$0xff]  }
 0x166   : > { %v6746_v14 = vpop.f32.mrf.mxu0  ;;  %v6855_v42 = vpop.f32.mrf.mxu1  ;;  %7132 = vmatprep.subr.bf16.mxu1 %v8391_v50 }
 0x167   : > { %v9408_v5 = vadd.f32 %v6854_v43, %v1679_v21  ;;  %v1682_v41 = vadd.f32 %v6745_v33, %v9307_v34 }
 0x168   : > { %v6747_v2 = vpop.f32.mrf.mxu0  ;;  %v6856_v56 = vpop.f32.mrf.mxu1 }
 0x169   : > { %v6748_v46 = vadd.f32 %v6747_v2, %v6746_v14  ;;  %v6857_v9 = vadd.f32 %v6856_v56, %v6855_v42  ;;  %v8392_v14 = vld [vmem:[%s11342_s3 + $0x30] sm:$0xff]   ;;  %v8393_v42 = vld [vmem:[%s11342_s3 + $0x68] sm:$0xff]  }
 0x16a   : > { %v6749_v25 = vpop.f32.mrf.mxu0  ;;  %v6858_v22 = vpop.f32.mrf.mxu1  ;;  %7133 = vmatpush3.bf16.msra.mxu1 %v8392_v14  ;;  %v8394_v56 = vld [vmem:[%s11342_s3 + $0x28] sm:$0xff]   ;;  %v8401_v14 = vld [vmem:[%s11342_s3 + $0xf0] sm:$0xff]  }
 0x16b   : > { %v9411_v24 = vadd.f32 %v6857_v9, %v1682_v41  ;;  %v1687_v37 = vadd.f32 %v6748_v46, %v9307_v34  ;;  %7134 = vmatprep.subr.bf16.mxu1 %v8393_v42 }
 0x16c   : > { %v6750_v35 = vpop.f32.mrf.mxu0  ;;  %v6859_v54 = vpop.f32.mrf.mxu1 }
 0x16d   : > { %v6751_v53 = vadd.f32 %v6750_v35, %v6749_v25  ;;  %v6860_v17 = vadd.f32 %v6859_v54, %v6858_v22  ;;  %v8395_v54 = vld [vmem:[%s11342_s3 + $0x60] sm:$0xff]  }
 0x16e   : > { %v6752_v23 = vpop.f32.mrf.mxu0  ;;  %v6861_v29 = vpop.f32.mrf.mxu1  ;;  %7135 = vmatpush3.bf16.msra.mxu1 %v8394_v56 }
 0x16f   : > { %v9414_v40 = vadd.f32 %v6860_v17, %v1687_v37  ;;  %v1690_v28 = vadd.f32 %v6751_v53, %v9307_v34  ;;  %7136 = vmatprep.subr.bf16.mxu1 %v8395_v54 }
 0x170   : > { %v6753_v3 = vpop.f32.mrf.mxu0  ;;  %v6862_v58 = vpop.f32.mrf.mxu1 }
 0x171   : > { %v6754_v47 = vadd.f32 %v6753_v3, %v6752_v23  ;;  %v6863_v19 = vadd.f32 %v6862_v58, %v6861_v29  ;;  %v8397_v58 = vld [vmem:[%s11342_s3 + $0xf8] sm:$0xff]  }
 0x172   : > { %v6755_v31 = vpop.f32.mrf.mxu0  ;;  %v6864_v13 = vpop.f32.mrf.mxu1  ;;  %7242 = vmatprep.subr.bf16.mxu0 %v8397_v58 }
 0x173   : > { %v9423_v16 = vadd.f32 %v6863_v19, %v1690_v28  ;;  %v1695_v49 = vadd.f32 %v6754_v47, %v9307_v34  ;;  %v8396_v47 = vld [vmem:[%s11342_s3 + $0x20] sm:$0xff]   ;;  %v8398_v19 = vld [vmem:[%s11342_s3 + $0xb8] sm:$0xff]  }
 0x174   : > { %v6756_v59 = vpop.f32.mrf.mxu0  ;;  %v6865_v10 = vpop.f32.mrf.mxu1  ;;  %7137 = vmatpush3.bf16.msra.mxu1 %v8396_v47  ;;  %7243 = vmatpush3.bf16.msra.mxu0 %v8398_v19  ;;  %v8407_v47 = vld [vmem:[%s11342_s3 + $0x48] sm:$0xff]  }
 0x175   : > { %v6757_v61 = vadd.f32 %v6756_v59, %v6755_v31  ;;  %v6866_v21 = vadd.f32 %v6865_v10, %v6864_v13  ;;  %v8399_v13 = vld [vmem:[%s11342_s3 + $0x58] sm:$0xff]   ;;  %7244 = vmatprep.subr.bf16.mxu0 %v8401_v14 }
 0x176   : > { %v6758_v30 = vpop.f32.mrf.mxu0  ;;  %v6867_v1 = vpop.f32.mrf.mxu1  ;;  %7138 = vmatprep.subr.bf16.mxu1 %v8399_v13 }
 0x177   : > { %v9432_v43 = vadd.f32 %v6866_v21, %v1695_v49  ;;  %v1698_v46 = vadd.f32 %v6757_v61, %v9307_v34  ;;  %v8400_v61 = vld [vmem:[%s11342_s3 + $0x18] sm:$0xff]  }
 0x178   : > { %v6759_v44 = vpop.f32.mrf.mxu0  ;;  %v6868_v25 = vpop.f32.mrf.mxu1  ;;  %7139 = vmatpush3.bf16.msra.mxu1 %v8400_v61 }
 0x179   : > { %v6760_v33 = vadd.f32 %v6759_v44, %v6758_v30  ;;  %11386 = vst [vmem:[#allocation9_spill] sm:$0xff] %v9432_v43  ;;  %v6869_v35 = vadd.f32 %v6868_v25, %v6867_v1 }
 0x17a   : > { %v6761_v2 = vpop.f32.mrf.mxu0  ;;  %v6870_v9 = vpop.f32.mrf.mxu1 }
 0x17b   : > { %v9441_v23 = vadd.f32 %v6869_v35, %v1698_v46  ;;  %v1703_v37 = vadd.f32 %v6760_v33, %v9307_v34  ;;  %v8403_v46 = vld [vmem:[%s11342_s3 + $0x50] sm:$0xff]  }
 0x17c   : > { %v6762_v41 = vpop.f32.mrf.mxu0  ;;  %v6871_v3 = vpop.f32.mrf.mxu1  ;;  %7140 = vmatprep.subr.bf16.mxu1 %v8403_v46  ;;  %v2426_v46 = vld [vmem:[#allocation2 + $0xef] sm:$0xff] }
 0x17d   : > { %11387 = vst [vmem:[#allocation10_spill] sm:$0xff] %v9441_v23  ;;  %v6763_v53 = vadd.f32 %v6762_v41, %v6761_v2  ;;  %v6872_v29 = vadd.f32 %v6871_v3, %v6870_v9  ;;  %v8402_v2 = vld [vmem:[%s11342_s3 + $0xb0] sm:$0xff]   ;;  %v8434_v23 = vld [vmem:[%s11342_s3 + $0x108] sm:$0xff]  }
 0x17e   : > { %v6764_v22 = vpop.f32.mrf.mxu0  ;;  %v6873_v28 = vpop.f32.mrf.mxu1  ;;  %v8404_v41 = vld [vmem:[%s11342_s3 + $0x10] sm:$0xff]   ;;  %7245 = vmatpush3.bf16.msra.mxu0 %v8402_v2  ;;  %v2425_v2 = vld [vmem:[#allocation2 + $0xe7] sm:$0xff] }
 0x17f   : > { %v9453_v59 = vadd.f32 %v6872_v29, %v1703_v37  ;;  %v1706_v18 = vadd.f32 %v6763_v53, %v9307_v34  ;;  %7141 = vmatpush3.bf16.msra.mxu1 %v8404_v41  ;;  %v8405_v37 = vld [vmem:[%s11342_s3 + $0xe8] sm:$0xff]   ;;  %v8414_v41 = vld [vmem:[%s11342_s3 + $0x98] sm:$0xff]  }
 0x180   : > { %v6765_v17 = vpop.f32.mrf.mxu0  ;;  %v6874_v30 = vpop.f32.mrf.mxu1  ;;  %7246 = vmatprep.subr.bf16.mxu0 %v8405_v37  ;;  %7142 = vmatprep.subr.bf16.mxu1 %v8407_v47 }
 0x181   : > { %v6766_v31 = vadd.f32 %v6765_v17, %v6764_v22  ;;  %11388 = vst [vmem:[#allocation11_spill] sm:$0xff] %v9453_v59  ;;  %v6875_v50 = vadd.f32 %v6874_v30, %v6873_v28  ;;  %v8406_v17 = vld [vmem:[%s11342_s3 + $0xa8] sm:$0xff]   ;;  %v8410_v30 = vld [vmem:[%s11342_s3 + $0xa0] sm:$0xff]  }
 0x182   : > { %v6767_v57 = vpop.f32.mrf.mxu0  ;;  %v6876_v10 = vpop.f32.mrf.mxu1  ;;  %v8408_v28 = vld [vmem:[%s11342_s3 + $0x8] sm:$0xff]   ;;  %7247 = vmatpush3.bf16.msra.mxu0 %v8406_v17 }
 0x183   : > { %v9468_v21 = vadd.f32 %v6875_v50, %v1706_v18  ;;  %v1711_v33 = vadd.f32 %v6766_v31, %v9307_v34  ;;  %7143 = vmatpush3.bf16.msra.mxu1 %v8408_v28  ;;  %v8409_v18 = vld [vmem:[%s11342_s3 + $0xe0] sm:$0xff]  }
 0x184   : > { %v6768_v49 = vpop.f32.mrf.mxu0  ;;  %v6877_v42 = vpop.f32.mrf.mxu1  ;;  %7248 = vmatprep.subr.bf16.mxu0 %v8409_v18 }
 0x185   : > { %11389 = vst [vmem:[#allocation12_spill] sm:$0xff] %v9468_v21  ;;  %v6769_v1 = vadd.f32 %v6768_v49, %v6767_v57  ;;  %v6878_v56 = vadd.f32 %v6877_v42, %v6876_v10  ;;  %v8411_v49 = vld [vmem:[%s11342_s3 + $0x40] sm:$0xff]  }
 0x186   : > { %v6898_v44 = vpop.f32.mrf.mxu0  ;;  %v6879_v9 = vpop.f32.mrf.mxu1  ;;  %v8412_v10 = vld [vmem:[%s11342_s3] sm:$0xff]   ;;  %7249 = vmatpush3.bf16.msra.mxu0 %v8410_v30  ;;  %7144 = vmatprep.subr.bf16.mxu1 %v8411_v49 }
 0x187   : > { %v9483_v53 = vadd.f32 %v6878_v56, %v1711_v33  ;;  %v1714_v54 = vadd.f32 %v6769_v1, %v9307_v34  ;;  %7145 = vmatpush3.bf16.msra.mxu1 %v8412_v10  ;;  %v8413_v1 = vld [vmem:[%s11342_s3 + $0xd8] sm:$0xff]   ;;  %v2713_v56 = vpack.c.bf16 %v2426_v46, %v2425_v2 }
 0x188   : > { %v6899_v25 = vpop.f32.mrf.mxu0  ;;  %v6880_v29 = vpop.f32.mrf.mxu1  ;;  %7250 = vmatprep.subr.bf16.mxu0 %v8413_v1 }
 0x189   : > { %v6900_v35 = vadd.f32 %v6899_v25, %v6898_v44  ;;  %11390 = vst [vmem:[#allocation13_spill] sm:$0xff] %v9483_v53  ;;  %v6881_v57 = vadd.f32 %v6880_v29, %v6879_v9  ;;  %v8416_v29 = vld [vmem:[%s11342_s3 + $0x90] sm:$0xff]  }
 0x18a   : > { %v6901_v22 = vpop.f32.mrf.mxu0  ;;  %v7010_v34 = vpop.f32.mrf.mxu1  ;;  %7251 = vmatpush3.bf16.msra.mxu0 %v8414_v41  ;;  %3473 = vmatmul.mubr.bf16.vlgmr.msra.gmra.mxu1 %v2713_v56  ;;  %v8418_v41 = vld [vmem:[%s11342_s3 + $0x178] sm:$0xff]  }
 0x18b   : > { %v1913_v3 = vadd.f32 %v6900_v35, %v9314_v45  ;;  %v9499_v19 = vadd.f32 %v6881_v57, %v1714_v54  ;;  %v8420_v56 = vld [vmem:[%s11342_s3 + $0x138] sm:$0xff]   ;;  %7354 = vmatprep.subr.bf16.mxu1 %v8418_v41 }
 0x18c   : > { %v6902_v31 = vpop.f32.mrf.mxu0  ;;  %v7011_v61 = vpop.f32.mrf.mxu1  ;;  %7355 = vmatpush3.bf16.msra.mxu1 %v8420_v56 }
 0x18d   : > { %v6903_v58 = vadd.f32 %v6902_v31, %v6901_v22  ;;  %11391 = vst [vmem:[#allocation14_spill] sm:$0xff] %v9499_v19  ;;  %v7012_v44 = vadd.f32 %v7011_v61, %v7010_v34 }
 0x18e   : > { %v6904_v45 = vpop.f32.mrf.mxu0 }
 0x18f   : > { %v1916_v13 = vadd.f32 %v6903_v58, %v9319_v7  ;;  %v7013_v7 = vpop.f32.mrf.mxu1  ;;  %v9515_v25 = vadd.f32 %v7012_v44, %v1913_v3 }
 0x190   : > { %v6905_v50 = vpop.f32.mrf.mxu0 }
 0x191   : > { %v6906_v14 = vadd.f32 %v6905_v50, %v6904_v45  ;;  %v7014_v35 = vpop.f32.mrf.mxu1  ;;  %v8417_v45 = vld [vmem:[%s11342_s3 + $0xc8] sm:$0xff]  }
 0x192   : > { %v6907_v33 = vpop.f32.mrf.mxu0  ;;  %v7015_v22 = vadd.f32 %v7014_v35, %v7013_v7 }
 0x193   : > { %v1921_v42 = vadd.f32 %v6906_v14, %v9324_v4  ;;  %v7016_v54 = vpop.f32.mrf.mxu1  ;;  %v8415_v4 = vld [vmem:[%s11342_s3 + $0xd0] sm:$0xff]   ;;  %v8421_v14 = vld [vmem:[%s11342_s3 + $0xc0] sm:$0xff]  }
 0x194   : > { %v6908_v9 = vpop.f32.mrf.mxu0  ;;  %v9525_v47 = vadd.f32 %v7015_v22, %v1916_v13  ;;  %7252 = vmatprep.subr.bf16.mxu0 %v8415_v4  ;;  %v8419_v13 = vld [vmem:[%s11342_s3 + $0x88] sm:$0xff]  }
 0x195   : > { %v6909_v37 = vadd.f32 %v6908_v9, %v6907_v33  ;;  %v7017_v31 = vpop.f32.mrf.mxu1  ;;  %7253 = vmatpush3.bf16.msra.mxu0 %v8416_v29  ;;  %v8422_v33 = vld [vmem:[%s11342_s3 + $0x80] sm:$0xff]  }
 0x196   : > { %v6910_v17 = vpop.f32.mrf.mxu0  ;;  %v7018_v28 = vadd.f32 %v7017_v31, %v7016_v54  ;;  %7254 = vmatprep.subr.bf16.mxu0 %v8417_v45 }
 0x197   : > { %v1924_v3 = vadd.f32 %v6909_v37, %v9329_v62  ;;  %v7019_v58 = vpop.f32.mrf.mxu1 }
 0x198   : > { %v6911_v38 = vpop.f32.mrf.mxu0  ;;  %v9534_v18 = vadd.f32 %v7018_v28, %v1921_v42 }
 0x199   : > { %v6912_v57 = vadd.f32 %v6911_v38, %v6910_v17  ;;  %v7020_v30 = vpop.f32.mrf.mxu1  ;;  %7255 = vmatpush3.bf16.msra.mxu0 %v8419_v13 }
 0x19a   : > { %v6913_v34 = vpop.f32.mrf.mxu0  ;;  %v7021_v61 = vadd.f32 %v7020_v30, %v7019_v58  ;;  %7256 = vmatprep.subr.bf16.mxu0 %v8421_v14 }
 0x19b   : > { %v1929_v62 = vadd.f32 %v6912_v57, %v9334_v63  ;;  %v7022_v10 = vpop.f32.mrf.mxu1 }
 0x19c   : > { %v6914_v49 = vpop.f32.mrf.mxu0  ;;  %v9543_v7 = vadd.f32 %v7021_v61, %v1924_v3 }
 0x19d   : > { %v6915_v50 = vadd.f32 %v6914_v49, %v6913_v34  ;;  %v7023_v1 = vpop.f32.mrf.mxu1  ;;  %7257 = vmatpush3.bf16.msra.mxu0 %v8422_v33 }
 0x19e   : > { %v6916_v44 = vpop.f32.mrf.mxu0  ;;  %v7024_v46 = vadd.f32 %v7023_v1, %v7022_v10 }
 0x19f   : > { %v1932_v63 = vadd.f32 %v6915_v50, %v9339_v15  ;;  %v7025_v15 = vpop.f32.mrf.mxu1 }
 0x1a0   : > { %v6917_v2 = vpop.f32.mrf.mxu0  ;;  %v9555_v22 = vadd.f32 %v7024_v46, %v1929_v62  ;;  %v8424_v46 = vld [vmem:[%s11342_s3 + $0x130] sm:$0xff]  }
 0x1a1   : > { %v6918_v42 = vadd.f32 %v6917_v2, %v6916_v44  ;;  %v7026_v37 = vpop.f32.mrf.mxu1 }
 0x1a2   : > { %v6919_v35 = vpop.f32.mrf.mxu0  ;;  %v7027_v17 = vadd.f32 %v7026_v37, %v7025_v15 }
 0x1a3   : > { %v1937_v9 = vadd.f32 %v6918_v42, %v9344_v6  ;;  %v7028_v3 = vpop.f32.mrf.mxu1 }
 0x1a4   : > { %v6920_v54 = vpop.f32.mrf.mxu0  ;;  %v9558_v38 = vadd.f32 %v7027_v17, %v1932_v63 }
 0x1a5   : > { %v6921_v4 = vadd.f32 %v6920_v54, %v6919_v35  ;;  %v7029_v28 = vpop.f32.mrf.mxu1  ;;  %v8425_v54 = vld [vmem:[%s11342_s3 + $0x168] sm:$0xff]  }
 0x1a6   : > { %v6922_v29 = vpop.f32.mrf.mxu0  ;;  %v7030_v58 = vadd.f32 %v7029_v28, %v7028_v3  ;;  %v8426_v3 = vld [vmem:[%s11342_s3 + $0x128] sm:$0xff]  }
 0x1a7   : > { %v1940_v31 = vadd.f32 %v6921_v4, %v9349_v26  ;;  %v7031_v45 = vpop.f32.mrf.mxu1 }
 0x1a8   : > { %v6923_v57 = vpop.f32.mrf.mxu0  ;;  %v9561_v13 = vadd.f32 %v7030_v58, %v1937_v9 }
 0x1a9   : > { %v6924_v34 = vadd.f32 %v6923_v57, %v6922_v29  ;;  %v7032_v30 = vpop.f32.mrf.mxu1 }
 0x1aa   : > { %v6925_v6 = vpop.f32.mrf.mxu0  ;;  %v7033_v61 = vadd.f32 %v7032_v30, %v7031_v45 }
 0x1ab   : > { %v1945_v62 = vadd.f32 %v6924_v34, %v9354_v0  ;;  %v7034_v10 = vpop.f32.mrf.mxu1  ;;  %v8423_v0 = vld [vmem:[%s11342_s3 + $0x170] sm:$0xff]  }
 0x1ac   : > { %v6926_v49 = vpop.f32.mrf.mxu0  ;;  %v9564_v14 = vadd.f32 %v7033_v61, %v1940_v31  ;;  %7356 = vmatprep.subr.bf16.mxu1 %v8423_v0 }
 0x1ad   : > { %v6927_v50 = vadd.f32 %v6926_v49, %v6925_v6  ;;  %v7035_v63 = vpop.f32.mrf.mxu1  ;;  %7357 = vmatpush3.bf16.msra.mxu1 %v8424_v46 }
 0x1ae   : > { %v6928_v44 = vpop.f32.mrf.mxu0  ;;  %v7036_v1 = vadd.f32 %v7035_v63, %v7034_v10  ;;  %7358 = vmatprep.subr.bf16.mxu1 %v8425_v54  ;;  %v8428_v54 = vld [vmem:[%s11342_s3 + $0x120] sm:$0xff]  }
 0x1af   : > { %v1948_v26 = vadd.f32 %v6927_v50, %v9361_v32  ;;  %v7037_v42 = vpop.f32.mrf.mxu1 }
 0x1b0   : > { %v6929_v33 = vpop.f32.mrf.mxu0  ;;  %v9573_v15 = vadd.f32 %v7036_v1, %v1945_v62 }
 0x1b1   : > { %v6930_v2 = vadd.f32 %v6929_v33, %v6928_v44  ;;  %v7038_v32 = vpop.f32.mrf.mxu1  ;;  %7359 = vmatpush3.bf16.msra.mxu1 %v8426_v3 }
 0x1b2   : > { %v6931_v41 = vpop.f32.mrf.mxu0  ;;  %11392 = vst [vmem:[#allocation15_spill] sm:$0xff] %v9573_v15  ;;  %v7039_v9 = vadd.f32 %v7038_v32, %v7037_v42 }
 0x1b3   : > { %v1953_v56 = vadd.f32 %v6930_v2, %v9366_v20  ;;  %v7040_v17 = vpop.f32.mrf.mxu1 }
 0x1b4   : > { %v6932_v35 = vpop.f32.mrf.mxu0  ;;  %v9582_v29 = vadd.f32 %v7039_v9, %v1948_v26 }
 0x1b5   : > { %v6933_v37 = vadd.f32 %v6932_v35, %v6931_v41  ;;  %v7041_v31 = vpop.f32.mrf.mxu1 }
 0x1b6   : > { %v6934_v4 = vpop.f32.mrf.mxu0  ;;  %11393 = vst [vmem:[#allocation16_spill] sm:$0xff] %v9582_v29  ;;  %v7042_v57 = vadd.f32 %v7041_v31, %v7040_v17  ;;  %v8433_v29 = vld [vmem:[%s11342_s3 + $0x148] sm:$0xff]  }
 0x1b7   : > { %v1956_v20 = vadd.f32 %v6933_v37, %v9373_v39  ;;  %v7043_v34 = vpop.f32.mrf.mxu1 }
 0x1b8   : > { %v6935_v28 = vpop.f32.mrf.mxu0  ;;  %v9585_v62 = vadd.f32 %v7042_v57, %v1953_v56 }
 0x1b9   : > { %v6936_v58 = vadd.f32 %v6935_v28, %v6934_v4  ;;  %v7044_v30 = vpop.f32.mrf.mxu1 }
 0x1ba   : > { %v6937_v45 = vpop.f32.mrf.mxu0  ;;  %11394 = vst [vmem:[#allocation17_spill] sm:$0xff] %v9585_v62  ;;  %v7045_v61 = vadd.f32 %v7044_v30, %v7043_v34 }
 0x1bb   : > { %v1961_v6 = vadd.f32 %v6936_v58, %v9377_v60  ;;  %v7046_v10 = vpop.f32.mrf.mxu1 }
 0x1bc   : > { %v6938_v49 = vpop.f32.mrf.mxu0  ;;  %v9588_v26 = vadd.f32 %v7045_v61, %v1956_v20 }
 0x1bd   : > { %v6939_v50 = vadd.f32 %v6938_v49, %v6937_v45  ;;  %v7047_v63 = vpop.f32.mrf.mxu1 }
 0x1be   : > { %v6940_v39 = vpop.f32.mrf.mxu0  ;;  %11395 = vst [vmem:[#allocation18_spill] sm:$0xff] %v9588_v26  ;;  %v7048_v1 = vadd.f32 %v7047_v63, %v7046_v10 }
 0x1bf   : > { %v1964_v44 = vadd.f32 %v6939_v50, %v9380_v12  ;;  %v7049_v0 = vpop.f32.mrf.mxu1  ;;  %v8427_v12 = vld [vmem:[%s11342_s3 + $0x160] sm:$0xff]  }
 0x1c0   : > { %v6941_v33 = vpop.f32.mrf.mxu0  ;;  %v9591_v42 = vadd.f32 %v7048_v1, %v1961_v6  ;;  %7360 = vmatprep.subr.bf16.mxu1 %v8427_v12 }
 0x1c1   : > { %v6942_v2 = vadd.f32 %v6941_v33, %v6940_v39  ;;  %v7050_v41 = vpop.f32.mrf.mxu1  ;;  %7361 = vmatpush3.bf16.msra.mxu1 %v8428_v54 }
 0x1c2   : > { %v6943_v46 = vpop.f32.mrf.mxu0  ;;  %11396 = vst [vmem:[#allocation19_spill] sm:$0xff] %v9591_v42  ;;  %v7051_v32 = vadd.f32 %v7050_v41, %v7049_v0 }
 0x1c3   : > { %v1969_v60 = vadd.f32 %v6942_v2, %v9383_v8  ;;  %v7052_v9 = vpop.f32.mrf.mxu1  ;;  %v8429_v2 = vld [vmem:[%s11342_s3 + $0x158] sm:$0xff]  }
 0x1c4   : > { %v6944_v56 = vpop.f32.mrf.mxu0  ;;  %v9600_v4 = vadd.f32 %v7051_v32, %v1964_v44  ;;  %7362 = vmatprep.subr.bf16.mxu1 %v8429_v2 }
 0x1c5   : > { %v6945_v35 = vadd.f32 %v6944_v56, %v6943_v46  ;;  %v7053_v8 = vpop.f32.mrf.mxu1  ;;  %v8430_v46 = vld [vmem:[%s11342_s3 + $0x118] sm:$0xff]  }
 0x1c6   : > { %v6946_v37 = vpop.f32.mrf.mxu0  ;;  %11397 = vst [vmem:[#allocation20_spill] sm:$0xff] %v9600_v4  ;;  %v7054_v20 = vadd.f32 %v7053_v8, %v7052_v9  ;;  %7363 = vmatpush3.bf16.msra.mxu1 %v8430_v46 }
 0x1c7   : > { %v1972_v17 = vadd.f32 %v6945_v35, %v9386_v11  ;;  %v7055_v28 = vpop.f32.mrf.mxu1 }
 0x1c8   : > { %v6947_v3 = vpop.f32.mrf.mxu0  ;;  %v9605_v34 = vadd.f32 %v7054_v20, %v1969_v60 }
 0x1c9   : > { %v6948_v31 = vadd.f32 %v6947_v3, %v6946_v37  ;;  %v7056_v45 = vpop.f32.mrf.mxu1 }
 0x1ca   : > { %v6949_v57 = vpop.f32.mrf.mxu0  ;;  %11398 = vst [vmem:[#allocation21_spill] sm:$0xff] %v9605_v34  ;;  %v7057_v30 = vadd.f32 %v7056_v45, %v7055_v28  ;;  %v8431_v28 = vld [vmem:[%s11342_s3 + $0x150] sm:$0xff]  }
 0x1cb   : > { %v9603_v58 = vadd.f32 %v6948_v31, %v9389_v55  ;;  %v9607_v11 = vpop.f32.mrf.mxu1  ;;  %7364 = vmatprep.subr.bf16.mxu1 %v8431_v28 }
 0x1cc   : > { %v6950_v6 = vpop.f32.mrf.mxu0  ;;  %v9614_v10 = vadd.f32 %v7057_v30, %v1972_v17 }
 0x1cd   : > { %v6951_v49 = vadd.f32 %v6950_v6, %v6949_v57  ;;  %v9616_v39 = vpop.f32.mrf.mxu1  ;;  %v8432_v6 = vld [vmem:[%s11342_s3 + $0x110] sm:$0xff]  }
 0x1ce   : > { %v9609_v61 = vpop.f32.mrf.mxu0  ;;  %11399 = vst [vmem:[#allocation22_spill] sm:$0xff] %v9614_v10  ;;  %7365 = vmatpush3.bf16.msra.mxu1 %v8432_v6 }
 0x1cf   : > { %v9612_v50 = vadd.f32 %v6951_v49, %v9392_v36  ;;  %v9620_v55 = vpop.f32.mrf.mxu1  ;;  %7366 = vmatprep.subr.bf16.mxu1 %v8433_v29 }
 0x1d0   : > { %v9618_v44 = vpop.f32.mrf.mxu0 }
 0x1d1   : > { %v9624_v33 = vpop.f32.mrf.mxu1 }
 0x1d2   : > { %v9622_v63 = vpop.f32.mrf.mxu0  ;;  %7367 = vmatpush3.bf16.msra.mxu1 %v8434_v23 }
 0x1d3   : > { %v9631_v36 = vpop.f32.mrf.mxu1 }
 0x1d4   : > { %v9626_v1 = vpop.f32.mrf.mxu0 }
 0x1d5   : > { %v9638_v60 = vpop.f32.mrf.mxu1 }
 0x1d6   : > { %v9633_v0 = vpop.f32.mrf.mxu0 }
 0x1d7   : > { %v9642_v56 = vpop.f32.mrf.mxu1 }
 0x1d8   : > { %v9640_v41 = vpop.f32.mrf.mxu0 }
 0x1d9   : > { %v9646_v35 = vpop.f32.mrf.mxu1 }
 0x1da   : > { %v9644_v32 = vpop.f32.mrf.mxu0 }
 0x1db   : > { %v9650_v9 = vpop.f32.mrf.mxu1 }
 0x1dc   : > { %v9648_v12 = vpop.f32.mrf.mxu0 }
 0x1dd   : > { %v9654_v54 = vpop.f32.mrf.mxu1 }
 0x1de   : > { %v9652_v37 = vpop.f32.mrf.mxu0 }
 0x1df   : > { %v9658_v8 = vpop.f32.mrf.mxu1 }
 0x1e0   : > { %v9656_v17 = vpop.f32.mrf.mxu0 }
 0x1e1   : > { %v9662_v20 = vpop.f32.mrf.mxu1 }
 0x1e2   : > { %v9660_v3 = vpop.f32.mrf.mxu0 }
 0x1e3   : > { %v9669_v57 = vpop.f32.mrf.mxu1 }
 0x1e4   : > { %v9664_v31 = vpop.f32.mrf.mxu0 }
 0x1e5   : > { %v9676_v30 = vpop.f32.mrf.mxu1 }
 0x1e6   : > { %v9671_v45 = vpop.f32.mrf.mxu0 }
 0x1e7   : > { %v9680_v2 = vpop.f32.mrf.mxu1 }
 0x1e8   : > { %v9678_v49 = vpop.f32.mrf.mxu0 }
 0x1e9   : > { %v9684_v21 = vpop.f32.mrf.mxu1 }
 0x1ea   : > { %v9682_v46 = vpop.f32.mrf.mxu0 }
 0x1eb   : > { %v9688_v19 = vpop.f32.mrf.mxu1 }
 0x1ec   : > { %v9686_v4 = vpop.f32.mrf.mxu0  ;;  %11400 = vst [vmem:[#allocation23_spill] sm:$0xff] %v9688_v19 }
 0x1ed   : > { %v9692_v42 = vpop.f32.mrf.mxu1 }
 0x1ee   : > { %v9690_v10 = vpop.f32.mrf.mxu0  ;;  %11401 = vst [vmem:[#allocation24_spill] sm:$0xff] %v9692_v42 }
 0x1ef   : > { %v9696_v53 = vpop.f32.mrf.mxu1 }
 0x1f0   : > { %v9694_v28 = vpop.f32.mrf.mxu0  ;;  %11402 = vst [vmem:[#allocation25_spill] sm:$0xff] %v9696_v53 }
 0x1f1   : > { %v9700_v6 = vpop.f32.mrf.mxu1 }
 0x1f2   : > { %v9698_v34 = vpop.f32.mrf.mxu0  ;;  %11403 = vst [vmem:[#allocation26_spill] sm:$0xff] %v9700_v6 }
 0x1f3   : > { %v9707_v26 = vpop.f32.mrf.mxu1 }
 0x1f4   : > { %v9702_v59 = vpop.f32.mrf.mxu0  ;;  %11404 = vst [vmem:[#allocation27_spill] sm:$0xff] %v9707_v26 }
 0x1f5   : > { %v9714_v53 = vpop.f32.mrf.mxu1 }
 0x1f6   : > { %v9709_v15 = vpop.f32.mrf.mxu0  ;;  %11406 = vst [vmem:[#allocation29_spill] sm:$0xff] %v9714_v53 }
 0x1f7   : > { %11405 = vst [vmem:[#allocation28_spill] sm:$0xff] %v9709_v15  ;;  %v9718_v6 = vpop.f32.mrf.mxu1  ;;  %v8435_v15 = vld [vmem:[%s11342_s3 + $0x1f8] sm:$0xff]  }
 0x1f8   : > { %v9716_v42 = vpop.f32.mrf.mxu0  ;;  %11408 = vst [vmem:[#allocation31_spill] sm:$0xff] %v9718_v6  ;;  %7466 = vmatprep.subr.bf16.mxu0 %v8435_v15  ;;  %v6957_v15 = vadd.f32 %v9626_v1, %v9622_v63  ;;  %v7066_v1 = vadd.f32 %v9638_v60, %v9631_v36  ;;  %v6969_v36 = vadd.f32 %v9664_v31, %v9660_v3 }
 0x1f9   : > { %11407 = vst [vmem:[#allocation30_spill] sm:$0xff] %v9716_v42  ;;  %v9722_v62 = vpop.f32.mrf.mxu1  ;;  %v6954_v42 = vadd.f32 %v9618_v44, %v9609_v61  ;;  %v7060_v61 = vadd.f32 %v9616_v39, %v9607_v11  ;;  %v6960_v44 = vadd.f32 %v9640_v41, %v9633_v0  ;;  %v7069_v39 = vadd.f32 %v9646_v35, %v9642_v56 }
 0x1fa   : > { %v9720_v19 = vpop.f32.mrf.mxu0  ;;  %11410 = vst [vmem:[#allocation33_spill] sm:$0xff] %v9722_v62  ;;  %v1988_v11 = vadd.f32 %v6957_v15, %v9398_v27  ;;  %v6963_v0 = vadd.f32 %v9648_v12, %v9644_v32  ;;  %v7075_v15 = vadd.f32 %v9662_v20, %v9658_v8  ;;  %v6972_v8 = vadd.f32 %v9678_v49, %v9671_v45 }
 0x1fb   : > { %11409 = vst [vmem:[#allocation32_spill] sm:$0xff] %v9720_v19  ;;  %v9729_v26 = vpop.f32.mrf.mxu1  ;;  %v1985_v63 = vadd.f32 %v6954_v42, %v9395_v52  ;;  %v9779_v42 = vld [vmem:[#allocation2 + $0xe9] sm:$0xff]  ;;  %v6975_v20 = vadd.f32 %v9686_v4, %v9682_v46  ;;  %v7081_v4 = vadd.f32 %v9684_v21, %v9680_v2 }
 0x1fc   : > { %v9724_v43 = vpop.f32.mrf.mxu0  ;;  %11412 = vst [vmem:[#allocation35_spill] sm:$0xff] %v9729_v26  ;;  %v8439_v26 = vld [vmem:[%s11342_s3 + $0x140] sm:$0xff]   ;;  %v2009_v21 = vadd.f32 %v6972_v8, %v9414_v40 }
 0x1fd   : > { %11411 = vst [vmem:[#allocation34_spill] sm:$0xff] %v9724_v43  ;;  %v9733_v53 = vpop.f32.mrf.mxu1  ;;  %7368 = vmatprep.subr.bf16.mxu1 %v8439_v26  ;;  %v7063_v26 = vadd.f32 %v9624_v33, %v9620_v55  ;;  %v1993_v55 = vadd.f32 %v6960_v44, %v9402_v48  ;;  %v7072_v33 = vadd.f32 %v9654_v54, %v9650_v9  ;;  %v11430_v2 = vld [vmem:[#allocation9_spill] sm:$0xff] }
 0x1fe   : > { %v9731_v29 = vpop.f32.mrf.mxu0  ;;  %11413 = vst [vmem:[#allocation36_spill] sm:$0xff] %v9733_v53  ;;  %v2146_v32 = vadd.f32 %v7066_v1, %v1985_v63  ;;  %v1996_v48 = vadd.f32 %v6963_v0, %v9405_v51  ;;  %v2138_v9 = vadd.f32 %v7060_v61, %v9603_v58  ;;  %v2149_v54 = vadd.f32 %v7069_v39, %v1988_v11 }
 0x1ff   : > { %v9737_v6 = vpop.f32.mrf.mxu1  ;;  %v7078_v51 = vadd.f32 %v9676_v30, %v9669_v57  ;;  %v2004_v58 = vadd.f32 %v6969_v36, %v9411_v24  ;;  %v2154_v44 = vadd.f32 %v7072_v33, %v1993_v55  ;;  %v6978_v24 = vadd.f32 %v9694_v28, %v9690_v10  ;;  %v11431_v55 = vld [vmem:[#allocation27_spill] sm:$0xff]  ;;  %v11432_v33 = vld [vmem:[#allocation29_spill] sm:$0xff] }
 0x200   : > { %v9735_v23 = vpop.f32.mrf.mxu0  ;;  %11415 = vst [vmem:[#allocation38_spill] sm:$0xff] %v9737_v6  ;;  %v8441_v6 = vld [vmem:[%s11342_s3 + $0x100] sm:$0xff]   ;;  %v6981_v10 = vadd.f32 %v9702_v59, %v9698_v34  ;;  %v2157_v39 = vadd.f32 %v7075_v15, %v1996_v48  ;;  %v9850_v59 = vld [vmem:[%s11342_s3 + $0x238] sm:$0xff]   ;;  %v2012_v34 = vadd.f32 %v6975_v20, %v9423_v16  ;;  %v7090_v36 = vadd.f32 %v11432_v33, %v11431_v55  ;;  %v8437_v33 = vld [vmem:[%s11342_s3 + $0x1f0] sm:$0xff]  }
 0x201   : > { %11414 = vst [vmem:[#allocation37_spill] sm:$0xff] %v9735_v23  ;;  %v9741_v62 = vpop.f32.mrf.mxu1  ;;  %7369 = vmatpush3.bf16.msra.mxu1 %v8441_v6  ;;  %v11436_v16 = vld [vmem:[#allocation23_spill] sm:$0xff] }
 0x202   : > { %v9739_v19 = vpop.f32.mrf.mxu0  ;;  %11417 = vst [vmem:[#allocation40_spill] sm:$0xff] %v9741_v62  ;;  %8131 = vmatprep.subr.bf16.mxu1 %v9850_v59  ;;  %v11443_v20 = vld [vmem:[#allocation15_spill] sm:$0xff] }
 0x203   : > { %11416 = vst [vmem:[#allocation39_spill] sm:$0xff] %v9739_v19  ;;  %v9752_v53 = vpop.f32.mrf.mxu1 }
 0x204   : > { %v9743_v43 = vpop.f32.mrf.mxu0  ;;  %11419 = vst [vmem:[#allocation42_spill] sm:$0xff] %v9752_v53 }
 0x205   : > { %11418 = vst [vmem:[#allocation41_spill] sm:$0xff] %v9743_v43  ;;  %v9762_v43 = vpop.f32.mrf.mxu1 }
 0x206   : > { %v8101_v23 = vpop.f32.mrf.mxu0 }
 0x207   : > { %v2243_v62 = vadd.f32 %v8101_v23, %v9534_v18  ;;  %v9777_v41 = vpop.f32.mrf.mxu1 }
 0x208   : > { %v2234_v19 = vpop.f32.mrf.mxu0 }
 0x209   : > { %v9767_v53 = vmax.f32 %v2243_v62, 0.0  ;;  %v2235_v18 = vadd.f32 %v2234_v19, %v9515_v25  ;;  %v9781_v62 = vld [vmem:[#allocation2 + $0xf1] sm:$0xff]  ;;  %v6966_v19 = vadd.f32 %v9656_v17, %v9652_v37  ;;  %v9794_v60 = vpop.f32.mrf.mxu1  ;;  %v2141_v17 = vadd.f32 %v7063_v26, %v9612_v50 }
 0x20a   : > { %v8102_v52 = vpop.f32.mrf.mxu0 }
 0x20b   : > { %11420 = vst [vmem:[#allocation43_spill] sm:$0xff] %v9767_v53  ;;  %2395 = vst [vmem:[#allocation2 + $0x128] sm:$0xff] %v9767_v53  ;;  %v9786_v25 = vmax.f32 %v2235_v18, 0.0  ;;  %v2246_v27 = vadd.f32 %v8102_v52, %v9543_v7  ;;  %v2715_v7 = vpack.c.bf16 %v9781_v62, %v9779_v42  ;;  %v8117_v37 = vpop.f32.mrf.mxu1  ;;  %v2001_v31 = vadd.f32 %v6966_v19, %v9408_v5 }
 0x20c   : > { %v2237_v56 = vpop.f32.mrf.mxu0  ;;  %v2307_v6 = vadd.f32 %v8117_v37, %v2146_v32  ;;  %v11435_v37 = vld [vmem:[#allocation17_spill] sm:$0xff] }
 0x20d   : > { %11421 = vst [vmem:[#allocation44_spill] sm:$0xff] %v9786_v25  ;;  %2393 = vst [vmem:[#allocation2 + $0x108] sm:$0xff] %v9786_v25  ;;  %v9797_v35 = vmax.f32 %v2246_v27, 0.0  ;;  %v2238_v12 = vadd.f32 %v2237_v56, %v9525_v47  ;;  %v2298_v61 = vpop.f32.mrf.mxu1  ;;  %v2162_v46 = vadd.f32 %v7078_v51, %v2001_v31  ;;  %v2017_v27 = vadd.f32 %v6978_v24, %v11430_v2  ;;  %v11448_v2 = vld [vmem:[#allocation18_spill] sm:$0xff] }
 0x20e   : > { %v8105_v3 = vpop.f32.mrf.mxu0  ;;  %v9815_v63 = vmax.f32 %v2307_v6, 0.0  ;;  %v2299_v5 = vadd.f32 %v2298_v61, %v2138_v9  ;;  %v11437_v9 = vld [vmem:[#allocation24_spill] sm:$0xff]  ;;  %v11440_v6 = vld [vmem:[#allocation10_spill] sm:$0xff]  ;;  %v2165_v51 = vadd.f32 %v7081_v4, %v2004_v58 }
 0x20f   : > { %11422 = vst [vmem:[#allocation45_spill] sm:$0xff] %v9797_v35  ;;  %2396 = vst [vmem:[#allocation2 + $0x130] sm:$0xff] %v9797_v35  ;;  %v9807_v23 = vmax.f32 %v2238_v12, 0.0  ;;  %v2259_v47 = vadd.f32 %v8105_v3, %v9561_v13  ;;  %v8118_v57 = vpop.f32.mrf.mxu1  ;;  %v11439_v3 = vld [vmem:[#allocation26_spill] sm:$0xff]  ;;  %v2178_v58 = vadd.f32 %v7090_v36, %v2017_v27  ;;  %v11449_v36 = vld [vmem:[#allocation31_spill] sm:$0xff] }
 0x210   : > { %v2250_v50 = vpop.f32.mrf.mxu0  ;;  %11424 = vst [vmem:[#allocation47_spill] sm:$0xff] %v9815_v63  ;;  %2411 = vst [vmem:[#allocation2 + $0x228] sm:$0xff] %v9815_v63  ;;  %v9830_v26 = vmax.f32 %v2299_v5, 0.0  ;;  %v2310_v11 = vadd.f32 %v8118_v57, %v2149_v54  ;;  %v7084_v54 = vadd.f32 %v11437_v9, %v11436_v16 }
 0x211   : > { %11423 = vst [vmem:[#allocation46_spill] sm:$0xff] %v9807_v23  ;;  %2394 = vst [vmem:[#allocation2 + $0x110] sm:$0xff] %v9807_v23  ;;  %v9818_v1 = vmax.f32 %v2259_v47, 0.0  ;;  %v2251_v13 = vadd.f32 %v2250_v50, %v9555_v22  ;;  %v2723_v18 = vpack.c.bf16 %v9807_v23, %v9786_v25  ;;  %v2301_v49 = vpop.f32.mrf.mxu1  ;;  %v9870_v47 = vadd.f32 %v6981_v10, %v11440_v6 }
 0x212   : > { %v8106_v30 = vpop.f32.mrf.mxu0  ;;  %11426 = vst [vmem:[#allocation49_spill] sm:$0xff] %v9830_v26  ;;  %2409 = vst [vmem:[#allocation2 + $0x208] sm:$0xff] %v9830_v26  ;;  %v9841_v0 = vmax.f32 %v2310_v11, 0.0  ;;  %v2302_v52 = vadd.f32 %v2301_v49, %v2141_v17  ;;  %v11438_v17 = vld [vmem:[#allocation25_spill] sm:$0xff]  ;;  %v11445_v11 = vld [vmem:[#allocation30_spill] sm:$0xff] }
 0x213   : > { %11425 = vst [vmem:[#allocation48_spill] sm:$0xff] %v9818_v1  ;;  %2399 = vst [vmem:[#allocation2 + $0x168] sm:$0xff] %v9818_v1  ;;  %v9833_v22 = vmax.f32 %v2251_v13, 0.0  ;;  %v2262_v45 = vadd.f32 %v8106_v30, %v9564_v14  ;;  %3480 = vmatprep.mubr.bf16.mxu1 %v2723_v18  ;;  %v8121_v56 = vpop.f32.mrf.mxu1  ;;  %v7087_v31 = vadd.f32 %v11439_v3, %v11438_v17  ;;  %v11444_v18 = vld [vmem:[#allocation28_spill] sm:$0xff]  ;;  %v2523_v55 = vld [vmem:[#allocation2 + $0x127] sm:$0xff] }
 0x214   : > { %v2253_v28 = vpop.f32.mrf.mxu0  ;;  %11428 = vst [vmem:[#allocation51_spill] sm:$0xff] %v9841_v0  ;;  %2412 = vst [vmem:[#allocation2 + $0x230] sm:$0xff] %v9841_v0  ;;  %v9858_v12 = vmax.f32 %v2302_v52, 0.0  ;;  %v2521_v57 = vld [vmem:[#allocation2 + $0x107] sm:$0xff] }
 0x215   : > { %11427 = vst [vmem:[#allocation50_spill] sm:$0xff] %v9833_v22  ;;  %2397 = vst [vmem:[#allocation2 + $0x148] sm:$0xff] %v9833_v22  ;;  %v9844_v19 = vmax.f32 %v2262_v45, 0.0  ;;  %v2254_v14 = vadd.f32 %v2253_v28, %v9558_v38  ;;  %v2323_v38 = vadd.f32 %v8121_v56, %v2162_v46  ;;  %v2314_v15 = vpop.f32.mrf.mxu1  ;;  %v6984_v45 = vadd.f32 %v11445_v11, %v11444_v18  ;;  %v11450_v56 = vld [vmem:[#allocation33_spill] sm:$0xff]  ;;  %v11460_v11 = vld [vmem:[#allocation42_spill] sm:$0xff] }
 0x216   : > { %v8109_v32 = vpop.f32.mrf.mxu0  ;;  %11433 = vst [vmem:[#allocation9_spill] sm:$0xff] %v9858_v12  ;;  %2410 = vst [vmem:[#allocation2 + $0x210] sm:$0xff] %v9858_v12  ;;  %v2315_v13 = vadd.f32 %v2314_v15, %v2154_v44  ;;  %v2524_v30 = vld [vmem:[#allocation2 + $0x12f] sm:$0xff]  ;;  %v2732_v46 = vpack.c.bf16 %v9797_v35, %v9767_v53  ;;  %v8436_v44 = vld [vmem:[%s11342_s3 + $0x1b8] sm:$0xff]  }
 0x217   : > { %11429 = vst [vmem:[#allocation52_spill] sm:$0xff] %v9844_v19  ;;  %2400 = vst [vmem:[#allocation2 + $0x170] sm:$0xff] %v9844_v19  ;;  %v9861_v48 = vmax.f32 %v2254_v14, 0.0  ;;  %v2275_v40 = vadd.f32 %v8109_v32, %v11435_v37  ;;  %v9873_v5 = vmax.f32 %v2323_v38, 0.0  ;;  %v8122_v10 = vpop.f32.mrf.mxu1  ;;  %v7093_v32 = vadd.f32 %v11450_v56, %v11449_v36  ;;  %v11451_v38 = vld [vmem:[#allocation37_spill] sm:$0xff]  ;;  %v11454_v15 = vld [vmem:[#allocation16_spill] sm:$0xff] }
 0x218   : > { %v2266_v61 = vpop.f32.mrf.mxu0  ;;  %v2522_v50 = vld [vmem:[#allocation2 + $0x10f] sm:$0xff]  ;;  %v9887_v28 = vmax.f32 %v2315_v13, 0.0  ;;  %v2326_v52 = vadd.f32 %v8122_v10, %v2165_v51  ;;  %v6990_v37 = vadd.f32 %v11451_v38, %v9731_v29  ;;  %v9900_v9 = vpack.c.bf16 %v2524_v30, %v2523_v55  ;;  %v11459_v30 = vld [vmem:[#allocation13_spill] sm:$0xff]  ;;  %v11467_v56 = vld [vmem:[#allocation36_spill] sm:$0xff] }
 0x219   : > { %11434 = vst [vmem:[#allocation27_spill] sm:$0xff] %v9861_v48  ;;  %11441 = vst [vmem:[#allocation29_spill] sm:$0xff] %v9873_v5  ;;  %v9876_v8 = vmax.f32 %v2275_v40, 0.0  ;;  %v2267_v24 = vadd.f32 %v2266_v61, %v11443_v20  ;;  %v2716_v49 = vpack.c.bf16 %v2522_v50, %v2521_v57  ;;  %v2317_v40 = vpop.f32.mrf.mxu1  ;;  %v11455_v29 = vld [vmem:[#allocation11_spill] sm:$0xff]  ;;  %v2170_v13 = vadd.f32 %v7084_v54, %v2009_v21  ;;  %v8498_v35 = vld [vmem:[#allocation3 + $0x128] sm:$0xff]  }
 0x21a   : > { %2398 = vst [vmem:[#allocation2 + $0x150] sm:$0xff] %v9861_v48  ;;  %v8110_v4 = vpop.f32.mrf.mxu0  ;;  %2415 = vst [vmem:[#allocation2 + $0x268] sm:$0xff] %v9873_v5  ;;  %v9903_v17 = vmax.f32 %v2326_v52, 0.0  ;;  %v2318_v3 = vadd.f32 %v2317_v40, %v2157_v39  ;;  %v9913_v61 = vadd.f32 %v6984_v45, %v11455_v29  ;;  %v2173_v20 = vadd.f32 %v7087_v31, %v2012_v34  ;;  %v2491_v34 = vld [vmem:[#allocation2 + $0x109] sm:$0xff]  ;;  %v2492_v54 = vld [vmem:[#allocation2 + $0x111] sm:$0xff] }
 0x21b   : > { %11442 = vst [vmem:[#allocation17_spill] sm:$0xff] %v9876_v8  ;;  %11446 = vst [vmem:[#allocation23_spill] sm:$0xff] %v9887_v28  ;;  %v9890_v14 = vmax.f32 %v2267_v24, 0.0  ;;  %v2278_v27 = vadd.f32 %v8110_v4, %v11448_v2  ;;  %3633 = vmatprep.mubr.bf16.mxu0 %v2716_v49  ;;  %3481 = vmatmul.mubr.bf16.gmra.mxu1 %v2716_v49  ;;  %v8125_v50 = vpop.f32.mrf.mxu1  ;;  %v8438_v24 = vld [vmem:[%s11342_s3 + $0x1b0] sm:$0xff]   ;;  %v8440_v31 = vld [vmem:[%s11342_s3 + $0x1e8] sm:$0xff]   ;;  %v2033_v18 = vadd.f32 %v6990_v37, %v11459_v30 }
 0x21c   : > { %2403 = vst [vmem:[#allocation2 + $0x1a8] sm:$0xff] %v9876_v8  ;;  %v2269_v16 = vpop.f32.mrf.mxu0  ;;  %2413 = vst [vmem:[#allocation2 + $0x248] sm:$0xff] %v9887_v28  ;;  %3634 = vmatmul.mubr.bf16.vlgmr.msra.gmra.mxu0 %v2715_v7  ;;  %3488 = vmatprep.mubr.bf16.mxu1 %v2732_v46  ;;  %v9920_v57 = vmax.f32 %v2318_v3, 0.0  ;;  %v2339_v42 = vadd.f32 %v8125_v50, %v2178_v58  ;;  %v11458_v7 = vld [vmem:[#allocation21_spill] sm:$0xff]  ;;  %v7102_v45 = vadd.f32 %v9762_v43, %v11460_v11  ;;  %v11461_v10 = vld [vmem:[#allocation39_spill] sm:$0xff] }
 0x21d   : > { %11447 = vst [vmem:[#allocation24_spill] sm:$0xff] %v9890_v14  ;;  %11452 = vst [vmem:[#allocation25_spill] sm:$0xff] %v9903_v17  ;;  %v9906_v6 = vmax.f32 %v2278_v27, 0.0  ;;  %v2270_v51 = vadd.f32 %v2269_v16, %v11454_v15  ;;  %3641 = vmatprep.mubr.bf16.mxu0 %v9900_v9  ;;  %7467 = vmatpush3.bf16.msra.mxu0 %v8436_v44  ;;  %v11462_v58 = vld [vmem:[#allocation41_spill] sm:$0xff]  ;;  %v2330_v49 = vpop.f32.mrf.mxu1  ;;  %v2181_v46 = vadd.f32 %v7093_v32, %v9870_v47  ;;  %v11465_v55 = vld [vmem:[#allocation19_spill] sm:$0xff] }
 0x21e   : > { %2401 = vst [vmem:[#allocation2 + $0x188] sm:$0xff] %v9890_v14  ;;  %v8113_v39 = vpop.f32.mrf.mxu0  ;;  %2416 = vst [vmem:[#allocation2 + $0x270] sm:$0xff] %v9903_v17  ;;  %7468 = vmatprep.subr.bf16.mxu0 %v8437_v33  ;;  %v6993_v4 = vadd.f32 %v11462_v58, %v11461_v10  ;;  %v9936_v52 = vmax.f32 %v2339_v42, 0.0  ;;  %v2331_v2 = vadd.f32 %v2330_v49, %v2170_v13  ;;  %v11466_v43 = vld [vmem:[#allocation35_spill] sm:$0xff]  ;;  %v11468_v37 = vld [vmem:[#allocation32_spill] sm:$0xff] }
 0x21f   : > { %11453 = vst [vmem:[#allocation26_spill] sm:$0xff] %v9906_v6  ;;  %11456 = vst [vmem:[#allocation10_spill] sm:$0xff] %v9920_v57  ;;  %v9923_v62 = vmax.f32 %v2270_v51, 0.0  ;;  %v2291_v21 = vadd.f32 %v8113_v39, %v11458_v7  ;;  %v7096_v38 = vadd.f32 %v11467_v56, %v11466_v43  ;;  %v11469_v40 = vld [vmem:[#allocation34_spill] sm:$0xff]  ;;  %v8126_v47 = vpop.f32.mrf.mxu1  ;;  %v9946_v3 = vpack.c.bf16 %v2492_v54, %v2491_v34 }
 0x220   : > { %2404 = vst [vmem:[#allocation2 + $0x1b0] sm:$0xff] %v9906_v6  ;;  %v2282_v44 = vpop.f32.mrf.mxu0  ;;  %2414 = vst [vmem:[#allocation2 + $0x250] sm:$0xff] %v9920_v57  ;;  %v6987_v16 = vadd.f32 %v11469_v40, %v11468_v37  ;;  %v2741_v15 = vpack.c.bf16 %v9861_v48, %v9833_v22  ;;  %v8442_v51 = vld [vmem:[%s11342_s3 + $0x1a8] sm:$0xff]   ;;  %v9954_v29 = vmax.f32 %v2331_v2, 0.0  ;;  %v2342_v50 = vadd.f32 %v8126_v47, %v2181_v46  ;;  %v8445_v37 = vld [vmem:[%s11342_s3 + $0x1d8] sm:$0xff]  }
 0x221   : > { %11457 = vst [vmem:[#allocation15_spill] sm:$0xff] %v9923_v62  ;;  %11463 = vst [vmem:[#allocation28_spill] sm:$0xff] %v9936_v52  ;;  %v9939_v27 = vmax.f32 %v2291_v21, 0.0  ;;  %v2283_v33 = vadd.f32 %v2282_v44, %v11465_v55  ;;  %v2526_v36 = vld [vmem:[#allocation2 + $0x14f] sm:$0xff]  ;;  %7469 = vmatpush3.bf16.msra.mxu0 %v8438_v24  ;;  %v2525_v7 = vld [vmem:[#allocation2 + $0x147] sm:$0xff]  ;;  %v7105_v54 = vadd.f32 %v9794_v60, %v9777_v41  ;;  %v2333_v30 = vpop.f32.mrf.mxu1 }
 0x222   : > { %2402 = vst [vmem:[#allocation2 + $0x190] sm:$0xff] %v9923_v62  ;;  %v8114_v32 = vpop.f32.mrf.mxu0  ;;  %2419 = vst [vmem:[#allocation2 + $0x2a8] sm:$0xff] %v9936_v52  ;;  %v11472_v39 = vld [vmem:[#allocation22_spill] sm:$0xff]  ;;  %7470 = vmatprep.subr.bf16.mxu0 %v8440_v31  ;;  %v8443_v24 = vld [vmem:[%s11342_s3 + $0x1e0] sm:$0xff]   ;;  %v2194_v11 = vadd.f32 %v7102_v45, %v2033_v18  ;;  %v9967_v58 = vpack.c.bf16 %v2526_v36, %v2525_v7  ;;  %v9970_v49 = vmax.f32 %v2342_v50, 0.0 }
 0x223   : > { %11464 = vst [vmem:[#allocation30_spill] sm:$0xff] %v9939_v27  ;;  %11470 = vst [vmem:[#allocation18_spill] sm:$0xff] %v9954_v29  ;;  %v9957_v13 = vmax.f32 %v2283_v33, 0.0  ;;  %v2294_v42 = vadd.f32 %v8114_v32, %v11472_v39  ;;  %v11473_v21 = vld [vmem:[#allocation14_spill] sm:$0xff]  ;;  %3489 = vmatmul.mubr.bf16.gmra.mxu1 %v9900_v9  ;;  %v2334_v31 = vadd.f32 %v2333_v30, %v2173_v20  ;;  %v11477_v41 = vld [vmem:[#allocation12_spill] sm:$0xff]  ;;  %v8129_v55 = vpop.f32.mrf.mxu1 }
 0x224   : > { %2407 = vst [vmem:[#allocation2 + $0x1e8] sm:$0xff] %v9939_v27  ;;  %v2036_v34 = vadd.f32 %v6993_v4, %v11473_v21  ;;  %v2285_v10 = vpop.f32.mrf.mxu0  ;;  %2417 = vst [vmem:[#allocation2 + $0x288] sm:$0xff] %v9954_v29  ;;  %v11476_v4 = vld [vmem:[#allocation20_spill] sm:$0xff]  ;;  %3642 = vmatmul.mubr.bf16.gmra.mxu0 %v9946_v3  ;;  %3496 = vmatprep.mubr.bf16.mxu1 %v2741_v15  ;;  %v2028_v60 = vadd.f32 %v6987_v16, %v11477_v41  ;;  %v11478_v18 = vld [vmem:[#allocation38_spill] sm:$0xff] }
 0x225   : > { %11471 = vst [vmem:[#allocation31_spill] sm:$0xff] %v9957_v13  ;;  %11474 = vst [vmem:[#allocation33_spill] sm:$0xff] %v9970_v49  ;;  %v9973_v46 = vmax.f32 %v2294_v42, 0.0  ;;  %v2286_v44 = vadd.f32 %v2285_v10, %v11476_v4  ;;  %v11479_v45 = vld [vmem:[#allocation40_spill] sm:$0xff]  ;;  %3649 = vmatprep.mubr.bf16.mxu0 %v9967_v58  ;;  %7471 = vmatpush3.bf16.msra.mxu0 %v8442_v51  ;;  %v9985_v33 = vmax.f32 %v2334_v31, 0.0  ;;  %v2346_v40 = vpop.f32.mrf.mxu1  ;;  %v2493_v16 = vld [vmem:[#allocation2 + $0x129] sm:$0xff] }
 0x226   : > { %2405 = vst [vmem:[#allocation2 + $0x1c8] sm:$0xff] %v9957_v13  ;;  %v7099_v2 = vadd.f32 %v11479_v45, %v11478_v18  ;;  %v8444_v20 = vld [vmem:[%s11342_s3 + $0x1a0] sm:$0xff]   ;;  %2420 = vst [vmem:[#allocation2 + $0x2b0] sm:$0xff] %v9970_v49  ;;  %v9987_v36 = vadd.f32 %v8129_v55, %v2194_v11  ;;  %v2186_v43 = vadd.f32 %v7096_v38, %v9913_v61  ;;  %7472 = vmatprep.subr.bf16.mxu0 %v8443_v24  ;;  %v2494_v47 = vld [vmem:[#allocation2 + $0x131] sm:$0xff] }
 0x227   : > { %11475 = vst [vmem:[#allocation37_spill] sm:$0xff] %v9973_v46  ;;  %11480 = vst [vmem:[#allocation16_spill] sm:$0xff] %v9985_v33  ;;  %v9991_v56 = vmax.f32 %v2286_v44, 0.0  ;;  %v2197_v51 = vadd.f32 %v7105_v54, %v2036_v34  ;;  %v2528_v61 = vld [vmem:[#allocation2 + $0x16f] sm:$0xff]  ;;  %v8130_v38 = vpop.f32.mrf.mxu1  ;;  %v8446_v39 = vld [vmem:[%s11342_s3 + $0x198] sm:$0xff]   ;;  %v10008_v24 = vpack.c.bf16 %v2494_v47, %v2493_v16  ;;  %v2750_v21 = vpack.c.bf16 %v9844_v19, %v9818_v1 }
 0x228   : > { %11481 = vst [vmem:[#allocation11_spill] sm:$0xff] %v9987_v36  ;;  %2408 = vst [vmem:[#allocation2 + $0x1f0] sm:$0xff] %v9973_v46  ;;  %v11350_v32 = vmax.f32 %v9987_v36, 0.0  ;;  %v2347_v15 = vadd.f32 %v2346_v40, %v2186_v43  ;;  %v2189_v50 = vadd.f32 %v7099_v2, %v2028_v60  ;;  %v2527_v34 = vld [vmem:[#allocation2 + $0x167] sm:$0xff]  ;;  %v8447_v54 = vld [vmem:[%s11342_s3 + $0x1d0] sm:$0xff]  }
 0x229   : > { %11482 = vst [vmem:[#allocation21_spill] sm:$0xff] %v9991_v56  ;;  %2418 = vst [vmem:[#allocation2 + $0x290] sm:$0xff] %v9985_v33  ;;  %7473 = vmatpush3.bf16.msra.mxu0 %v8444_v20  ;;  %v10006_v7 = vadd.f32 %v8130_v38, %v2197_v51  ;;  %v2349_v30 = vpop.f32.mrf.mxu1  ;;  %v10016_v11 = vpack.c.bf16 %v2528_v61, %v2527_v34  ;;  %v8448_v4 = vld [vmem:[%s11342_s3 + $0x190] sm:$0xff]   ;;  %v8449_v41 = vld [vmem:[%s11342_s3 + $0x1c8] sm:$0xff]   ;;  %v10040_v20 = vpack.c.bf16 %v9923_v62, %v9890_v14 }
 0x22a   : > { %2406 = vst [vmem:[#allocation2 + $0x1d0] sm:$0xff] %v9991_v56  ;;  %2423 = vst [vmem:[#allocation2 + $0x2e8] sm:$0xff] %v11350_v32  ;;  %v10004_v42 = vmax.f32 %v2347_v15, 0.0  ;;  %7474 = vmatprep.subr.bf16.mxu0 %v8445_v37  ;;  %v2350_v31 = vadd.f32 %v2349_v30, %v2189_v50  ;;  %v2495_v60 = vld [vmem:[#allocation2 + $0x149] sm:$0xff]  ;;  %v2496_v18 = vld [vmem:[#allocation2 + $0x151] sm:$0xff]  ;;  %v2768_v38 = vpack.c.bf16 %v9906_v6, %v9876_v8 }
 0x22b   : > { %11484 = vst [vmem:[#allocation42_spill] sm:$0xff] %v10006_v7  ;;  %3497 = vmatmul.mubr.bf16.gmra.mxu1 %v9967_v58  ;;  %v11349_v10 = vmax.f32 %v10006_v7, 0.0  ;;  %v2530_v45 = vld [vmem:[#allocation2 + $0x18f] sm:$0xff]  ;;  %v10036_v55 = vpack.c.bf16 %v2496_v18, %v2495_v60  ;;  %v2529_v43 = vld [vmem:[#allocation2 + $0x187] sm:$0xff] }
 0x22c   : > { %11483 = vst [vmem:[#allocation13_spill] sm:$0xff] %v10004_v42  ;;  %2421 = vst [vmem:[#allocation2 + $0x2c8] sm:$0xff] %v10004_v42  ;;  %3650 = vmatmul.mubr.bf16.gmra.mxu0 %v10008_v24  ;;  %3504 = vmatprep.mubr.bf16.mxu1 %v2750_v21  ;;  %v10027_v44 = vmax.f32 %v2350_v31, 0.0  ;;  %v8451_v2 = vld [vmem:[%s11342_s3 + $0x188] sm:$0xff]   ;;  %v8452_v37 = vld [vmem:[%s11342_s3 + $0x1c0] sm:$0xff]   ;;  %v10046_v40 = vpack.c.bf16 %v2530_v45, %v2529_v43  ;;  %v10067_v31 = vpack.c.bf16 %v9991_v56, %v9957_v13 }
 0x22d   : > { %3657 = vmatprep.mubr.bf16.mxu0 %v10016_v11  ;;  %7475 = vmatpush3.bf16.msra.mxu0 %v8446_v39  ;;  %2424 = vst [vmem:[#allocation2 + $0x2f0] sm:$0xff] %v11349_v10  ;;  %v8453_v16 = vld [vmem:[%s11342_s3 + $0x180] sm:$0xff]   ;;  %v2497_v47 = vld [vmem:[#allocation2 + $0x169] sm:$0xff]  ;;  %v2498_v15 = vld [vmem:[#allocation2 + $0x171] sm:$0xff]  ;;  %v10079_v43 = vpack.c.bf16 %v9973_v46, %v9939_v27 }
 0x22e   : > { %11485 = vst [vmem:[#allocation39_spill] sm:$0xff] %v10027_v44  ;;  %7476 = vmatprep.subr.bf16.mxu0 %v8447_v54  ;;  %2422 = vst [vmem:[#allocation2 + $0x2d0] sm:$0xff] %v10027_v44  ;;  %v2532_v51 = vld [vmem:[#allocation2 + $0x1af] sm:$0xff]  ;;  %v10054_v61 = vpack.c.bf16 %v2498_v15, %v2497_v47  ;;  %v2531_v50 = vld [vmem:[#allocation2 + $0x1a7] sm:$0xff] }
 0x22f   : > { %v10059_v39 = vpack.c.bf16 %v2532_v51, %v2531_v50  ;;  %v2499_v21 = vld [vmem:[#allocation2 + $0x189] sm:$0xff]  ;;  %v2500_v34 = vld [vmem:[#allocation2 + $0x191] sm:$0xff]  ;;  %v2795_v50 = vpack.c.bf16 %v9858_v12, %v9830_v26  ;;  %v8483_v8 = vld [vmem:[#allocation3 + $0xe0] sm:$0xff]  }
 0x230   : > { %v10063_v30 = vpack.c.bf16 %v2500_v34, %v2499_v21  ;;  %v2501_v60 = vld [vmem:[#allocation2 + $0x1a9] sm:$0xff]  ;;  %v2502_v18 = vld [vmem:[#allocation2 + $0x1b1] sm:$0xff]  ;;  %v8484_v14 = vld [vmem:[#allocation3 + $0xa0] sm:$0xff]  }
 0x231   : > { %7477 = vmatpush3.bf16.msra.mxu0 %v8448_v4  ;;  %v2534_v54 = vld [vmem:[#allocation2 + $0x1cf] sm:$0xff]  ;;  %v2533_v4 = vld [vmem:[#allocation2 + $0x1c7] sm:$0xff] }
 0x232   : > { %7478 = vmatprep.subr.bf16.mxu0 %v8449_v41  ;;  %v10070_v41 = vpack.c.bf16 %v2534_v54, %v2533_v4  ;;  %v2536_v45 = vld [vmem:[#allocation2 + $0x1ef] sm:$0xff]  ;;  %v2537_v21 = vld [vmem:[#allocation2 + $0x207] sm:$0xff] }
 0x233   : > { %3505 = vmatmul.mubr.bf16.gmra.mxu1 %v10016_v11  ;;  %v2503_v47 = vld [vmem:[#allocation2 + $0x1c9] sm:$0xff]  ;;  %v2504_v15 = vld [vmem:[#allocation2 + $0x1d1] sm:$0xff] }
 0x234   : > { %3658 = vmatmul.mubr.bf16.gmra.mxu0 %v10036_v55  ;;  %3512 = vmatprep.mubr.bf16.mxu1 %v10040_v20  ;;  %v2538_v51 = vld [vmem:[#allocation2 + $0x20f] sm:$0xff]  ;;  %v2539_v10 = vld [vmem:[#allocation2 + $0x227] sm:$0xff] }
 0x235   : > { %3665 = vmatprep.mubr.bf16.mxu0 %v10046_v40  ;;  %7479 = vmatpush3.bf16.msra.mxu0 %v8451_v2  ;;  %v10075_v2 = vpack.c.bf16 %v2502_v18, %v2501_v60  ;;  %v10092_v34 = vpack.c.bf16 %v2538_v51, %v2537_v21  ;;  %v2505_v60 = vld [vmem:[#allocation2 + $0x1e9] sm:$0xff]  ;;  %v2506_v18 = vld [vmem:[#allocation2 + $0x1f1] sm:$0xff] }
 0x236   : > { %7480 = vmatprep.subr.bf16.mxu0 %v8452_v37  ;;  %v2535_v37 = vld [vmem:[#allocation2 + $0x1e7] sm:$0xff]  ;;  %v2508_v21 = vld [vmem:[#allocation2 + $0x211] sm:$0xff] }
 0x237   : > { %v2699_v12 = vld [vmem:[#allocation2 + $0x249] sm:$0xff]  ;;  %v2704_v46 = vld [vmem:[#allocation2 + $0x291] sm:$0xff] }
 0x238   : > { %v2708_v56 = vld [vmem:[#allocation2 + $0x2d1] sm:$0xff]  ;;  %v8497_v22 = vld [vmem:[#allocation3 + $0x168] sm:$0xff]  }
 0x239   : > { %7481 = vmatpush3.bf16.msra.mxu0 %v8453_v16  ;;  %v10082_v16 = vpack.c.bf16 %v2536_v45, %v2535_v37  ;;  %v2540_v37 = vld [vmem:[#allocation2 + $0x22f] sm:$0xff] }
 0x23a   : > { %v10103_v51 = vpack.c.bf16 %v2540_v37, %v2539_v10  ;;  %v2509_v10 = vld [vmem:[#allocation2 + $0x229] sm:$0xff]  ;;  %v2510_v37 = vld [vmem:[#allocation2 + $0x231] sm:$0xff] }
 0x23b   : > { %3513 = vmatmul.mubr.bf16.gmra.mxu1 %v10046_v40  ;;  %v10116_v7 = vpack.c.bf16 %v2510_v37, %v2509_v10  ;;  %v2831_v10 = vpack.c.bf16 %v9985_v33, %v9954_v29  ;;  %v2545_v37 = vld [vmem:[#allocation2 + $0x287] sm:$0xff] }
 0x23c   : > { %3666 = vmatmul.mubr.bf16.gmra.mxu0 %v10054_v61  ;;  %3520 = vmatprep.mubr.bf16.mxu1 %v2768_v38  ;;  %v10087_v38 = vpack.c.bf16 %v2504_v15, %v2503_v47  ;;  %v10098_v47 = vpack.c.bf16 %v2506_v18, %v2505_v60  ;;  %v2804_v15 = vpack.c.bf16 %v9841_v0, %v9815_v63  ;;  %v2541_v18 = vld [vmem:[#allocation2 + $0x247] sm:$0xff] }
 0x23d   : > { %3673 = vmatprep.mubr.bf16.mxu0 %v10059_v39  ;;  %v2813_v60 = vpack.c.bf16 %v9920_v57, %v9887_v28 }
 0x243   : > { %3521 = vmatmul.mubr.bf16.gmra.mxu1 %v10059_v39 }
 0x244   : > { %3674 = vmatmul.mubr.bf16.gmra.mxu0 %v10063_v30  ;;  %3528 = vmatprep.mubr.bf16.mxu1 %v10067_v31 }
 0x245   : > { %3681 = vmatprep.mubr.bf16.mxu0 %v10070_v41 }
 0x24a   : > { %v7146_v54 = vpop.f32.mrf.mxu1 }
 0x24b   : > { %3529 = vmatmul.mubr.bf16.gmra.mxu1 %v10070_v41 }
 0x24c   : > { %3682 = vmatmul.mubr.bf16.gmra.mxu0 %v10075_v2  ;;  %3536 = vmatprep.mubr.bf16.mxu1 %v10079_v43  ;;  %v7147_v4 = vpop.f32.mrf.mxu1 }
 0x24d   : > { %3689 = vmatprep.mubr.bf16.mxu0 %v10082_v16  ;;  %v10096_v45 = vadd.f32 %v7147_v4, %v7146_v54  ;;  %v2542_v54 = vld [vmem:[#allocation2 + $0x24f] sm:$0xff] }
 0x24e   : > { %v10112_v32 = vpack.c.bf16 %v2542_v54, %v2541_v18  ;;  %v2511_v54 = vld [vmem:[#allocation2 + $0x249] sm:$0xff] }
 0x24f   : > { %v2546_v18 = vld [vmem:[#allocation2 + $0x28f] sm:$0xff] }
 0x253   : > { %3537 = vmatmul.mubr.bf16.gmra.mxu1 %v10082_v16 }
 0x254   : > { %3690 = vmatmul.mubr.bf16.gmra.mxu0 %v10087_v38  ;;  %3544 = vmatprep.mubr.bf16.mxu1 %v2795_v50  ;;  %v2507_v50 = vld [vmem:[#allocation2 + $0x209] sm:$0xff] }
 0x255   : > { %3697 = vmatprep.mubr.bf16.mxu0 %v10092_v34  ;;  %v10107_v4 = vpack.c.bf16 %v2508_v21, %v2507_v50  ;;  %v2822_v50 = vpack.c.bf16 %v9903_v17, %v9873_v5  ;;  %v2543_v21 = vld [vmem:[#allocation2 + $0x267] sm:$0xff]  ;;  %v10130_v17 = vpack.c.bf16 %v2546_v18, %v2545_v37  ;;  %v2550_v37 = vld [vmem:[#allocation2 + $0x2cf] sm:$0xff] }
 0x256   : > { %v2515_v18 = vld [vmem:[#allocation2 + $0x289] sm:$0xff] }
 0x25b   : > { %3545 = vmatmul.mubr.bf16.gmra.mxu1 %v10092_v34 }
 0x25c   : > { %3698 = vmatmul.mubr.bf16.gmra.mxu0 %v10098_v47  ;;  %3552 = vmatprep.mubr.bf16.mxu1 %v2804_v15  ;;  %v2544_v15 = vld [vmem:[#allocation2 + $0x26f] sm:$0xff] }
 0x25d   : > { %3705 = vmatprep.mubr.bf16.mxu0 %v10103_v51  ;;  %v10121_v36 = vpack.c.bf16 %v2544_v15, %v2543_v21  ;;  %v2513_v15 = vld [vmem:[#allocation2 + $0x269] sm:$0xff] }
 0x25e   : > { %v2548_v21 = vld [vmem:[#allocation2 + $0x2af] sm:$0xff] }
 0x263   : > { %3553 = vmatmul.mubr.bf16.gmra.mxu1 %v10103_v51 }
 0x264   : > { %3706 = vmatmul.mubr.bf16.gmra.mxu0 %v10107_v4  ;;  %3560 = vmatprep.mubr.bf16.mxu1 %v2813_v60  ;;  %v2512_v60 = vld [vmem:[#allocation2 + $0x251] sm:$0xff] }
 0x265   : > { %3713 = vmatprep.mubr.bf16.mxu0 %v10112_v32  ;;  %v10125_v57 = vpack.c.bf16 %v2512_v60, %v2511_v54  ;;  %v2840_v54 = vpack.c.bf16 %v9970_v49, %v9936_v52  ;;  %v2547_v60 = vld [vmem:[#allocation2 + $0x2a7] sm:$0xff] }
 0x266   : > { %v10139_v33 = vpack.c.bf16 %v2548_v21, %v2547_v60  ;;  %v2517_v21 = vld [vmem:[#allocation2 + $0x2a9] sm:$0xff] }
 0x267   : > { %v2552_v60 = vld [vmem:[#allocation2 + $0x2ef] sm:$0xff] }
 0x26b   : > { %3561 = vmatmul.mubr.bf16.gmra.mxu1 %v10112_v32 }
 0x26c   : > { %3714 = vmatmul.mubr.bf16.gmra.mxu0 %v10116_v7  ;;  %3568 = vmatprep.mubr.bf16.mxu1 %v2822_v50  ;;  %v2514_v50 = vld [vmem:[#allocation2 + $0x271] sm:$0xff] }
 0x26d   : > { %3721 = vmatprep.mubr.bf16.mxu0 %v10121_v36  ;;  %v10134_v5 = vpack.c.bf16 %v2514_v50, %v2513_v15  ;;  %v2849_v15 = vpack.c.bf16 %v10027_v44, %v10004_v42  ;;  %v2549_v50 = vld [vmem:[#allocation2 + $0x2c7] sm:$0xff]  ;;  %v2650_v42 = vld [vmem:[#allocation2 + $0x130] sm:$0xff] }
 0x26e   : > { %v10148_v49 = vpack.c.bf16 %v2550_v37, %v2549_v50  ;;  %v2554_v37 = vld [vmem:[#allocation2 + $0x110] sm:$0xff]  ;;  %v2553_v44 = vld [vmem:[#allocation2 + $0x108] sm:$0xff] }
 0x26f   : > { %v2520_v50 = vld [vmem:[#allocation2 + $0x2d1] sm:$0xff]  ;;  %v2717_v28 = vpack.c.bf16 %v2554_v37, %v2553_v44  ;;  %v2651_v44 = vld [vmem:[#allocation2 + $0x148] sm:$0xff] }
 0x273   : > { %3569 = vmatmul.mubr.bf16.gmra.mxu1 %v10121_v36 }
 0x274   : > { %3722 = vmatmul.mubr.bf16.gmra.mxu0 %v10125_v57  ;;  %3576 = vmatprep.mubr.bf16.mxu1 %v2831_v10  ;;  %v2516_v10 = vld [vmem:[#allocation2 + $0x291] sm:$0xff] }
 0x275   : > { %3729 = vmatprep.mubr.bf16.mxu0 %v10130_v17  ;;  %v10143_v29 = vpack.c.bf16 %v2516_v10, %v2515_v18  ;;  %v2551_v18 = vld [vmem:[#allocation2 + $0x2e7] sm:$0xff] }
 0x276   : > { %v10155_v10 = vpack.c.bf16 %v2552_v60, %v2551_v18  ;;  %v2654_v18 = vld [vmem:[#allocation2 + $0x170] sm:$0xff] }
 0x27b   : > { %3577 = vmatmul.mubr.bf16.gmra.mxu1 %v10130_v17 }
 0x27c   : > { %3730 = vmatmul.mubr.bf16.gmra.mxu0 %v10134_v5  ;;  %3584 = vmatprep.mubr.bf16.mxu1 %v2840_v54  ;;  %v2518_v54 = vld [vmem:[#allocation2 + $0x2b1] sm:$0xff] }
 0x27d   : > { %3737 = vmatprep.mubr.bf16.mxu0 %v10139_v33  ;;  %v10152_v52 = vpack.c.bf16 %v2518_v54, %v2517_v21  ;;  %v2649_v21 = vld [vmem:[#allocation2 + $0x128] sm:$0xff]  ;;  %v8454_v54 = vld [vmem:[%s11342_s3 + $0x230] sm:$0xff]  }
 0x27e   : > { %v2720_v60 = vpack.c.bf16 %v2650_v42, %v2649_v21  ;;  %v2729_v42 = vpack.c.bf16 %v9861_v48, %v2651_v44  ;;  %v8460_v21 = vld [vmem:[%s11342_s3 + $0x200] sm:$0xff]  }
 0x283   : > { %3585 = vmatmul.mubr.bf16.gmra.mxu1 %v10139_v33 }
 0x284   : > { %3738 = vmatmul.mubr.bf16.gmra.mxu0 %v10143_v29  ;;  %3592 = vmatprep.mubr.bf16.mxu1 %v2849_v15  ;;  %v2519_v15 = vld [vmem:[#allocation2 + $0x2c9] sm:$0xff] }
 0x285   : > { %3745 = vmatprep.mubr.bf16.mxu0 %v10148_v49  ;;  %v10160_v0 = vpack.c.bf16 %v2520_v50, %v2519_v15  ;;  %v2653_v15 = vld [vmem:[#allocation2 + $0x168] sm:$0xff]  ;;  %v8458_v50 = vld [vmem:[%s11342_s3 + $0x210] sm:$0xff]  }
 0x28b   : > { %3593 = vmatmul.mubr.bf16.gmra.mxu1 %v10148_v49 }
 0x28c   : > { %3746 = vmatmul.mubr.bf16.gmra.mxu0 %v10152_v52  ;;  %3794 = vmatprep.mubr.bf16.mxu1 %v9946_v3  ;;  %v8455_v3 = vld [vmem:[%s11342_s3 + $0x228] sm:$0xff]  }
 0x28d   : > { %3753 = vmatprep.mubr.bf16.mxu0 %v10155_v10 }
 0x293   : > { %3795 = vmatmul.mubr.bf16.vlgmr.msra.gmra.mxu1 %v2717_v28  ;;  %v8456_v28 = vld [vmem:[%s11342_s3 + $0x220] sm:$0xff]  }
 0x294   : > { %3754 = vmatmul.mubr.bf16.gmra.mxu0 %v10160_v0  ;;  %3802 = vmatprep.mubr.bf16.mxu1 %v10008_v24  ;;  %v8457_v24 = vld [vmem:[%s11342_s3 + $0x218] sm:$0xff]  }
 0x295   : > { %3955 = vmatprep.mubr.bf16.mxu0 %v2720_v60  ;;  %8132 = vmatpush3.bf16.msra.mxu1 %v9850_v59  ;;  %v2558_v59 = vld [vmem:[#allocation2 + $0x150] sm:$0xff] }
 0x296   : > { %8133 = vmatprep.subr.bf16.mxu1 %v8454_v54  ;;  %v2735_v37 = vpack.c.bf16 %v2558_v59, %v2651_v44 }
 0x299   : > { %8134 = vmatpush3.bf16.msra.mxu1 %v8454_v54 }
 0x29a   : > { %8135 = vmatprep.subr.bf16.mxu1 %v8455_v3 }
 0x29b   : > { %3803 = vmatmul.mubr.bf16.gmra.mxu1 %v2720_v60  ;;  %v2657_v60 = vld [vmem:[#allocation2 + $0x1a8] sm:$0xff] }
 0x29c   : > { %3956 = vmatmul.mubr.bf16.vlgmr.msra.gmra.mxu0 %v9900_v9  ;;  %3810 = vmatprep.mubr.bf16.mxu1 %v10036_v55  ;;  %v2738_v9 = vpack.c.bf16 %v2654_v18, %v2653_v15  ;;  %v8459_v55 = vld [vmem:[%s11342_s3 + $0x208] sm:$0xff]   ;;  %v2670_v15 = vld [vmem:[#allocation2 + $0x270] sm:$0xff] }
 0x29d   : > { %3963 = vmatprep.mubr.bf16.mxu0 %v2729_v42  ;;  %8136 = vmatpush3.bf16.msra.mxu1 %v8455_v3 }
 0x29e   : > { %8137 = vmatprep.subr.bf16.mxu1 %v8456_v28 }
 0x2a1   : > { %8138 = vmatpush3.bf16.msra.mxu1 %v8456_v28 }
 0x2a2   : > { %8139 = vmatprep.subr.bf16.mxu1 %v8457_v24 }
 0x2a3   : > { %3811 = vmatmul.mubr.bf16.gmra.mxu1 %v2735_v37 }
 0x2a4   : > { %3964 = vmatmul.mubr.bf16.gmra.mxu0 %v9967_v58  ;;  %3818 = vmatprep.mubr.bf16.mxu1 %v10054_v61  ;;  %v2561_v58 = vld [vmem:[#allocation2 + $0x188] sm:$0xff]  ;;  %v2658_v61 = vld [vmem:[#allocation2 + $0x1b0] sm:$0xff] }
 0x2a5   : > { %3971 = vmatprep.mubr.bf16.mxu0 %v2738_v9  ;;  %8140 = vmatpush3.bf16.msra.mxu1 %v8457_v24  ;;  %v2753_v54 = vpack.c.bf16 %v9923_v62, %v2561_v58  ;;  %v2756_v3 = vpack.c.bf16 %v2658_v61, %v2657_v60 }
 0x2a6   : > { %8141 = vmatprep.subr.bf16.mxu1 %v8458_v50 }
 0x2a9   : > { %8142 = vmatpush3.bf16.msra.mxu1 %v8458_v50 }
 0x2aa   : > { %8143 = vmatprep.subr.bf16.mxu1 %v8459_v55 }
 0x2ab   : > { %3819 = vmatmul.mubr.bf16.gmra.mxu1 %v2738_v9 }
 0x2ac   : > { %3972 = vmatmul.mubr.bf16.gmra.mxu0 %v10016_v11  ;;  %3826 = vmatprep.mubr.bf16.mxu1 %v10063_v30  ;;  %v2664_v11 = vld [vmem:[#allocation2 + $0x210] sm:$0xff]  ;;  %v2665_v30 = vld [vmem:[#allocation2 + $0x228] sm:$0xff] }
 0x2ad   : > { %3979 = vmatprep.mubr.bf16.mxu0 %v10040_v20  ;;  %8144 = vmatpush3.bf16.msra.mxu1 %v8459_v55  ;;  %v2663_v20 = vld [vmem:[#allocation2 + $0x208] sm:$0xff] }
 0x2ae   : > { %8145 = vmatprep.subr.bf16.mxu1 %v8460_v21 }
 0x2b1   : > { %8146 = vmatpush3.bf16.msra.mxu1 %v8460_v21 }
 0x2b3   : > { %3827 = vmatmul.mubr.bf16.gmra.mxu1 %v2753_v54 }
 0x2b4   : > { %3980 = vmatmul.mubr.bf16.gmra.mxu0 %v10046_v40  ;;  %3834 = vmatprep.mubr.bf16.mxu1 %v10075_v2  ;;  %v2783_v40 = vpack.c.bf16 %v2664_v11, %v2663_v20  ;;  %v2668_v2 = vld [vmem:[#allocation2 + $0x250] sm:$0xff] }
 0x2b5   : > { %3987 = vmatprep.mubr.bf16.mxu0 %v2756_v3 }
 0x2bb   : > { %3835 = vmatmul.mubr.bf16.gmra.mxu1 %v2756_v3  ;;  %v8462_v3 = vld [vmem:[#allocation3 + $0x38] sm:$0xff]  }
 0x2bc   : > { %3988 = vmatmul.mubr.bf16.gmra.mxu0 %v10059_v39  ;;  %3842 = vmatprep.mubr.bf16.mxu1 %v10087_v38  ;;  %v2666_v39 = vld [vmem:[#allocation2 + $0x230] sm:$0xff] }
 0x2bd   : > { %3995 = vmatprep.mubr.bf16.mxu0 %v10067_v31 }
 0x2c3   : > { %3843 = vmatmul.mubr.bf16.gmra.mxu1 %v10067_v31  ;;  %v2792_v31 = vpack.c.bf16 %v2666_v39, %v2665_v30 }
 0x2c4   : > { %3996 = vmatmul.mubr.bf16.gmra.mxu0 %v10070_v41  ;;  %3850 = vmatprep.mubr.bf16.mxu1 %v10098_v47  ;;  %v7149_v41 = vpop.f32.mrf.mxu1  ;;  %v2667_v47 = vld [vmem:[#allocation2 + $0x248] sm:$0xff] }
 0x2c5   : > { %4003 = vmatprep.mubr.bf16.mxu0 %v10079_v43  ;;  %v2801_v44 = vpack.c.bf16 %v2668_v2, %v2667_v47 }
 0x2c6   : > { %v7150_v38 = vpop.f32.mrf.mxu1 }
 0x2c7   : > { %v7151_v59 = vadd.f32 %v7150_v38, %v7149_v41  ;;  %v2672_v38 = vld [vmem:[#allocation2 + $0x290] sm:$0xff] }
 0x2cb   : > { %3851 = vmatmul.mubr.bf16.gmra.mxu1 %v10079_v43 }
 0x2cc   : > { %4004 = vmatmul.mubr.bf16.gmra.mxu0 %v10082_v16  ;;  %3858 = vmatprep.mubr.bf16.mxu1 %v10107_v4  ;;  %v10212_v16 = vld [vmem:[%s11343_s4] ss:$0 sm:$0xff] }
 0x2cd   : > { %4011 = vmatprep.mubr.bf16.mxu0 %v2783_v40  ;;  %v3475_v42 = vadd.f32 %v10096_v45, %v10212_v16  ;;  %v8461_v45 = vld [vmem:[#allocation3 + $0x78] sm:$0xff]  }
 0x2ce   : > { %7602 = vmatprep.subr.bf16.mxu0 %v8461_v45 }
 0x2cf   : > { %7603 = vmatpush3.bf16.msra.mxu0 %v8462_v3 }
 0x2d3   : > { %3859 = vmatmul.mubr.bf16.gmra.mxu1 %v2783_v40 }
 0x2d4   : > { %4012 = vmatmul.mubr.bf16.gmra.mxu0 %v10092_v34  ;;  %3866 = vmatprep.mubr.bf16.mxu1 %v10116_v7 }
 0x2d5   : > { %4019 = vmatprep.mubr.bf16.mxu0 %v2792_v31 }
 0x2db   : > { %v7152_v43 = vpop.f32.mrf.mxu1  ;;  %3867 = vmatmul.mubr.bf16.gmra.mxu1 %v2792_v31 }
 0x2dc   : > { %v7258_v4 = vpop.f32.mrf.mxu0  ;;  %4020 = vmatmul.mubr.bf16.gmra.mxu0 %v10103_v51  ;;  %3874 = vmatprep.mubr.bf16.mxu1 %v10125_v57  ;;  %v2669_v51 = vld [vmem:[#allocation2 + $0x268] sm:$0xff]  ;;  %v3478_v57 = vadd.f32 %v7151_v59, %v10212_v16 }
 0x2dd   : > { %4027 = vmatprep.mubr.bf16.mxu0 %v2801_v44  ;;  %v7153_v7 = vpop.f32.mrf.mxu1  ;;  %v2810_v54 = vpack.c.bf16 %v2670_v15, %v2669_v51  ;;  %v2674_v51 = vld [vmem:[#allocation2 + $0x2b0] sm:$0xff] }
 0x2de   : > { %v7154_v34 = vadd.f32 %v7153_v7, %v7152_v43  ;;  %v7259_v28 = vpop.f32.mrf.mxu0 }
 0x2df   : > { %v7260_v24 = vadd.f32 %v7259_v28, %v7258_v4  ;;  %v7155_v18 = vpop.f32.mrf.mxu1 }
 0x2e0   : > { %v7261_v37 = vpop.f32.mrf.mxu0  ;;  %v3483_v30 = vadd.f32 %v7154_v34, %v10212_v16 }
 0x2e1   : > { %v10218_v50 = vadd.f32 %v7260_v24, %v3475_v42  ;;  %v7156_v9 = vpop.f32.mrf.mxu1 }
 0x2e2   : > { %v7157_v55 = vadd.f32 %v7156_v9, %v7155_v18  ;;  %v7262_v21 = vpop.f32.mrf.mxu0 }
 0x2e3   : > { %v7263_v58 = vadd.f32 %v7262_v21, %v7261_v37  ;;  %v7158_v61 = vpop.f32.mrf.mxu1  ;;  %3875 = vmatmul.mubr.bf16.gmra.mxu1 %v2801_v44  ;;  %v2671_v44 = vld [vmem:[#allocation2 + $0x288] sm:$0xff] }
 0x2e4   : > { %v7264_v60 = vpop.f32.mrf.mxu0  ;;  %4028 = vmatmul.mubr.bf16.gmra.mxu0 %v10112_v32  ;;  %3882 = vmatprep.mubr.bf16.mxu1 %v10134_v5  ;;  %v3486_v4 = vadd.f32 %v7157_v55, %v10212_v16  ;;  %v2819_v42 = vpack.c.bf16 %v2672_v38, %v2671_v44  ;;  %v2676_v44 = vld [vmem:[#allocation2 + $0x2d0] sm:$0xff] }
 0x2e5   : > { %v10223_v11 = vadd.f32 %v7263_v58, %v3478_v57  ;;  %4035 = vmatprep.mubr.bf16.mxu0 %v2810_v54  ;;  %v7159_v20 = vpop.f32.mrf.mxu1 }
 0x2e6   : > { %v7160_v40 = vadd.f32 %v7159_v20, %v7158_v61  ;;  %v7265_v39 = vpop.f32.mrf.mxu0 }
 0x2e7   : > { %v7266_v31 = vadd.f32 %v7265_v39, %v7264_v60  ;;  %v7161_v41 = vpop.f32.mrf.mxu1  ;;  %v8464_v39 = vld [vmem:[#allocation3 + $0x30] sm:$0xff]  }
 0x2e8   : > { %v7267_v2 = vpop.f32.mrf.mxu0  ;;  %v3491_v15 = vadd.f32 %v7160_v40, %v10212_v16  ;;  %v8463_v40 = vld [vmem:[#allocation3 + $0x70] sm:$0xff]  }
 0x2e9   : > { %v10226_v47 = vadd.f32 %v7266_v31, %v3483_v30  ;;  %v7162_v32 = vpop.f32.mrf.mxu1  ;;  %7604 = vmatprep.subr.bf16.mxu0 %v8463_v40  ;;  %v2677_v40 = vld [vmem:[#allocation2 + $0x2e8] sm:$0xff] }
 0x2ea   : > { %v7163_v5 = vadd.f32 %v7162_v32, %v7161_v41  ;;  %v7268_v43 = vpop.f32.mrf.mxu0  ;;  %7605 = vmatpush3.bf16.msra.mxu0 %v8464_v39 }
 0x2eb   : > { %v7269_v7 = vadd.f32 %v7268_v43, %v7267_v2  ;;  %v7164_v28 = vpop.f32.mrf.mxu1  ;;  %3883 = vmatmul.mubr.bf16.gmra.mxu1 %v2810_v54 }
 0x2ec   : > { %v7270_v59 = vpop.f32.mrf.mxu0  ;;  %4036 = vmatmul.mubr.bf16.gmra.mxu0 %v10121_v36  ;;  %3890 = vmatprep.mubr.bf16.mxu1 %v10143_v29  ;;  %v2673_v36 = vld [vmem:[#allocation2 + $0x2a8] sm:$0xff]  ;;  %v3494_v29 = vadd.f32 %v7163_v5, %v10212_v16 }
 0x2ed   : > { %v10231_v34 = vadd.f32 %v7269_v7, %v3486_v4  ;;  %4043 = vmatprep.mubr.bf16.mxu0 %v2819_v42  ;;  %v7165_v24 = vpop.f32.mrf.mxu1  ;;  %v2828_v3 = vpack.c.bf16 %v2674_v51, %v2673_v36  ;;  %v2616_v36 = vld [vmem:[#allocation2 + $0x2f1] sm:$0xff] }
 0x2ee   : > { %v7166_v18 = vadd.f32 %v7165_v24, %v7164_v28  ;;  %v7271_v37 = vpop.f32.mrf.mxu0  ;;  %v2675_v28 = vld [vmem:[#allocation2 + $0x2c8] sm:$0xff] }
 0x2ef   : > { %v7272_v9 = vadd.f32 %v7271_v37, %v7270_v59  ;;  %v7167_v21 = vpop.f32.mrf.mxu1  ;;  %v2837_v37 = vpack.c.bf16 %v2676_v44, %v2675_v28 }
 0x2f0   : > { %v7273_v55 = vpop.f32.mrf.mxu0  ;;  %v3499_v38 = vadd.f32 %v7166_v18, %v10212_v16 }
 0x2f1   : > { %v10234_v57 = vadd.f32 %v7272_v9, %v3491_v15  ;;  %v7168_v58 = vpop.f32.mrf.mxu1 }
 0x2f2   : > { %v7169_v61 = vadd.f32 %v7168_v58, %v7167_v21  ;;  %v7274_v54 = vpop.f32.mrf.mxu0 }
 0x2f3   : > { %v7275_v60 = vadd.f32 %v7274_v54, %v7273_v55  ;;  %v7170_v45 = vpop.f32.mrf.mxu1  ;;  %3891 = vmatmul.mubr.bf16.gmra.mxu1 %v2819_v42 }
 0x2f4   : > { %v7276_v20 = vpop.f32.mrf.mxu0  ;;  %4044 = vmatmul.mubr.bf16.gmra.mxu0 %v10130_v17  ;;  %3898 = vmatprep.mubr.bf16.mxu1 %v10152_v52  ;;  %v3502_v42 = vadd.f32 %v7169_v61, %v10212_v16  ;;  %v2615_v61 = vld [vmem:[#allocation2 + $0x2e9] sm:$0xff] }
 0x2f5   : > { %v10239_v30 = vadd.f32 %v7275_v60, %v3494_v29  ;;  %4051 = vmatprep.mubr.bf16.mxu0 %v2828_v3  ;;  %v7171_v31 = vpop.f32.mrf.mxu1  ;;  %v2678_v60 = vld [vmem:[#allocation2 + $0x2f0] sm:$0xff] }
 0x2f6   : > { %v7172_v41 = vadd.f32 %v7171_v31, %v7170_v45  ;;  %v7277_v2 = vpop.f32.mrf.mxu0 }
 0x2f7   : > { %v7278_v32 = vadd.f32 %v7277_v2, %v7276_v20  ;;  %v7173_v5 = vpop.f32.mrf.mxu1 }
 0x2f8   : > { %v7279_v43 = vpop.f32.mrf.mxu0  ;;  %v3507_v51 = vadd.f32 %v7172_v41, %v10212_v16  ;;  %v2846_v41 = vpack.c.bf16 %v2678_v60, %v2677_v40  ;;  %v2648_v40 = vld [vmem:[#allocation2 + $0x30f] sm:$0xff] }
 0x2f9   : > { %v10242_v4 = vadd.f32 %v7278_v32, %v3499_v38  ;;  %v7174_v17 = vpop.f32.mrf.mxu1  ;;  %v8465_v32 = vld [vmem:[#allocation3 + $0x68] sm:$0xff]  }
 0x2fa   : > { %v7175_v52 = vadd.f32 %v7174_v17, %v7173_v5  ;;  %v7280_v7 = vpop.f32.mrf.mxu0  ;;  %v8466_v5 = vld [vmem:[#allocation3 + $0x28] sm:$0xff]   ;;  %7606 = vmatprep.subr.bf16.mxu0 %v8465_v32 }
 0x2fb   : > { %v7281_v59 = vadd.f32 %v7280_v7, %v7279_v43  ;;  %v7176_v24 = vpop.f32.mrf.mxu1  ;;  %3899 = vmatmul.mubr.bf16.gmra.mxu1 %v2828_v3  ;;  %7607 = vmatpush3.bf16.msra.mxu0 %v8466_v5 }
 0x2fc   : > { %v7282_v15 = vpop.f32.mrf.mxu0  ;;  %4052 = vmatmul.mubr.bf16.gmra.mxu0 %v10139_v33  ;;  %3906 = vmatprep.mubr.bf16.mxu1 %v10160_v0  ;;  %v10252_v0 = vpack.c.bf16 %v2616_v36, %v2615_v61  ;;  %v3510_v39 = vadd.f32 %v7175_v52, %v10212_v16 }
 0x2fd   : > { %v10247_v18 = vadd.f32 %v7281_v59, %v3502_v42  ;;  %4059 = vmatprep.mubr.bf16.mxu0 %v2837_v37  ;;  %v7177_v9 = vpop.f32.mrf.mxu1  ;;  %v2681_v59 = vld [vmem:[#allocation2 + $0x129] sm:$0xff] }
 0x2fe   : > { %v7178_v21 = vadd.f32 %v7177_v9, %v7176_v24  ;;  %v7283_v55 = vpop.f32.mrf.mxu0  ;;  %v2682_v24 = vld [vmem:[#allocation2 + $0x131] sm:$0xff]  ;;  %v8542_v9 = vld [vmem:[#allocation2] sm:$0xff] }
 0x2ff   : > { %v7284_v58 = vadd.f32 %v7283_v55, %v7282_v15  ;;  %v7179_v54 = vpop.f32.mrf.mxu1  ;;  %v10262_v55 = vpack.c.bf16 %v8542_v9, %v8542_v9 }
 0x300   : > { %v7285_v29 = vpop.f32.mrf.mxu0  ;;  %v3515_v52 = vadd.f32 %v7178_v21, %v10212_v16 }
 0x301   : > { %v10250_v45 = vadd.f32 %v7284_v58, %v3507_v51  ;;  %v7180_v3 = vpop.f32.mrf.mxu1 }
 0x302   : > { %v7181_v33 = vadd.f32 %v7180_v3, %v7179_v54  ;;  %v7286_v20 = vpop.f32.mrf.mxu0  ;;  %v2721_v54 = vpack.c.bf16 %v2682_v24, %v2681_v59 }
 0x303   : > { %v7287_v31 = vadd.f32 %v7286_v20, %v7285_v29  ;;  %v7182_v2 = vpop.f32.mrf.mxu1  ;;  %3907 = vmatmul.mubr.bf16.gmra.mxu1 %v2837_v37  ;;  %v2647_v20 = vld [vmem:[#allocation2 + $0x307] sm:$0xff] }
 0x304   : > { %v7288_v38 = vpop.f32.mrf.mxu0  ;;  %4060 = vmatmul.mubr.bf16.gmra.mxu0 %v10148_v49  ;;  %3914 = vmatprep.mubr.bf16.mxu1 %v10252_v0  ;;  %v3518_v61 = vadd.f32 %v7181_v33, %v10212_v16 }
 0x305   : > { %v10257_v43 = vadd.f32 %v7287_v31, %v3510_v39  ;;  %4067 = vmatprep.mubr.bf16.mxu0 %v2846_v41  ;;  %v7183_v44 = vpop.f32.mrf.mxu1 }
 0x306   : > { %v7184_v17 = vadd.f32 %v7183_v44, %v7182_v2  ;;  %v7289_v7 = vpop.f32.mrf.mxu0  ;;  %v2683_v2 = vld [vmem:[#allocation2 + $0x149] sm:$0xff]  ;;  %v2686_v44 = vld [vmem:[#allocation2 + $0x171] sm:$0xff] }
 0x307   : > { %v7290_v28 = vadd.f32 %v7289_v7, %v7288_v38  ;;  %v7185_v42 = vpop.f32.mrf.mxu1  ;;  %v2684_v38 = vld [vmem:[#allocation2 + $0x151] sm:$0xff] }
 0x308   : > { %v7291_v37 = vpop.f32.mrf.mxu0  ;;  %v3523_v33 = vadd.f32 %v7184_v17, %v10212_v16  ;;  %v8467_v17 = vld [vmem:[#allocation3 + $0x60] sm:$0xff]  }
 0x309   : > { %v10260_v49 = vadd.f32 %v7290_v28, %v3515_v52  ;;  %v7186_v15 = vpop.f32.mrf.mxu1  ;;  %7608 = vmatprep.subr.bf16.mxu0 %v8467_v17  ;;  %v2691_v17 = vld [vmem:[#allocation2 + $0x1c9] sm:$0xff] }
 0x30a   : > { %v7187_v51 = vadd.f32 %v7186_v15, %v7185_v42  ;;  %v7292_v58 = vpop.f32.mrf.mxu0  ;;  %v2730_v42 = vpack.c.bf16 %v2684_v38, %v2683_v2  ;;  %v2689_v38 = vld [vmem:[#allocation2 + $0x1a9] sm:$0xff] }
 0x30b   : > { %v7293_v36 = vadd.f32 %v7292_v58, %v7291_v37  ;;  %v7188_v29 = vpop.f32.mrf.mxu1  ;;  %3915 = vmatmul.mubr.bf16.gmra.mxu1 %v2846_v41  ;;  %v2685_v41 = vld [vmem:[#allocation2 + $0x169] sm:$0xff] }
 0x30c   : > { %v7294_v21 = vpop.f32.mrf.mxu0  ;;  %4068 = vmatmul.mubr.bf16.gmra.mxu0 %v10155_v10  ;;  %8147 = vmatprep.mubr.bf16.mxu1 %v2721_v54  ;;  %v2854_v10 = vpack.c.bf16 %v2648_v40, %v2647_v20  ;;  %v2739_v37 = vpack.c.bf16 %v2686_v44, %v2685_v41  ;;  %v3526_v15 = vadd.f32 %v7187_v51, %v10212_v16  ;;  %v2687_v20 = vld [vmem:[#allocation2 + $0x189] sm:$0xff]  ;;  %v2688_v40 = vld [vmem:[#allocation2 + $0x191] sm:$0xff] }
 0x30d   : > { %v10266_v60 = vadd.f32 %v7293_v36, %v3518_v61  ;;  %v7189_v3 = vpop.f32.mrf.mxu1  ;;  %4075 = vmatprep.mubr.bf16.mxu0 %v10262_v55  ;;  %v8468_v61 = vld [vmem:[#allocation3 + $0x20] sm:$0xff]   ;;  %v2748_v44 = vpack.c.bf16 %v2688_v40, %v2687_v20  ;;  %v2693_v40 = vld [vmem:[#allocation2 + $0x1e9] sm:$0xff] }
 0x30e   : > { %v7190_v39 = vadd.f32 %v7189_v3, %v7188_v29  ;;  %v7295_v31 = vpop.f32.mrf.mxu0  ;;  %7609 = vmatpush3.bf16.msra.mxu0 %v8468_v61  ;;  %v2692_v61 = vld [vmem:[#allocation2 + $0x1d1] sm:$0xff] }
 0x30f   : > { %v7296_v32 = vadd.f32 %v7295_v31, %v7294_v21  ;;  %v7191_v5 = vpop.f32.mrf.mxu1 }
 0x310   : > { %v7297_v7 = vpop.f32.mrf.mxu0  ;;  %v3531_v31 = vadd.f32 %v7190_v39, %v10212_v16 }
 0x311   : > { %v10270_v52 = vadd.f32 %v7296_v32, %v3523_v33  ;;  %v7192_v28 = vpop.f32.mrf.mxu1  ;;  %v2690_v33 = vld [vmem:[#allocation2 + $0x1b1] sm:$0xff] }
 0x312   : > { %v7193_v59 = vadd.f32 %v7192_v28, %v7191_v5  ;;  %v7298_v24 = vpop.f32.mrf.mxu0  ;;  %v2757_v28 = vpack.c.bf16 %v2690_v33, %v2689_v38  ;;  %v2766_v38 = vpack.c.bf16 %v2692_v61, %v2691_v17 }
 0x313   : > { %v7299_v9 = vadd.f32 %v7298_v24, %v7297_v7  ;;  %v7194_v58 = vpop.f32.mrf.mxu1  ;;  %8148 = vmatmul.mubr.bf16.vlgmr.msra.gmra.mxu1 %v2730_v42 }
 0x314   : > { %v7300_v54 = vpop.f32.mrf.mxu0  ;;  %4076 = vmatmul.mubr.bf16.gmra.mxu0 %v2854_v10  ;;  %8151 = vmatprep.mubr.bf16.mxu1 %v2739_v37  ;;  %v3534_v42 = vadd.f32 %v7193_v59, %v10212_v16 }
 0x315   : > { %v10273_v36 = vadd.f32 %v7299_v9, %v3526_v15  ;;  %v7195_v29 = vpop.f32.mrf.mxu1  ;;  %5356 = vmatprep.mubr.bf16.mxu0 %v10262_v55  ;;  %v8490_v55 = vld [vmem:[#allocation3 + $0x178] sm:$0xff]  }
 0x316   : > { %v7196_v21 = vadd.f32 %v7195_v29, %v7194_v58  ;;  %v7301_v3 = vpop.f32.mrf.mxu0 }
 0x317   : > { %v7302_v2 = vadd.f32 %v7301_v3, %v7300_v54  ;;  %v7197_v51 = vpop.f32.mrf.mxu1 }
 0x318   : > { %v7303_v32 = vpop.f32.mrf.mxu0  ;;  %v3539_v29 = vadd.f32 %v7196_v21, %v10212_v16  ;;  %v8469_v21 = vld [vmem:[#allocation3 + $0x58] sm:$0xff]  }
 0x319   : > { %v10276_v5 = vadd.f32 %v7302_v2, %v3531_v31  ;;  %v7198_v41 = vpop.f32.mrf.mxu1  ;;  %v2694_v31 = vld [vmem:[#allocation2 + $0x1f1] sm:$0xff]  ;;  %7610 = vmatprep.subr.bf16.mxu0 %v8469_v21 }
 0x31a   : > { %v7199_v7 = vadd.f32 %v7198_v41, %v7197_v51  ;;  %v7304_v10 = vpop.f32.mrf.mxu0  ;;  %v2775_v41 = vpack.c.bf16 %v2694_v31, %v2693_v40  ;;  %v2698_v40 = vld [vmem:[#allocation2 + $0x231] sm:$0xff] }
 0x31b   : > { %v7305_v24 = vadd.f32 %v7304_v10, %v7303_v32  ;;  %v7200_v37 = vpop.f32.mrf.mxu1  ;;  %8152 = vmatmul.mubr.bf16.gmra.mxu1 %v2748_v44 }
 0x31c   : > { %v7306_v15 = vpop.f32.mrf.mxu0  ;;  %8155 = vmatprep.mubr.bf16.mxu1 %v2757_v28  ;;  %v3542_v44 = vadd.f32 %v7199_v7, %v10212_v16  ;;  %v2697_v7 = vld [vmem:[#allocation2 + $0x229] sm:$0xff] }
 0x31d   : > { %v10279_v39 = vadd.f32 %v7305_v24, %v3534_v42  ;;  %v7201_v9 = vpop.f32.mrf.mxu1  ;;  %v8470_v24 = vld [vmem:[#allocation3 + $0x18] sm:$0xff]  }
 0x31e   : > { %v7202_v58 = vadd.f32 %v7201_v9, %v7200_v37  ;;  %v7307_v54 = vpop.f32.mrf.mxu0  ;;  %7611 = vmatpush3.bf16.msra.mxu0 %v8470_v24 }
 0x31f   : > { %v7308_v3 = vadd.f32 %v7307_v54, %v7306_v15  ;;  %v7203_v20 = vpop.f32.mrf.mxu1 }
 0x320   : > { %v7309_v2 = vpop.f32.mrf.mxu0  ;;  %v3547_v17 = vadd.f32 %v7202_v58, %v10212_v16 }
 0x321   : > { %v10282_v59 = vadd.f32 %v7308_v3, %v3539_v29  ;;  %v7204_v51 = vpop.f32.mrf.mxu1  ;;  %v2695_v29 = vld [vmem:[#allocation2 + $0x209] sm:$0xff]  ;;  %v2696_v3 = vld [vmem:[#allocation2 + $0x211] sm:$0xff] }
 0x322   : > { %v7205_v33 = vadd.f32 %v7204_v51, %v7203_v20  ;;  %v7310_v32 = vpop.f32.mrf.mxu0 }
 0x323   : > { %v7311_v10 = vadd.f32 %v7310_v32, %v7309_v2  ;;  %v7206_v28 = vpop.f32.mrf.mxu1  ;;  %8156 = vmatmul.mubr.bf16.gmra.mxu1 %v2766_v38  ;;  %v2784_v38 = vpack.c.bf16 %v2696_v3, %v2695_v29 }
 0x324   : > { %v7312_v42 = vpop.f32.mrf.mxu0  ;;  %8159 = vmatprep.mubr.bf16.mxu1 %v2775_v41 }
 0x325   : > { %v10285_v37 = vadd.f32 %v7311_v10, %v3542_v44  ;;  %v7207_v15 = vpop.f32.mrf.mxu1  ;;  %v2793_v44 = vpack.c.bf16 %v2698_v40, %v2697_v7  ;;  %v3550_v10 = vadd.f32 %v7205_v33, %v10212_v16  ;;  %v2702_v7 = vld [vmem:[#allocation2 + $0x271] sm:$0xff] }
 0x326   : > { %v7208_v9 = vadd.f32 %v7207_v15, %v7206_v28  ;;  %v7313_v54 = vpop.f32.mrf.mxu0 }
 0x327   : > { %v7314_v61 = vadd.f32 %v7313_v54, %v7312_v42  ;;  %v7209_v20 = vpop.f32.mrf.mxu1 }
 0x328   : > { %v7315_v31 = vpop.f32.mrf.mxu0 }
 0x329   : > { %v10288_v2 = vadd.f32 %v7314_v61, %v3547_v17  ;;  %v7210_v51 = vpop.f32.mrf.mxu1  ;;  %v2700_v17 = vld [vmem:[#allocation2 + $0x251] sm:$0xff]  ;;  %v3555_v61 = vadd.f32 %v7208_v9, %v10212_v16 }
 0x32a   : > { %v7211_v32 = vadd.f32 %v7210_v51, %v7209_v20  ;;  %v7316_v41 = vpop.f32.mrf.mxu0  ;;  %v2701_v20 = vld [vmem:[#allocation2 + $0x269] sm:$0xff]  ;;  %v2802_v51 = vpack.c.bf16 %v2700_v17, %v2699_v12 }
 0x32b   : > { %v7317_v28 = vadd.f32 %v7316_v41, %v7315_v31  ;;  %v7212_v15 = vpop.f32.mrf.mxu1  ;;  %8160 = vmatmul.mubr.bf16.gmra.mxu1 %v2784_v38  ;;  %v8471_v9 = vld [vmem:[#allocation3 + $0x50] sm:$0xff]  }
 0x32c   : > { %v7318_v21 = vpop.f32.mrf.mxu0  ;;  %8163 = vmatprep.mubr.bf16.mxu1 %v2793_v44  ;;  %v2811_v44 = vpack.c.bf16 %v2702_v7, %v2701_v20  ;;  %7612 = vmatprep.subr.bf16.mxu0 %v8471_v9  ;;  %v2706_v20 = vld [vmem:[#allocation2 + $0x2b1] sm:$0xff] }
 0x32d   : > { %v10291_v58 = vadd.f32 %v7317_v28, %v3550_v10  ;;  %v7213_v42 = vpop.f32.mrf.mxu1  ;;  %v3558_v10 = vadd.f32 %v7211_v32, %v10212_v16  ;;  %v2705_v32 = vld [vmem:[#allocation2 + $0x2a9] sm:$0xff] }
 0x32e   : > { %v7214_v54 = vadd.f32 %v7213_v42, %v7212_v15  ;;  %v7319_v24 = vpop.f32.mrf.mxu0 }
 0x32f   : > { %v7320_v29 = vadd.f32 %v7319_v24, %v7318_v21  ;;  %v7215_v3 = vpop.f32.mrf.mxu1  ;;  %v8472_v21 = vld [vmem:[#allocation3 + $0x10] sm:$0xff]  }
 0x330   : > { %v7321_v40 = vpop.f32.mrf.mxu0  ;;  %v3563_v12 = vadd.f32 %v7214_v54, %v10212_v16  ;;  %7613 = vmatpush3.bf16.msra.mxu0 %v8472_v21  ;;  %v2707_v21 = vld [vmem:[#allocation2 + $0x2c9] sm:$0xff] }
 0x331   : > { %v10294_v33 = vadd.f32 %v7320_v29, %v3555_v61  ;;  %v7216_v31 = vpop.f32.mrf.mxu1  ;;  %v2703_v29 = vld [vmem:[#allocation2 + $0x289] sm:$0xff] }
 0x332   : > { %v7217_v38 = vadd.f32 %v7216_v31, %v7215_v3  ;;  %v7322_v41 = vpop.f32.mrf.mxu0 }
 0x333   : > { %v7323_v28 = vadd.f32 %v7322_v41, %v7321_v40  ;;  %v7218_v15 = vpop.f32.mrf.mxu1  ;;  %8164 = vmatmul.mubr.bf16.gmra.mxu1 %v2802_v51  ;;  %v2820_v51 = vpack.c.bf16 %v2704_v46, %v2703_v29 }
 0x334   : > { %v7324_v42 = vpop.f32.mrf.mxu0  ;;  %8167 = vmatprep.mubr.bf16.mxu1 %v2811_v44  ;;  %v2829_v44 = vpack.c.bf16 %v2706_v20, %v2705_v32 }
 0x335   : > { %v10297_v24 = vadd.f32 %v7323_v28, %v3558_v10  ;;  %v7219_v63 = vpop.f32.mrf.mxu1 }
 0x336   : > { %v7220_v26 = vadd.f32 %v7219_v63, %v7218_v15  ;;  %v7325_v61 = vpop.f32.mrf.mxu0  ;;  %v3566_v63 = vadd.f32 %v7217_v38, %v10212_v16 }
 0x337   : > { %v7326_v17 = vadd.f32 %v7325_v61, %v7324_v42  ;;  %v7221_v3 = vpop.f32.mrf.mxu1 }
 0x338   : > { %v7327_v7 = vpop.f32.mrf.mxu0 }
 0x339   : > { %v10300_v40 = vadd.f32 %v7326_v17, %v3563_v12  ;;  %v7222_v31 = vpop.f32.mrf.mxu1  ;;  %v3571_v12 = vadd.f32 %v7220_v26, %v10212_v16  ;;  %v8473_v26 = vld [vmem:[#allocation3 + $0x48] sm:$0xff]  }
 0x33a   : > { %v7328_v41 = vpop.f32.mrf.mxu0  ;;  %v7223_v17 = vadd.f32 %v7222_v31, %v7221_v3  ;;  %v8474_v3 = vld [vmem:[#allocation3 + $0x8] sm:$0xff]   ;;  %7614 = vmatprep.subr.bf16.mxu0 %v8473_v26  ;;  %v8476_v26 = vld [vmem:[#allocation3 + $0xb8] sm:$0xff]  }
 0x33b   : > { %v7329_v10 = vadd.f32 %v7328_v41, %v7327_v7  ;;  %v7224_v28 = vpop.f32.mrf.mxu1  ;;  %8168 = vmatmul.mubr.bf16.gmra.mxu1 %v2820_v51  ;;  %v2838_v7 = vpack.c.bf16 %v2708_v56, %v2707_v21  ;;  %7615 = vmatpush3.bf16.msra.mxu0 %v8474_v3 }
 0x33c   : > { %v7330_v15 = vpop.f32.mrf.mxu0  ;;  %8171 = vmatprep.mubr.bf16.mxu1 %v2829_v44  ;;  %v3574_v41 = vadd.f32 %v7223_v17, %v10212_v16 }
 0x33d   : > { %v10303_v54 = vadd.f32 %v7329_v10, %v3566_v63  ;;  %v7225_v42 = vpop.f32.mrf.mxu1  ;;  %v2711_v10 = vld [vmem:[#allocation2 + $0x309] sm:$0xff] }
 0x33e   : > { %v7226_v9 = vadd.f32 %v7225_v42, %v7224_v28  ;;  %v7331_v61 = vpop.f32.mrf.mxu0  ;;  %v2712_v42 = vld [vmem:[#allocation2 + $0x311] sm:$0xff] }
 0x33f   : > { %v7332_v46 = vadd.f32 %v7331_v61, %v7330_v15  ;;  %v7227_v29 = vpop.f32.mrf.mxu1 }
 0x340   : > { %v7333_v32 = vpop.f32.mrf.mxu0  ;;  %v3579_v56 = vadd.f32 %v7226_v9, %v10212_v16 }
 0x341   : > { %v10306_v20 = vadd.f32 %v7332_v46, %v3571_v12  ;;  %v7228_v38 = vpop.f32.mrf.mxu1 }
 0x342   : > { %v7334_v51 = vpop.f32.mrf.mxu0  ;;  %v7229_v21 = vadd.f32 %v7228_v38, %v7227_v29 }
 0x343   : > { %v7335_v44 = vadd.f32 %v7334_v51, %v7333_v32  ;;  %v7230_v63 = vpop.f32.mrf.mxu1  ;;  %8172 = vmatmul.mubr.bf16.gmra.mxu1 %v2838_v7  ;;  %v2856_v32 = vpack.c.bf16 %v2712_v42, %v2711_v10 }
 0x344   : > { %v7336_v28 = vpop.f32.mrf.mxu0  ;;  %8175 = vmatprep.mubr.bf16.mxu1 %v10252_v0  ;;  %v3582_v13 = vadd.f32 %v7229_v21, %v10212_v16 }
 0x345   : > { %v10310_v31 = vadd.f32 %v7335_v44, %v3574_v41  ;;  %v7231_v15 = vpop.f32.mrf.mxu1 }
 0x346   : > { %v7232_v61 = vadd.f32 %v7231_v15, %v7230_v63  ;;  %v7337_v12 = vpop.f32.mrf.mxu0  ;;  %v8475_v15 = vld [vmem:[#allocation3 + $0xf8] sm:$0xff]  }
 0x347   : > { %v7338_v17 = vadd.f32 %v7337_v12, %v7336_v28  ;;  %v7233_v46 = vpop.f32.mrf.mxu1  ;;  %7714 = vmatprep.subr.bf16.mxu1 %v8475_v15  ;;  %v8479_v15 = vld [vmem:[#allocation3 + $0x40] sm:$0xff]  }
 0x348   : > { %v7339_v7 = vpop.f32.mrf.mxu0  ;;  %v3587_v10 = vadd.f32 %v7232_v61, %v10212_v16  ;;  %7715 = vmatpush3.bf16.msra.mxu1 %v8476_v26  ;;  %v8480_v61 = vld [vmem:[#allocation3 + $0xe8] sm:$0xff]   ;;  %7616 = vmatprep.subr.bf16.mxu0 %v8479_v15 }
 0x349   : > { %v10313_v51 = vadd.f32 %v7338_v17, %v3579_v56  ;;  %v7234_v0 = vpop.f32.mrf.mxu1  ;;  %v8477_v56 = vld [vmem:[#allocation3 + $0xf0] sm:$0xff]   ;;  %v8482_v26 = vld [vmem:[#allocation3 + $0xa8] sm:$0xff]  }
 0x34a   : > { %v7340_v27 = vpop.f32.mrf.mxu0  ;;  %v7235_v28 = vadd.f32 %v7234_v0, %v7233_v46  ;;  %7716 = vmatprep.subr.bf16.mxu1 %v8477_v56  ;;  %v8481_v46 = vld [vmem:[#allocation3] sm:$0xff]  }
 0x34b   : > { %v7341_v41 = vadd.f32 %v7340_v27, %v7339_v7  ;;  %v7236_v44 = vpop.f32.mrf.mxu1  ;;  %8176 = vmatmul.mubr.bf16.gmra.mxu1 %v2856_v32  ;;  %v8478_v27 = vld [vmem:[#allocation3 + $0xb0] sm:$0xff]   ;;  %7617 = vmatpush3.bf16.msra.mxu0 %v8481_v46 }
 0x34c   : > { %v7342_v63 = vpop.f32.mrf.mxu0  ;;  %7717 = vmatpush3.bf16.msra.mxu1 %v8478_v27  ;;  %7826 = vmatprep.subr.bf16.mxu0 %v8490_v55 }
 0x34d   : > { %v10316_v6 = vadd.f32 %v7341_v41, %v3582_v13  ;;  %v7237_v9 = vpop.f32.mrf.mxu1  ;;  %v3590_v13 = vadd.f32 %v7235_v28, %v10212_v16  ;;  %7718 = vmatprep.subr.bf16.mxu1 %v8480_v61 }
 0x34e   : > { %v7238_v29 = vadd.f32 %v7237_v9, %v7236_v44  ;;  %v7343_v38 = vpop.f32.mrf.mxu0 }
 0x34f   : > { %v7344_v42 = vadd.f32 %v7343_v38, %v7342_v63  ;;  %v7239_v3 = vpop.f32.mrf.mxu1 }
 0x350   : > { %v7345_v12 = vpop.f32.mrf.mxu0  ;;  %7719 = vmatpush3.bf16.msra.mxu1 %v8482_v26  ;;  %v8486_v26 = vld [vmem:[#allocation3 + $0x98] sm:$0xff]  }
 0x351   : > { %v10319_v21 = vadd.f32 %v7344_v42, %v3587_v10  ;;  %v7240_v17 = vpop.f32.mrf.mxu1  ;;  %v3595_v10 = vadd.f32 %v7238_v29, %v10212_v16  ;;  %7720 = vmatprep.subr.bf16.mxu1 %v8483_v8 }
 0x352   : > { %v7346_v32 = vpop.f32.mrf.mxu0  ;;  %v7241_v42 = vadd.f32 %v7240_v17, %v7239_v3 }
 0x353   : > { %v7347_v7 = vadd.f32 %v7346_v32, %v7345_v12  ;;  %v7370_v41 = vpop.f32.mrf.mxu1 }
 0x354   : > { %v7348_v44 = vpop.f32.mrf.mxu0  ;;  %7721 = vmatpush3.bf16.msra.mxu1 %v8484_v14 }
 0x355   : > { %v10322_v0 = vadd.f32 %v7347_v7, %v3590_v13  ;;  %v7371_v63 = vpop.f32.mrf.mxu1 }
 0x356   : > { %v7349_v9 = vpop.f32.mrf.mxu0  ;;  %v7372_v38 = vadd.f32 %v7371_v63, %v7370_v41  ;;  %v3598_v41 = vadd.f32 %v7241_v42, %v10212_v16  ;;  %v8485_v63 = vld [vmem:[#allocation3 + $0xd8] sm:$0xff]   ;;  %v4309_v42 = vld [vmem:[#allocation2 + $0xe7] sm:$0xff] }
 0x357   : > { %v7350_v56 = vadd.f32 %v7349_v9, %v7348_v44  ;;  %v7373_v28 = vpop.f32.mrf.mxu1  ;;  %7722 = vmatprep.subr.bf16.mxu1 %v8485_v63 }
 0x358   : > { %v3797_v12 = vadd.f32 %v7372_v38, %v10218_v50  ;;  %v7351_v27 = vpop.f32.mrf.mxu0  ;;  %7723 = vmatpush3.bf16.msra.mxu1 %v8486_v26  ;;  %v8492_v26 = vld [vmem:[#allocation3 + $0x138] sm:$0xff]  }
 0x359   : > { %v10326_v32 = vadd.f32 %v7350_v56, %v3595_v10  ;;  %v7374_v13 = vpop.f32.mrf.mxu1  ;;  %v4310_v56 = vld [vmem:[#allocation2 + $0xef] sm:$0xff] }
 0x35a   : > { %v7352_v7 = vpop.f32.mrf.mxu0  ;;  %v7375_v62 = vadd.f32 %v7374_v13, %v7373_v28  ;;  %v4597_v8 = vpack.c.bf16 %v4310_v56, %v4309_v42  ;;  %v8488_v13 = vld [vmem:[#allocation3 + $0x90] sm:$0xff]   ;;  %v8493_v42 = vld [vmem:[#allocation3 + $0xc0] sm:$0xff]  }
 0x35b   : > { %11486 = vst [vmem:[#allocation41_spill] sm:$0xff] %v10326_v32  ;;  %v7353_v15 = vadd.f32 %v7352_v7, %v7351_v27  ;;  %v7376_v61 = vpop.f32.mrf.mxu1  ;;  %v8487_v27 = vld [vmem:[#allocation3 + $0xd0] sm:$0xff]   ;;  %v8494_v56 = vld [vmem:[#allocation3 + $0x80] sm:$0xff]  }
 0x35c   : > { %v3800_v29 = vadd.f32 %v7375_v62, %v10223_v11  ;;  %v7482_v3 = vpop.f32.mrf.mxu0  ;;  %5357 = vmatmul.mubr.bf16.vlgmr.msra.gmra.mxu0 %v4597_v8  ;;  %7724 = vmatprep.subr.bf16.mxu1 %v8487_v27 }
 0x35d   : > { %v10330_v17 = vadd.f32 %v7353_v15, %v3598_v41  ;;  %v7377_v44 = vpop.f32.mrf.mxu1  ;;  %7725 = vmatpush3.bf16.msra.mxu1 %v8488_v13  ;;  %7827 = vmatpush3.bf16.msra.mxu0 %v8492_v26 }
 0x35e   : > { %v7378_v50 = vadd.f32 %v7377_v44, %v7376_v61  ;;  %v7483_v46 = vpop.f32.mrf.mxu0 }
 0x35f   : > { %11487 = vst [vmem:[#allocation19_spill] sm:$0xff] %v10330_v17  ;;  %v7484_v9 = vadd.f32 %v7483_v46, %v7482_v3  ;;  %v7379_v38 = vpop.f32.mrf.mxu1  ;;  %v8491_v46 = vld [vmem:[#allocation3 + $0x88] sm:$0xff]  }
 0x360   : > { %v10333_v10 = vadd.f32 %v7378_v50, %v10226_v47  ;;  %v7485_v16 = vpop.f32.mrf.mxu0  ;;  %v8489_v50 = vld [vmem:[#allocation3 + $0xc8] sm:$0xff]  }
 0x361   : > { %v7380_v62 = vpop.f32.mrf.mxu1  ;;  %v10335_v11 = vadd.f32 %v7484_v9, %v3797_v12  ;;  %7726 = vmatprep.subr.bf16.mxu1 %v8489_v50 }
 0x362   : > { %v7381_v28 = vadd.f32 %v7380_v62, %v7379_v38  ;;  %v7486_v14 = vpop.f32.mrf.mxu0  ;;  %7727 = vmatpush3.bf16.msra.mxu1 %v8491_v46 }
 0x363   : > { %v7487_v7 = vadd.f32 %v7486_v14, %v7485_v16  ;;  %v7382_v41 = vpop.f32.mrf.mxu1  ;;  %7728 = vmatprep.subr.bf16.mxu1 %v8493_v42  ;;  %v8496_v42 = vld [vmem:[#allocation3 + $0x130] sm:$0xff]  }
 0x364   : > { %v10339_v47 = vadd.f32 %v7381_v28, %v10231_v34  ;;  %v10341_v15 = vpop.f32.mrf.mxu0 }
 0x365   : > { %v7383_v61 = vpop.f32.mrf.mxu1  ;;  %v10343_v12 = vadd.f32 %v7487_v7, %v3800_v29 }
 0x366   : > { %v7384_v3 = vadd.f32 %v7383_v61, %v7382_v41  ;;  %v10345_v44 = vpop.f32.mrf.mxu0  ;;  %7729 = vmatpush3.bf16.msra.mxu1 %v8494_v56 }
 0x367   : > { %v7385_v63 = vpop.f32.mrf.mxu1 }
 0x368   : > { %v10348_v9 = vadd.f32 %v7384_v3, %v10234_v57  ;;  %v10350_v34 = vpop.f32.mrf.mxu0 }
 0x369   : > { %v7386_v38 = vpop.f32.mrf.mxu1 }
 0x36a   : > { %v7387_v29 = vadd.f32 %v7386_v38, %v7385_v63  ;;  %v10352_v16 = vpop.f32.mrf.mxu0 }
 0x36b   : > { %v7388_v62 = vpop.f32.mrf.mxu1 }
 0x36c   : > { %v10355_v8 = vadd.f32 %v7387_v29, %v10239_v30  ;;  %v10357_v28 = vpop.f32.mrf.mxu0  ;;  %v8495_v29 = vld [vmem:[#allocation3 + $0x170] sm:$0xff]  }
 0x36d   : > { %v7389_v57 = vpop.f32.mrf.mxu1  ;;  %7828 = vmatprep.subr.bf16.mxu0 %v8495_v29 }
 0x36e   : > { %v7390_v14 = vadd.f32 %v7389_v57, %v7388_v62  ;;  %v10359_v27 = vpop.f32.mrf.mxu0  ;;  %7829 = vmatpush3.bf16.msra.mxu0 %v8496_v42 }
 0x36f   : > { %v7391_v13 = vpop.f32.mrf.mxu1  ;;  %7830 = vmatprep.subr.bf16.mxu0 %v8497_v22 }
 0x370   : > { %v10362_v7 = vadd.f32 %v7390_v14, %v10242_v4  ;;  %v10364_v41 = vpop.f32.mrf.mxu0 }
 0x371   : > { %v7392_v61 = vpop.f32.mrf.mxu1 }
 0x372   : > { %v7393_v3 = vadd.f32 %v7392_v61, %v7391_v13  ;;  %v10366_v50 = vpop.f32.mrf.mxu0  ;;  %7831 = vmatpush3.bf16.msra.mxu0 %v8498_v35 }
 0x373   : > { %v7394_v30 = vpop.f32.mrf.mxu1 }
 0x374   : > { %v10369_v55 = vadd.f32 %v7393_v3, %v10247_v18  ;;  %v10371_v46 = vpop.f32.mrf.mxu0 }
 0x375   : > { %v7395_v63 = vpop.f32.mrf.mxu1 }
 0x376   : > { %v7396_v26 = vadd.f32 %v7395_v63, %v7394_v30  ;;  %v10373_v38 = vpop.f32.mrf.mxu0 }
 0x377   : > { %v7397_v4 = vpop.f32.mrf.mxu1 }
 0x378   : > { %v10376_v56 = vadd.f32 %v7396_v26, %v10250_v45  ;;  %v10378_v62 = vpop.f32.mrf.mxu0 }
 0x379   : > { %v7398_v57 = vpop.f32.mrf.mxu1 }
 0x37a   : > { %v7399_v14 = vadd.f32 %v7398_v57, %v7397_v4  ;;  %v10380_v18 = vpop.f32.mrf.mxu0 }
 0x37b   : > { %v7400_v13 = vpop.f32.mrf.mxu1 }
 0x37c   : > { %v10383_v61 = vadd.f32 %v7399_v14, %v10257_v43  ;;  %v10385_v3 = vpop.f32.mrf.mxu0 }
 0x37d   : > { %v7401_v30 = vpop.f32.mrf.mxu1 }
 0x37e   : > { %v7402_v63 = vadd.f32 %v7401_v30, %v7400_v13  ;;  %v10387_v19 = vpop.f32.mrf.mxu0 }
 0x37f   : > { %v7403_v45 = vpop.f32.mrf.mxu1 }
 0x380   : > { %v10390_v26 = vadd.f32 %v7402_v63, %v10260_v49  ;;  %v10392_v29 = vpop.f32.mrf.mxu0 }
 0x381   : > { %v7404_v42 = vpop.f32.mrf.mxu1 }
 0x382   : > { %v7405_v4 = vadd.f32 %v7404_v42, %v7403_v45  ;;  %v10394_v57 = vpop.f32.mrf.mxu0 }
 0x383   : > { %v7406_v48 = vpop.f32.mrf.mxu1 }
 0x384   : > { %v10397_v43 = vadd.f32 %v7405_v4, %v10266_v60  ;;  %v10399_v14 = vpop.f32.mrf.mxu0 }
 0x385   : > { %v7407_v1 = vpop.f32.mrf.mxu1 }
 0x386   : > { %v7408_v13 = vadd.f32 %v7407_v1, %v7406_v48  ;;  %v10401_v30 = vpop.f32.mrf.mxu0 }
 0x387   : > { %v7409_v49 = vpop.f32.mrf.mxu1 }
 0x388   : > { %v10404_v63 = vadd.f32 %v7408_v13, %v10270_v52  ;;  %v10406_v23 = vpop.f32.mrf.mxu0 }
 0x389   : > { %v7410_v45 = vpop.f32.mrf.mxu1 }
 0x38a   : > { %11488 = vst [vmem:[#allocation35_spill] sm:$0xff] %v10404_v63  ;;  %v7411_v42 = vadd.f32 %v7410_v45, %v7409_v49  ;;  %v10408_v60 = vpop.f32.mrf.mxu0  ;;  %v8499_v63 = vld [vmem:[#allocation3 + $0x160] sm:$0xff]  }
 0x38b   : > { %v7412_v4 = vpop.f32.mrf.mxu1  ;;  %7832 = vmatprep.subr.bf16.mxu0 %v8499_v63 }
 0x38c   : > { %v10411_v53 = vadd.f32 %v7411_v42, %v10273_v36  ;;  %v10413_v1 = vpop.f32.mrf.mxu0 }
 0x38d   : > { %v7413_v48 = vpop.f32.mrf.mxu1 }
 0x38e   : > { %11489 = vst [vmem:[#allocation36_spill] sm:$0xff] %v10411_v53  ;;  %v7414_v25 = vadd.f32 %v7413_v48, %v7412_v4  ;;  %v10415_v17 = vpop.f32.mrf.mxu0 }
 0x38f   : > { %11490 = vst [vmem:[#allocation32_spill] sm:$0xff] %v10415_v17  ;;  %v7415_v52 = vpop.f32.mrf.mxu1  ;;  %v8500_v17 = vld [vmem:[#allocation3 + $0x120] sm:$0xff]  }
 0x390   : > { %v10418_v13 = vadd.f32 %v7414_v25, %v10276_v5  ;;  %v10420_v22 = vpop.f32.mrf.mxu0  ;;  %7833 = vmatpush3.bf16.msra.mxu0 %v8500_v17 }
 0x391   : > { %11492 = vst [vmem:[#allocation22_spill] sm:$0xff] %v10420_v22  ;;  %v7416_v35 = vpop.f32.mrf.mxu1 }
 0x392   : > { %11491 = vst [vmem:[#allocation34_spill] sm:$0xff] %v10418_v13  ;;  %v7417_v49 = vadd.f32 %v7416_v35, %v7415_v52  ;;  %v10422_v45 = vpop.f32.mrf.mxu0 }
 0x393   : > { %11493 = vst [vmem:[#allocation14_spill] sm:$0xff] %v10422_v45  ;;  %v7418_v32 = vpop.f32.mrf.mxu1 }
 0x394   : > { %v10425_v36 = vadd.f32 %v7417_v49, %v10279_v39  ;;  %v10427_v42 = vpop.f32.mrf.mxu0 }
 0x395   : > { %v7419_v53 = vpop.f32.mrf.mxu1 }
 0x396   : > { %11494 = vst [vmem:[#allocation20_spill] sm:$0xff] %v10425_v36  ;;  %v7420_v4 = vadd.f32 %v7419_v53, %v7418_v32  ;;  %v10429_v48 = vpop.f32.mrf.mxu0 }
 0x397   : > { %v7421_v25 = vpop.f32.mrf.mxu1 }
 0x398   : > { %v10432_v5 = vadd.f32 %v7420_v4, %v10282_v59  ;;  %v10434_v22 = vpop.f32.mrf.mxu0 }
 0x399   : > { %v7422_v52 = vpop.f32.mrf.mxu1 }
 0x39a   : > { %11495 = vst [vmem:[#allocation12_spill] sm:$0xff] %v10432_v5  ;;  %v7423_v35 = vadd.f32 %v7422_v52, %v7421_v25  ;;  %v10436_v39 = vpop.f32.mrf.mxu0  ;;  %v8501_v25 = vld [vmem:[#allocation3 + $0x158] sm:$0xff]  }
 0x39b   : > { %11496 = vst [vmem:[#allocation38_spill] sm:$0xff] %v10436_v39  ;;  %v7424_v49 = vpop.f32.mrf.mxu1  ;;  %v8502_v52 = vld [vmem:[#allocation3 + $0x1f8] sm:$0xff]   ;;  %7834 = vmatprep.subr.bf16.mxu0 %v8501_v25 }
 0x39c   : > { %v10439_v36 = vadd.f32 %v7423_v35, %v10285_v37  ;;  %v10441_v53 = vpop.f32.mrf.mxu0  ;;  %v8503_v37 = vld [vmem:[#allocation3 + $0x118] sm:$0xff]   ;;  %7938 = vmatprep.subr.bf16.mxu1 %v8502_v52 }
 0x39d   : > { %v7425_v32 = vpop.f32.mrf.mxu1  ;;  %7835 = vmatpush3.bf16.msra.mxu0 %v8503_v37 }
 0x39e   : > { %11497 = vst [vmem:[#allocation40_spill] sm:$0xff] %v10439_v36  ;;  %v7426_v45 = vadd.f32 %v7425_v32, %v7424_v49  ;;  %v10443_v13 = vpop.f32.mrf.mxu0 }
 0x39f   : > { %v7427_v59 = vpop.f32.mrf.mxu1 }
 0x3a0   : > { %v10446_v4 = vadd.f32 %v7426_v45, %v10288_v2  ;;  %v10448_v63 = vpop.f32.mrf.mxu0 }
 0x3a1   : > { %11499 = vst [vmem:[#allocation54_spill] sm:$0xff] %v10448_v63  ;;  %v7428_v17 = vpop.f32.mrf.mxu1 }
 0x3a2   : > { %11498 = vst [vmem:[#allocation53_spill] sm:$0xff] %v10446_v4  ;;  %v7429_v5 = vadd.f32 %v7428_v17, %v7427_v59  ;;  %v10450_v39 = vpop.f32.mrf.mxu0 }
 0x3a3   : > { %11500 = vst [vmem:[#allocation55_spill] sm:$0xff] %v10450_v39  ;;  %v7430_v35 = vpop.f32.mrf.mxu1 }
 0x3a4   : > { %v10453_v49 = vadd.f32 %v7429_v5, %v10291_v58  ;;  %v10455_v32 = vpop.f32.mrf.mxu0 }
 0x3a5   : > { %v7431_v2 = vpop.f32.mrf.mxu1 }
 0x3a6   : > { %11501 = vst [vmem:[#allocation56_spill] sm:$0xff] %v10453_v49  ;;  %v7432_v45 = vadd.f32 %v7431_v2, %v7430_v35  ;;  %v10457_v36 = vpop.f32.mrf.mxu0 }
 0x3a7   : > { %v7433_v63 = vpop.f32.mrf.mxu1 }
 0x3a8   : > { %v10460_v4 = vadd.f32 %v7432_v45, %v10294_v33  ;;  %v10462_v59 = vpop.f32.mrf.mxu0 }
 0x3a9   : > { %11503 = vst [vmem:[#allocation58_spill] sm:$0xff] %v10462_v59  ;;  %v7434_v17 = vpop.f32.mrf.mxu1 }
 0x3aa   : > { %11502 = vst [vmem:[#allocation57_spill] sm:$0xff] %v10460_v4  ;;  %v7435_v39 = vadd.f32 %v7434_v17, %v7433_v63  ;;  %v10464_v25 = vpop.f32.mrf.mxu0  ;;  %v8505_v4 = vld [vmem:[#allocation3 + $0x150] sm:$0xff]  }
 0x3ab   : > { %11504 = vst [vmem:[#allocation59_spill] sm:$0xff] %v10464_v25  ;;  %v7436_v52 = vpop.f32.mrf.mxu1  ;;  %v8507_v63 = vld [vmem:[#allocation3 + $0x110] sm:$0xff]   ;;  %7836 = vmatprep.subr.bf16.mxu0 %v8505_v4 }
 0x3ac   : > { %v10467_v58 = vadd.f32 %v7435_v39, %v10297_v24  ;;  %v10469_v5 = vpop.f32.mrf.mxu0  ;;  %7837 = vmatpush3.bf16.msra.mxu0 %v8507_v63 }
 0x3ad   : > { %v7437_v37 = vpop.f32.mrf.mxu1 }
 0x3ae   : > { %11505 = vst [vmem:[#allocation60_spill] sm:$0xff] %v10467_v58  ;;  %v7438_v35 = vadd.f32 %v7437_v37, %v7436_v52  ;;  %v10471_v2 = vpop.f32.mrf.mxu0 }
 0x3af   : > { %v7439_v49 = vpop.f32.mrf.mxu1 }
 0x3b0   : > { %v10474_v33 = vadd.f32 %v7438_v35, %v10300_v40  ;;  %v10476_v17 = vpop.f32.mrf.mxu0 }
 0x3b1   : > { %v7440_v45 = vpop.f32.mrf.mxu1  ;;  %11507 = vst [vmem:[#allocation62_spill] sm:$0xff] %v10476_v17 }
 0x3b2   : > { %11506 = vst [vmem:[#allocation61_spill] sm:$0xff] %v10474_v33  ;;  %v7441_v59 = vadd.f32 %v7440_v45, %v7439_v49  ;;  %v10481_v37 = vpop.f32.mrf.mxu0 }
 0x3b3   : > { %v7442_v25 = vpop.f32.mrf.mxu1 }
 0x3b4   : > { %v10479_v24 = vadd.f32 %v7441_v59, %v10303_v54  ;;  %v10486_v49 = vpop.f32.mrf.mxu0 }
 0x3b5   : > { %v7443_v39 = vpop.f32.mrf.mxu1 }
 0x3b6   : > { %11508 = vst [vmem:[#allocation63_spill] sm:$0xff] %v10479_v24  ;;  %v7444_v52 = vadd.f32 %v7443_v39, %v7442_v25  ;;  %v10491_v59 = vpop.f32.mrf.mxu0  ;;  %v8509_v24 = vld [vmem:[#allocation3 + $0x148] sm:$0xff]  }
 0x3b7   : > { %v7445_v58 = vpop.f32.mrf.mxu1  ;;  %7838 = vmatprep.subr.bf16.mxu0 %v8509_v24 }
 0x3b8   : > { %v10484_v40 = vadd.f32 %v7444_v52, %v10306_v20  ;;  %v8511_v52 = vld [vmem:[#allocation3 + $0x108] sm:$0xff]  }
 0x3b9   : > { %v7446_v35 = vpop.f32.mrf.mxu1  ;;  %7839 = vmatpush3.bf16.msra.mxu0 %v8511_v52 }
 0x3ba   : > { %11509 = vst [vmem:[#allocation64_spill] sm:$0xff] %v10484_v40  ;;  %v7447_v33 = vadd.f32 %v7446_v35, %v7445_v58  ;;  %v10496_v40 = vpop.f32.mrf.mxu0 }
 0x3bb   : > { %v7448_v45 = vpop.f32.mrf.mxu1 }
 0x3bc   : > { %v10489_v17 = vadd.f32 %v7447_v33, %v10310_v31 }
 0x3bd   : > { %v7449_v4 = vpop.f32.mrf.mxu1 }
 0x3be   : > { %11510 = vst [vmem:[#allocation65_spill] sm:$0xff] %v10489_v17  ;;  %v7450_v54 = vadd.f32 %v7449_v4, %v7448_v45  ;;  %v10501_v45 = vpop.f32.mrf.mxu0 }
 0x3bf   : > { %v7451_v63 = vpop.f32.mrf.mxu1 }
 0x3c0   : > { %v10494_v25 = vadd.f32 %v7450_v54, %v10313_v51 }
 0x3c1   : > { %v7452_v39 = vpop.f32.mrf.mxu1 }
 0x3c2   : > { %v7453_v20 = vadd.f32 %v7452_v39, %v7451_v63  ;;  %v10506_v63 = vpop.f32.mrf.mxu0 }
 0x3c3   : > { %v7454_v58 = vpop.f32.mrf.mxu1 }
 0x3c4   : > { %v10499_v35 = vadd.f32 %v7453_v20, %v10316_v6  ;;  %v7490_v20 = vadd.f32 %v10345_v44, %v10341_v15  ;;  %v10517_v52 = vpop.f32.mrf.mxu0  ;;  %v7502_v44 = vadd.f32 %v10373_v38, %v10371_v46 }
 0x3c5   : > { %v7455_v31 = vpop.f32.mrf.mxu1 }
 0x3c6   : > { %v7456_v33 = vadd.f32 %v7455_v31, %v7454_v58  ;;  %v8513_v31 = vld [vmem:[#allocation3 + $0x140] sm:$0xff]  }
 0x3c7   : > { %v7457_v4 = vpop.f32.mrf.mxu1  ;;  %7840 = vmatprep.subr.bf16.mxu0 %v8513_v31 }
 0x3c8   : > { %v10504_v51 = vadd.f32 %v7456_v33, %v10319_v21  ;;  %v7493_v33 = vadd.f32 %v10352_v16, %v10350_v34  ;;  %v7496_v34 = vadd.f32 %v10359_v27, %v10357_v28  ;;  %v7499_v27 = vadd.f32 %v10366_v50, %v10364_v41 }
 0x3c9   : > { %v7458_v54 = vpop.f32.mrf.mxu1  ;;  %v7508_v41 = vadd.f32 %v10387_v19, %v10385_v3  ;;  %v7511_v19 = vadd.f32 %v10394_v57, %v10392_v29  ;;  %v7526_v29 = vadd.f32 %v10429_v48, %v10427_v42 }
 0x3ca   : > { %11511 = vst [vmem:[#allocation66_spill] sm:$0xff] %v10504_v51  ;;  %v7459_v17 = vadd.f32 %v7458_v54, %v7457_v4  ;;  %v3966_v4 = vadd.f32 %v7490_v20, %v10333_v10  ;;  %v8515_v54 = vld [vmem:[#allocation3 + $0x100] sm:$0xff]   ;;  %v3974_v28 = vadd.f32 %v7496_v34, %v10348_v9 }
 0x3cb   : > { %v10508_v39 = vpop.f32.mrf.mxu1  ;;  %7841 = vmatpush3.bf16.msra.mxu0 %v8515_v54 }
 0x3cc   : > { %v10511_v24 = vadd.f32 %v7459_v17, %v10322_v0  ;;  %v10526_v0 = vpop.f32.mrf.mxu0 }
 0x3cd   : > { %v10513_v6 = vpop.f32.mrf.mxu1 }
 0x3ce   : > { %11512 = vst [vmem:[#allocation67_spill] sm:$0xff] %v10511_v24  ;;  %v10534_v10 = vpop.f32.mrf.mxu0 }
 0x3cf   : > { %v10519_v58 = vpop.f32.mrf.mxu1 }
 0x3d0   : > { %11513 = vst [vmem:[#allocation68_spill] sm:$0xff] %v10519_v58  ;;  %v3969_v58 = vadd.f32 %v7493_v33, %v10339_v47  ;;  %v10540_v47 = vpop.f32.mrf.mxu0 }
 0x3d1   : > { %v10521_v21 = vpop.f32.mrf.mxu1 }
 0x3d2   : > { %11514 = vst [vmem:[#allocation69_spill] sm:$0xff] %v10521_v21 }
 0x3d3   : > { %v8149_v17 = vpop.f32.mrf.mxu1 }
 0x3d4   : > { %v4127_v24 = vadd.f32 %v8149_v17, %v3966_v4  ;;  %v7505_v4 = vadd.f32 %v10380_v18, %v10378_v62 }
 0x3d5   : > { %v4118_v15 = vpop.f32.mrf.mxu1 }
 0x3d6   : > { %v4247_v51 = vmax.f32 %v4127_v24, 0.0  ;;  %v4119_v21 = vadd.f32 %v4118_v15, %v10335_v11  ;;  %v3982_v11 = vadd.f32 %v7502_v44, %v10362_v7  ;;  %v3985_v18 = vadd.f32 %v7505_v4, %v10369_v55  ;;  %v10548_v44 = vpop.f32.mrf.mxu0  ;;  %v4374_v4 = vld [vmem:[#allocation2 + $0xf1] sm:$0xff] }
 0x3d7   : > { %v8150_v16 = vpop.f32.mrf.mxu1  ;;  %v7517_v55 = vadd.f32 %v10408_v60, %v10406_v23  ;;  %v3990_v23 = vadd.f32 %v7508_v41, %v10376_v56  ;;  %v11515_v41 = vld [vmem:[#allocation32_spill] sm:$0xff] }
 0x3d8   : > { %4279 = vst [vmem:[#allocation2 + $0x128] sm:$0xff] %v4247_v51  ;;  %v4245_v20 = vmax.f32 %v4119_v21, 0.0  ;;  %v4130_v31 = vadd.f32 %v8150_v16, %v3969_v58  ;;  %v10560_v3 = vpop.f32.mrf.mxu0 }
 0x3d9   : > { %v4121_v54 = vpop.f32.mrf.mxu1 }
 0x3da   : > { %4277 = vst [vmem:[#allocation2 + $0x108] sm:$0xff] %v4245_v20  ;;  %v4248_v46 = vmax.f32 %v4130_v31, 0.0  ;;  %v4122_v38 = vadd.f32 %v4121_v54, %v10343_v12  ;;  %v7514_v12 = vadd.f32 %v10401_v30, %v10399_v14  ;;  %v4373_v31 = vld [vmem:[#allocation2 + $0xe9] sm:$0xff]  ;;  %v10556_v54 = vld [vmem:[#allocation3 + $0x238] sm:$0xff]   ;;  %v10569_v56 = vpop.f32.mrf.mxu0 }
 0x3db   : > { %v8153_v24 = vpop.f32.mrf.mxu1  ;;  %8179 = vmatprep.subr.bf16.mxu0 %v10556_v54 }
 0x3dc   : > { %4280 = vst [vmem:[#allocation2 + $0x130] sm:$0xff] %v4248_v46  ;;  %v4246_v58 = vmax.f32 %v4122_v38, 0.0  ;;  %v4143_v21 = vadd.f32 %v8153_v24, %v3982_v11  ;;  %v4616_v33 = vpack.c.bf16 %v4248_v46, %v4247_v51  ;;  %v3977_v51 = vadd.f32 %v7499_v27, %v10355_v8 }
 0x3dd   : > { %v4134_v62 = vpop.f32.mrf.mxu1 }
 0x3de   : > { %4278 = vst [vmem:[#allocation2 + $0x110] sm:$0xff] %v4246_v58  ;;  %v4251_v7 = vmax.f32 %v4143_v21, 0.0  ;;  %v4135_v17 = vadd.f32 %v4134_v62, %v3974_v28  ;;  %v4607_v15 = vpack.c.bf16 %v4246_v58, %v4245_v20  ;;  %v3998_v20 = vadd.f32 %v7514_v12, %v10390_v26 }
 0x3df   : > { %v8154_v9 = vpop.f32.mrf.mxu1  ;;  %v4001_v26 = vadd.f32 %v7517_v55, %v10397_v43  ;;  %v4599_v28 = vpack.c.bf16 %v4374_v4, %v4373_v31  ;;  %v4407_v43 = vld [vmem:[#allocation2 + $0x127] sm:$0xff] }
 0x3e0   : > { %4283 = vst [vmem:[#allocation2 + $0x168] sm:$0xff] %v4251_v7  ;;  %v4249_v50 = vmax.f32 %v4135_v17, 0.0  ;;  %v4146_v34 = vadd.f32 %v8154_v9, %v3985_v18  ;;  %5364 = vmatprep.mubr.bf16.mxu0 %v4607_v15  ;;  %v8504_v18 = vld [vmem:[#allocation3 + $0x1b8] sm:$0xff]   ;;  %v3993_v17 = vadd.f32 %v7511_v19, %v10383_v61  ;;  %v8506_v9 = vld [vmem:[#allocation3 + $0x1f0] sm:$0xff]   ;;  %v10582_v19 = vpop.f32.mrf.mxu0 }
 0x3e1   : > { %v4137_v14 = vpop.f32.mrf.mxu1  ;;  %v4405_v11 = vld [vmem:[#allocation2 + $0x107] sm:$0xff] }
 0x3e2   : > { %4281 = vst [vmem:[#allocation2 + $0x148] sm:$0xff] %v4249_v50  ;;  %v4252_v30 = vmax.f32 %v4146_v34, 0.0  ;;  %v4138_v16 = vadd.f32 %v4137_v14, %v3977_v51  ;;  %v11516_v55 = vld [vmem:[#allocation38_spill] sm:$0xff] }
 0x3e3   : > { %v8157_v8 = vpop.f32.mrf.mxu1  ;;  %v4408_v27 = vld [vmem:[#allocation2 + $0x12f] sm:$0xff]  ;;  %v7529_v14 = vadd.f32 %v11516_v55, %v10434_v22 }
 0x3e4   : > { %4284 = vst [vmem:[#allocation2 + $0x170] sm:$0xff] %v4252_v30  ;;  %v4250_v46 = vmax.f32 %v4138_v16, 0.0  ;;  %v4159_v38 = vadd.f32 %v8157_v8, %v3998_v20  ;;  %v10565_v58 = vpack.c.bf16 %v4252_v30, %v4251_v7  ;;  %v7520_v7 = vadd.f32 %v11515_v41, %v10413_v1  ;;  %v11517_v30 = vld [vmem:[#allocation34_spill] sm:$0xff] }
 0x3e5   : > { %v4150_v60 = vpop.f32.mrf.mxu1  ;;  %v4406_v24 = vld [vmem:[#allocation2 + $0x10f] sm:$0xff]  ;;  %v10574_v42 = vpack.c.bf16 %v4408_v27, %v4407_v43  ;;  %v4014_v1 = vadd.f32 %v7526_v29, %v11517_v30  ;;  %v7538_v27 = vadd.f32 %v10457_v36, %v10455_v32  ;;  %v7532_v36 = vadd.f32 %v10443_v13, %v10441_v53  ;;  %v11525_v13 = vld [vmem:[#allocation53_spill] sm:$0xff] }
 0x3e6   : > { %4282 = vst [vmem:[#allocation2 + $0x150] sm:$0xff] %v4250_v46  ;;  %v4255_v57 = vmax.f32 %v4159_v38, 0.0  ;;  %v4151_v21 = vadd.f32 %v4150_v60, %v3990_v23  ;;  %v4600_v62 = vpack.c.bf16 %v4406_v24, %v4405_v11  ;;  %v4625_v15 = vpack.c.bf16 %v4250_v46, %v4249_v50  ;;  %v8508_v16 = vld [vmem:[#allocation3 + $0x1b0] sm:$0xff]  }
 0x3e7   : > { %v8158_v12 = vpop.f32.mrf.mxu1  ;;  %v11518_v20 = vld [vmem:[#allocation22_spill] sm:$0xff]  ;;  %v11520_v38 = vld [vmem:[#allocation35_spill] sm:$0xff]  ;;  %v4030_v53 = vadd.f32 %v7538_v27, %v11525_v13 }
 0x3e8   : > { %4287 = vst [vmem:[#allocation2 + $0x1a8] sm:$0xff] %v4255_v57  ;;  %v4253_v34 = vmax.f32 %v4151_v21, 0.0  ;;  %v4162_v51 = vadd.f32 %v8158_v12, %v4001_v26  ;;  %5517 = vmatprep.mubr.bf16.mxu1 %v4600_v62  ;;  %5365 = vmatmul.mubr.bf16.gmra.mxu0 %v4600_v62  ;;  %v11519_v31 = vld [vmem:[#allocation14_spill] sm:$0xff]  ;;  %v4006_v23 = vadd.f32 %v7520_v7, %v11520_v38  ;;  %v11521_v62 = vld [vmem:[#allocation20_spill] sm:$0xff]  ;;  %v11524_v30 = vld [vmem:[#allocation59_spill] sm:$0xff] }
 0x3e9   : > { %v4153_v48 = vpop.f32.mrf.mxu1  ;;  %5518 = vmatmul.mubr.bf16.vlgmr.msra.gmra.mxu1 %v4599_v28  ;;  %5372 = vmatprep.mubr.bf16.mxu0 %v4616_v33  ;;  %v7523_v4 = vadd.f32 %v11519_v31, %v11518_v20  ;;  %v8510_v33 = vld [vmem:[#allocation3 + $0x1e8] sm:$0xff]   ;;  %v4376_v26 = vld [vmem:[#allocation2 + $0x111] sm:$0xff]  ;;  %v8516_v20 = vld [vmem:[#allocation3 + $0x1a0] sm:$0xff]  }
 0x3ea   : > { %4285 = vst [vmem:[#allocation2 + $0x188] sm:$0xff] %v4253_v34  ;;  %v4256_v61 = vmax.f32 %v4162_v51, 0.0  ;;  %v4154_v50 = vadd.f32 %v4153_v48, %v3993_v17  ;;  %5525 = vmatprep.mubr.bf16.mxu1 %v10574_v42  ;;  %7939 = vmatpush3.bf16.msra.mxu1 %v8504_v18  ;;  %v4375_v60 = vld [vmem:[#allocation2 + $0x109] sm:$0xff]  ;;  %v4017_v18 = vadd.f32 %v7529_v14, %v11521_v62  ;;  %v10590_v17 = vpop.f32.mrf.mxu0  ;;  %v8514_v48 = vld [vmem:[#allocation3 + $0x1e0] sm:$0xff]  }
 0x3eb   : > { %v8161_v8 = vpop.f32.mrf.mxu1  ;;  %7940 = vmatprep.subr.bf16.mxu1 %v8506_v9  ;;  %v8512_v12 = vld [vmem:[#allocation3 + $0x1a8] sm:$0xff]   ;;  %v11522_v9 = vld [vmem:[#allocation36_spill] sm:$0xff]  ;;  %v10593_v7 = vpack.c.bf16 %v4376_v26, %v4375_v60  ;;  %v7550_v62 = vadd.f32 %v10491_v59, %v10486_v49  ;;  %v7544_v49 = vadd.f32 %v10471_v2, %v10469_v5 }
 0x3ec   : > { %4288 = vst [vmem:[#allocation2 + $0x1b0] sm:$0xff] %v4256_v61  ;;  %v4254_v46 = vmax.f32 %v4154_v50, 0.0  ;;  %v4175_v22 = vadd.f32 %v8161_v8, %v4014_v1  ;;  %v10585_v28 = vpack.c.bf16 %v4256_v61, %v4255_v57  ;;  %v4009_v41 = vadd.f32 %v7523_v4, %v11522_v9  ;;  %v4409_v51 = vld [vmem:[#allocation2 + $0x147] sm:$0xff]  ;;  %v11527_v4 = vld [vmem:[#allocation55_spill] sm:$0xff] }
 0x3ed   : > { %v4166_v11 = vpop.f32.mrf.mxu1  ;;  %v4410_v24 = vld [vmem:[#allocation2 + $0x14f] sm:$0xff]  ;;  %v11531_v5 = vld [vmem:[#allocation61_spill] sm:$0xff] }
 0x3ee   : > { %4286 = vst [vmem:[#allocation2 + $0x190] sm:$0xff] %v4254_v46  ;;  %v4259_v29 = vmax.f32 %v4175_v22, 0.0  ;;  %v4167_v21 = vadd.f32 %v4166_v11, %v4006_v23  ;;  %7941 = vmatpush3.bf16.msra.mxu1 %v8508_v16  ;;  %v10595_v57 = vpack.c.bf16 %v4254_v46, %v4253_v34  ;;  %v10600_v14 = vpack.c.bf16 %v4410_v24, %v4409_v51  ;;  %v11523_v50 = vld [vmem:[#allocation58_spill] sm:$0xff]  ;;  %v11528_v23 = vld [vmem:[#allocation12_spill] sm:$0xff] }
 0x3ef   : > { %v8162_v43 = vpop.f32.mrf.mxu1  ;;  %7942 = vmatprep.subr.bf16.mxu1 %v8510_v33  ;;  %v7541_v34 = vadd.f32 %v11524_v30, %v11523_v50  ;;  %v11526_v31 = vld [vmem:[#allocation54_spill] sm:$0xff]  ;;  %v10609_v33 = vpop.f32.mrf.mxu0  ;;  %v4022_v60 = vadd.f32 %v7532_v36, %v11528_v23  ;;  %v11530_v36 = vld [vmem:[#allocation40_spill] sm:$0xff]  ;;  %v4046_v2 = vadd.f32 %v7550_v62, %v11531_v5  ;;  %v11534_v62 = vld [vmem:[#allocation63_spill] sm:$0xff] }
 0x3f0   : > { %4291 = vst [vmem:[#allocation2 + $0x1e8] sm:$0xff] %v4259_v29  ;;  %v4257_v32 = vmax.f32 %v4167_v21, 0.0  ;;  %v4178_v55 = vadd.f32 %v8162_v43, %v4017_v18  ;;  %5373 = vmatmul.mubr.bf16.gmra.mxu0 %v10574_v42  ;;  %v7535_v8 = vadd.f32 %v11527_v4, %v11526_v31  ;;  %v4377_v26 = vld [vmem:[#allocation2 + $0x129] sm:$0xff]  ;;  %v4378_v11 = vld [vmem:[#allocation2 + $0x131] sm:$0xff]  ;;  %v11529_v43 = vld [vmem:[#allocation56_spill] sm:$0xff] }
 0x3f1   : > { %v4169_v61 = vpop.f32.mrf.mxu1  ;;  %5526 = vmatmul.mubr.bf16.gmra.mxu1 %v10593_v7  ;;  %5380 = vmatprep.mubr.bf16.mxu0 %v4625_v15  ;;  %v8517_v15 = vld [vmem:[#allocation3 + $0x1d8] sm:$0xff]   ;;  %v4412_v21 = vld [vmem:[#allocation2 + $0x16f] sm:$0xff]  ;;  %v4033_v9 = vadd.f32 %v7541_v34, %v11529_v43  ;;  %v10617_v51 = vpop.f32.mrf.mxu0  ;;  %v4411_v50 = vld [vmem:[#allocation2 + $0x167] sm:$0xff] }
 0x3f2   : > { %4289 = vst [vmem:[#allocation2 + $0x1c8] sm:$0xff] %v4257_v32  ;;  %v4260_v1 = vmax.f32 %v4178_v55, 0.0  ;;  %v4170_v16 = vadd.f32 %v4169_v61, %v4009_v41  ;;  %5533 = vmatprep.mubr.bf16.mxu1 %v10600_v14  ;;  %7943 = vmatpush3.bf16.msra.mxu1 %v8512_v12  ;;  %v8518_v41 = vld [vmem:[#allocation3 + $0x198] sm:$0xff]   ;;  %v4025_v55 = vadd.f32 %v7535_v8, %v11530_v36  ;;  %v8519_v30 = vld [vmem:[#allocation3 + $0x1d0] sm:$0xff]   ;;  %v8523_v43 = vld [vmem:[#allocation3 + $0x188] sm:$0xff]  }
 0x3f3   : > { %v8165_v46 = vpop.f32.mrf.mxu1  ;;  %7944 = vmatprep.subr.bf16.mxu1 %v8514_v48  ;;  %v10620_v61 = vpack.c.bf16 %v4378_v11, %v4377_v26  ;;  %v11532_v31 = vld [vmem:[#allocation62_spill] sm:$0xff]  ;;  %v7572_v8 = vpop.f32.mrf.mxu0 }
 0x3f4   : > { %4292 = vst [vmem:[#allocation2 + $0x1f0] sm:$0xff] %v4260_v1  ;;  %v4258_v22 = vmax.f32 %v4170_v16, 0.0  ;;  %v4191_v38 = vadd.f32 %v8165_v46, %v4030_v53  ;;  %v10612_v27 = vpack.c.bf16 %v4260_v1, %v4259_v29  ;;  %v10627_v1 = vpack.c.bf16 %v4412_v21, %v4411_v50  ;;  %v4380_v23 = vld [vmem:[#allocation2 + $0x151] sm:$0xff]  ;;  %v4413_v50 = vld [vmem:[#allocation2 + $0x187] sm:$0xff] }
 0x3f5   : > { %v4182_v24 = vpop.f32.mrf.mxu1  ;;  %v7547_v4 = vadd.f32 %v10481_v37, %v11532_v31  ;;  %v4414_v26 = vld [vmem:[#allocation2 + $0x18f] sm:$0xff] }
 0x3f6   : > { %4290 = vst [vmem:[#allocation2 + $0x1d0] sm:$0xff] %v4258_v22  ;;  %v4263_v18 = vmax.f32 %v4191_v38, 0.0  ;;  %v4183_v12 = vadd.f32 %v4182_v24, %v4022_v60  ;;  %7945 = vmatpush3.bf16.msra.mxu1 %v8516_v20  ;;  %v10622_v29 = vpack.c.bf16 %v4258_v22, %v4257_v32  ;;  %v7553_v32 = vadd.f32 %v10501_v45, %v10496_v40  ;;  %v8520_v20 = vld [vmem:[#allocation3 + $0x190] sm:$0xff]   ;;  %v11533_v40 = vld [vmem:[#allocation57_spill] sm:$0xff] }
 0x3f7   : > { %v8166_v48 = vpop.f32.mrf.mxu1  ;;  %7946 = vmatprep.subr.bf16.mxu1 %v8517_v15  ;;  %v8521_v15 = vld [vmem:[#allocation3 + $0x1c8] sm:$0xff]   ;;  %v4038_v45 = vadd.f32 %v7544_v49, %v11533_v40  ;;  %v7562_v24 = vadd.f32 %v10548_v44, %v10540_v47  ;;  %v7556_v47 = vadd.f32 %v10517_v52, %v10506_v63  ;;  %v4382_v31 = vld [vmem:[#allocation2 + $0x171] sm:$0xff] }
 0x3f8   : > { %4295 = vst [vmem:[#allocation2 + $0x228] sm:$0xff] %v4263_v18  ;;  %v4261_v59 = vmax.f32 %v4183_v12, 0.0  ;;  %v4194_v34 = vadd.f32 %v8166_v48, %v4033_v9  ;;  %5381 = vmatmul.mubr.bf16.gmra.mxu0 %v10600_v14  ;;  %v4379_v38 = vld [vmem:[#allocation2 + $0x149] sm:$0xff]  ;;  %v4049_v12 = vadd.f32 %v7553_v32, %v11534_v62  ;;  %v7573_v9 = vpop.f32.mrf.mxu0  ;;  %v11535_v48 = vld [vmem:[#allocation60_spill] sm:$0xff] }
 0x3f9   : > { %v4185_v16 = vpop.f32.mrf.mxu1  ;;  %5534 = vmatmul.mubr.bf16.gmra.mxu1 %v10620_v61  ;;  %5388 = vmatprep.mubr.bf16.mxu0 %v10565_v58  ;;  %v4041_v36 = vadd.f32 %v7547_v4, %v11535_v48 }
 0x3fa   : > { %4293 = vst [vmem:[#allocation2 + $0x208] sm:$0xff] %v4261_v59  ;;  %v4264_v13 = vmax.f32 %v4194_v34, 0.0  ;;  %v4186_v53 = vadd.f32 %v4185_v16, %v4025_v55  ;;  %5541 = vmatprep.mubr.bf16.mxu1 %v10627_v1  ;;  %7947 = vmatpush3.bf16.msra.mxu1 %v8518_v41  ;;  %v10644_v55 = vpack.c.bf16 %v4380_v23, %v4379_v38 }
 0x3fb   : > { %v8169_v46 = vpop.f32.mrf.mxu1  ;;  %7948 = vmatprep.subr.bf16.mxu1 %v8519_v30  ;;  %v10651_v34 = vpack.c.bf16 %v4414_v26, %v4413_v50  ;;  %v7559_v16 = vadd.f32 %v10534_v10, %v10526_v0  ;;  %v7462_v0 = vadd.f32 %v10513_v6, %v10508_v39  ;;  %v7575_v10 = vpop.f32.mrf.mxu0  ;;  %v7568_v23 = vadd.f32 %v10590_v17, %v10582_v19 }
 0x3fc   : > { %4296 = vst [vmem:[#allocation2 + $0x230] sm:$0xff] %v4264_v13  ;;  %v4262_v58 = vmax.f32 %v4186_v53, 0.0  ;;  %v4207_v22 = vadd.f32 %v8169_v46, %v4046_v2  ;;  %v10638_v11 = vpack.c.bf16 %v4264_v13, %v4263_v18  ;;  %v8524_v18 = vld [vmem:[#allocation3 + $0x1c0] sm:$0xff]   ;;  %v4062_v13 = vadd.f32 %v7562_v24, %v10494_v25 }
 0x3fd   : > { %v4198_v60 = vpop.f32.mrf.mxu1  ;;  %v8525_v53 = vld [vmem:[#allocation3 + $0x180] sm:$0xff]  }
 0x3fe   : > { %4294 = vst [vmem:[#allocation2 + $0x210] sm:$0xff] %v4262_v58  ;;  %v4267_v37 = vmax.f32 %v4207_v22, 0.0  ;;  %v4199_v21 = vadd.f32 %v4198_v60, %v4038_v45  ;;  %7949 = vmatpush3.bf16.msra.mxu1 %v8520_v20  ;;  %v10646_v30 = vpack.c.bf16 %v4262_v58, %v4261_v59  ;;  %v7565_v59 = vadd.f32 %v10569_v56, %v10560_v3  ;;  %v11536_v20 = vld [vmem:[#allocation64_spill] sm:$0xff]  ;;  %v4381_v56 = vld [vmem:[#allocation2 + $0x169] sm:$0xff]  ;;  %v7576_v60 = vpop.f32.mrf.mxu0 }
 0x3ff   : > { %v8170_v41 = vpop.f32.mrf.mxu1  ;;  %7950 = vmatprep.subr.bf16.mxu1 %v8521_v15  ;;  %v4054_v3 = vadd.f32 %v7556_v47, %v11536_v20  ;;  %v11537_v46 = vld [vmem:[#allocation65_spill] sm:$0xff]  ;;  %v4416_v58 = vld [vmem:[#allocation2 + $0x1af] sm:$0xff]  ;;  %v7574_v22 = vadd.f32 %v7573_v9, %v7572_v8  ;;  %v10671_v24 = vpack.c.bf16 %v4382_v31, %v4381_v56  ;;  %v11539_v8 = vld [vmem:[#allocation68_spill] sm:$0xff] }
 0x400   : > { %4299 = vst [vmem:[#allocation2 + $0x268] sm:$0xff] %v4267_v37  ;;  %v4265_v44 = vmax.f32 %v4199_v21, 0.0  ;;  %v4210_v49 = vadd.f32 %v8170_v41, %v4049_v12  ;;  %5389 = vmatmul.mubr.bf16.gmra.mxu0 %v10627_v1  ;;  %v4057_v15 = vadd.f32 %v7559_v16, %v11537_v46  ;;  %v4065_v6 = vadd.f32 %v7565_v59, %v10499_v35  ;;  %v11538_v45 = vld [vmem:[#allocation41_spill] sm:$0xff]  ;;  %v11541_v47 = vld [vmem:[#allocation66_spill] sm:$0xff]  ;;  %v11543_v31 = vld [vmem:[#allocation67_spill] sm:$0xff] }
 0x401   : > { %v4201_v32 = vpop.f32.mrf.mxu1  ;;  %5542 = vmatmul.mubr.bf16.gmra.mxu1 %v10644_v55  ;;  %5396 = vmatprep.mubr.bf16.mxu0 %v10595_v57  ;;  %v3917_v38 = vadd.f32 %v7462_v0, %v11538_v45  ;;  %v4415_v21 = vld [vmem:[#allocation2 + $0x1a7] sm:$0xff]  ;;  %v7577_v41 = vadd.f32 %v7576_v60, %v7575_v10  ;;  %v4420_v45 = vld [vmem:[#allocation2 + $0x1ef] sm:$0xff] }
 0x402   : > { %4297 = vst [vmem:[#allocation2 + $0x248] sm:$0xff] %v4265_v44  ;;  %v4268_v63 = vmax.f32 %v4210_v49, 0.0  ;;  %v4202_v52 = vadd.f32 %v4201_v32, %v4041_v36  ;;  %5549 = vmatprep.mubr.bf16.mxu1 %v10651_v34  ;;  %7951 = vmatpush3.bf16.msra.mxu1 %v8523_v43  ;;  %v11540_v12 = vld [vmem:[#allocation69_spill] sm:$0xff]  ;;  %v10681_v19 = vpack.c.bf16 %v4416_v58, %v4415_v21  ;;  %v11542_v49 = vld [vmem:[#allocation19_spill] sm:$0xff] }
 0x403   : > { %v8173_v5 = vpop.f32.mrf.mxu1  ;;  %7952 = vmatprep.subr.bf16.mxu1 %v8524_v18  ;;  %v7465_v35 = vadd.f32 %v11540_v12, %v11539_v8  ;;  %v4078_v50 = vadd.f32 %v7574_v22, %v3917_v38  ;;  %v7571_v32 = vadd.f32 %v10617_v51, %v10609_v33  ;;  %v4419_v60 = vld [vmem:[#allocation2 + $0x1e7] sm:$0xff]  ;;  %v4388_v21 = vld [vmem:[#allocation2 + $0x1d1] sm:$0xff] }
 0x404   : > { %4300 = vst [vmem:[#allocation2 + $0x270] sm:$0xff] %v4268_v63  ;;  %v4266_v57 = vmax.f32 %v4202_v52, 0.0  ;;  %v4223_v2 = vadd.f32 %v8173_v5, %v4062_v13  ;;  %v10665_v25 = vpack.c.bf16 %v4268_v63, %v4267_v37  ;;  %v10675_v37 = vld [vmem:[#allocation2] sm:$0xff]  ;;  %v4383_v52 = vld [vmem:[#allocation2 + $0x189] sm:$0xff] }
 0x405   : > { %v4214_v4 = vpop.f32.mrf.mxu1  ;;  %v3920_v16 = vadd.f32 %v7465_v35, %v11542_v49  ;;  %v4422_v8 = vld [vmem:[#allocation2 + $0x20f] sm:$0xff]  ;;  %v4421_v35 = vld [vmem:[#allocation2 + $0x207] sm:$0xff] }
 0x406   : > { %4298 = vst [vmem:[#allocation2 + $0x250] sm:$0xff] %v4266_v57  ;;  %v4271_v40 = vmax.f32 %v4223_v2, 0.0  ;;  %v4215_v39 = vadd.f32 %v4214_v4, %v4054_v3  ;;  %7953 = vmatpush3.bf16.msra.mxu1 %v8525_v53  ;;  %v10673_v62 = vpack.c.bf16 %v4266_v57, %v4265_v44  ;;  %v4070_v44 = vadd.f32 %v7568_v23, %v11541_v47  ;;  %v4418_v53 = vld [vmem:[#allocation2 + $0x1cf] sm:$0xff]  ;;  %v4417_v3 = vld [vmem:[#allocation2 + $0x1c7] sm:$0xff] }
 0x407   : > { %v8174_v26 = vpop.f32.mrf.mxu1  ;;  %8227 = vmatprep.subr.bf16.mxu1 %v10675_v37  ;;  %v4081_v57 = vadd.f32 %v7577_v41, %v3920_v16  ;;  %v4073_v4 = vadd.f32 %v7571_v32, %v11543_v31  ;;  %v10698_v46 = vpack.c.bf16 %v4418_v53, %v4417_v3  ;;  %v4424_v41 = vld [vmem:[#allocation2 + $0x22f] sm:$0xff] }
 0x408   : > { %4303 = vst [vmem:[#allocation2 + $0x2a8] sm:$0xff] %v4271_v40  ;;  %v4269_v43 = vmax.f32 %v4215_v39, 0.0  ;;  %v4226_v9 = vadd.f32 %v8174_v26, %v4065_v6  ;;  %5397 = vmatmul.mubr.bf16.gmra.mxu0 %v10651_v34  ;;  %v4385_v39 = vld [vmem:[#allocation2 + $0x1a9] sm:$0xff]  ;;  %v4386_v6 = vld [vmem:[#allocation2 + $0x1b1] sm:$0xff]  ;;  %v10708_v26 = vpack.c.bf16 %v4420_v45, %v4419_v60 }
 0x409   : > { %v4217_v17 = vpop.f32.mrf.mxu1  ;;  %5550 = vmatmul.mubr.bf16.gmra.mxu1 %v10671_v24  ;;  %5404 = vmatprep.mubr.bf16.mxu0 %v10585_v28  ;;  %v4384_v28 = vld [vmem:[#allocation2 + $0x191] sm:$0xff]  ;;  %v10705_v23 = vpack.c.bf16 %v4386_v6, %v4385_v39  ;;  %v4425_v32 = vld [vmem:[#allocation2 + $0x247] sm:$0xff] }
 0x40a   : > { %4301 = vst [vmem:[#allocation2 + $0x288] sm:$0xff] %v4269_v43  ;;  %v4272_v48 = vmax.f32 %v4226_v9, 0.0  ;;  %v4218_v36 = vadd.f32 %v4217_v17, %v4057_v15  ;;  %5557 = vmatprep.mubr.bf16.mxu1 %v10681_v19  ;;  %v10692_v20 = vpack.c.bf16 %v4384_v28, %v4383_v52  ;;  %v4390_v17 = vld [vmem:[#allocation2 + $0x1f1] sm:$0xff] }
 0x40b   : > { %v8177_v18 = vpop.f32.mrf.mxu1  ;;  %v4428_v52 = vld [vmem:[#allocation2 + $0x26f] sm:$0xff] }
 0x40c   : > { %4304 = vst [vmem:[#allocation2 + $0x2b0] sm:$0xff] %v4272_v48  ;;  %v4270_v59 = vmax.f32 %v4218_v36, 0.0  ;;  %v4239_v63 = vadd.f32 %v8177_v18, %v4078_v50  ;;  %v10690_v0 = vpack.c.bf16 %v4272_v48, %v4271_v40  ;;  %v4423_v18 = vld [vmem:[#allocation2 + $0x227] sm:$0xff] }
 0x40d   : > { %v4230_v13 = vpop.f32.mrf.mxu1  ;;  %v10726_v47 = vpack.c.bf16 %v4424_v41, %v4423_v18  ;;  %v4426_v49 = vld [vmem:[#allocation2 + $0x24f] sm:$0xff] }
 0x40e   : > { %4302 = vst [vmem:[#allocation2 + $0x290] sm:$0xff] %v4270_v59  ;;  %v4275_v10 = vmax.f32 %v4239_v63, 0.0  ;;  %v4231_v5 = vadd.f32 %v4230_v13, %v4070_v44  ;;  %v10694_v56 = vpack.c.bf16 %v4270_v59, %v4269_v43  ;;  %v10716_v43 = vpack.c.bf16 %v4422_v8, %v4421_v35  ;;  %v4392_v44 = vld [vmem:[#allocation2 + $0x211] sm:$0xff]  ;;  %v4393_v63 = vld [vmem:[#allocation2 + $0x229] sm:$0xff] }
 0x40f   : > { %v8178_v2 = vpop.f32.mrf.mxu1  ;;  %v10734_v59 = vpack.c.bf16 %v4426_v49, %v4425_v32  ;;  %v4427_v13 = vld [vmem:[#allocation2 + $0x267] sm:$0xff]  ;;  %v4438_v35 = vld [vmem:[#allocation2 + $0x110] sm:$0xff] }
 0x410   : > { %4307 = vst [vmem:[#allocation2 + $0x2e8] sm:$0xff] %v4275_v10  ;;  %v4273_v33 = vmax.f32 %v4231_v5, 0.0  ;;  %v4242_v51 = vadd.f32 %v8178_v2, %v4081_v57  ;;  %5405 = vmatmul.mubr.bf16.gmra.mxu0 %v10681_v19  ;;  %v10742_v53 = vpack.c.bf16 %v4428_v52, %v4427_v13  ;;  %v4395_v10 = vld [vmem:[#allocation2 + $0x249] sm:$0xff] }
 0x411   : > { %v4233_v15 = vpop.f32.mrf.mxu1  ;;  %5558 = vmatmul.mubr.bf16.gmra.mxu1 %v10692_v20  ;;  %5412 = vmatprep.mubr.bf16.mxu0 %v10622_v29  ;;  %v4387_v29 = vld [vmem:[#allocation2 + $0x1c9] sm:$0xff] }
 0x412   : > { %4305 = vst [vmem:[#allocation2 + $0x2c8] sm:$0xff] %v4273_v33  ;;  %v4276_v58 = vmax.f32 %v4242_v51, 0.0  ;;  %v4234_v22 = vadd.f32 %v4233_v15, %v4073_v4  ;;  %5565 = vmatprep.mubr.bf16.mxu1 %v10698_v46  ;;  %v10713_v12 = vpack.c.bf16 %v4388_v21, %v4387_v29  ;;  %v4429_v2 = vld [vmem:[#allocation2 + $0x287] sm:$0xff]  ;;  %v4536_v49 = vld [vmem:[#allocation2 + $0x150] sm:$0xff] }
 0x413   : > { %v4432_v51 = vld [vmem:[#allocation2 + $0x2af] sm:$0xff]  ;;  %v4431_v4 = vld [vmem:[#allocation2 + $0x2a7] sm:$0xff] }
 0x414   : > { %4308 = vst [vmem:[#allocation2 + $0x2f0] sm:$0xff] %v4276_v58  ;;  %v4274_v40 = vmax.f32 %v4234_v22, 0.0  ;;  %v10758_v15 = vpack.c.bf16 %v4432_v51, %v4431_v4  ;;  %v4401_v45 = vld [vmem:[#allocation2 + $0x2a9] sm:$0xff] }
 0x415   : > { %v4430_v5 = vld [vmem:[#allocation2 + $0x28f] sm:$0xff] }
 0x416   : > { %4306 = vst [vmem:[#allocation2 + $0x2d0] sm:$0xff] %v4274_v40  ;;  %v10703_v38 = vpack.c.bf16 %v4274_v40, %v4273_v33  ;;  %v10750_v3 = vpack.c.bf16 %v4430_v5, %v4429_v2  ;;  %v4397_v33 = vld [vmem:[#allocation2 + $0x269] sm:$0xff]  ;;  %v8532_v5 = vld [vmem:[#allocation3 + $0x200] sm:$0xff]  }
 0x417   : > { %v4399_v58 = vld [vmem:[#allocation2 + $0x289] sm:$0xff] }
 0x418   : > { %5413 = vmatmul.mubr.bf16.gmra.mxu0 %v10698_v46  ;;  %v4435_v21 = vld [vmem:[#allocation2 + $0x2e7] sm:$0xff]  ;;  %v4538_v52 = vld [vmem:[#allocation2 + $0x170] sm:$0xff] }
 0x419   : > { %5566 = vmatmul.mubr.bf16.gmra.mxu1 %v10705_v23  ;;  %5420 = vmatprep.mubr.bf16.mxu0 %v10612_v27  ;;  %v4389_v27 = vld [vmem:[#allocation2 + $0x1e9] sm:$0xff] }
 0x41a   : > { %5573 = vmatprep.mubr.bf16.mxu1 %v10708_v26  ;;  %v10723_v50 = vpack.c.bf16 %v4390_v17, %v4389_v27  ;;  %v4433_v39 = vld [vmem:[#allocation2 + $0x2c7] sm:$0xff]  ;;  %v4534_v17 = vld [vmem:[#allocation2 + $0x130] sm:$0xff] }
 0x41b   : > { %v4436_v60 = vld [vmem:[#allocation2 + $0x2ef] sm:$0xff] }
 0x41c   : > { %v7618_v9 = vpop.f32.mrf.mxu0  ;;  %v10774_v8 = vpack.c.bf16 %v4436_v60, %v4435_v21  ;;  %v4437_v27 = vld [vmem:[#allocation2 + $0x108] sm:$0xff]  ;;  %v8530_v13 = vld [vmem:[#allocation3 + $0x210] sm:$0xff]  }
 0x41d   : > { %v4434_v22 = vld [vmem:[#allocation2 + $0x2cf] sm:$0xff]  ;;  %v4601_v41 = vpack.c.bf16 %v4438_v35, %v4437_v27 }
 0x41e   : > { %v7619_v48 = vpop.f32.mrf.mxu0  ;;  %v10766_v6 = vpack.c.bf16 %v4434_v22, %v4433_v39  ;;  %v4533_v18 = vld [vmem:[#allocation2 + $0x128] sm:$0xff] }
 0x41f   : > { %v10721_v36 = vadd.f32 %v7619_v48, %v7618_v9  ;;  %v4404_v9 = vld [vmem:[#allocation2 + $0x2d1] sm:$0xff]  ;;  %v4535_v32 = vld [vmem:[#allocation2 + $0x148] sm:$0xff] }
 0x420   : > { %5421 = vmatmul.mubr.bf16.gmra.mxu0 %v10708_v26  ;;  %v4543_v51 = vld [vmem:[#allocation2 + $0x1c8] sm:$0xff] }
 0x421   : > { %5574 = vmatmul.mubr.bf16.gmra.mxu1 %v10713_v12  ;;  %5428 = vmatprep.mubr.bf16.mxu0 %v10646_v30  ;;  %v4391_v30 = vld [vmem:[#allocation2 + $0x209] sm:$0xff] }
 0x422   : > { %5581 = vmatprep.mubr.bf16.mxu1 %v10716_v43  ;;  %v10731_v16 = vpack.c.bf16 %v4392_v44, %v4391_v30  ;;  %v8526_v30 = vld [vmem:[#allocation3 + $0x230] sm:$0xff]   ;;  %v4604_v44 = vpack.c.bf16 %v4534_v17, %v4533_v18 }
 0x428   : > { %5429 = vmatmul.mubr.bf16.gmra.mxu0 %v10716_v43 }
 0x429   : > { %5582 = vmatmul.mubr.bf16.gmra.mxu1 %v10723_v50  ;;  %5436 = vmatprep.mubr.bf16.mxu0 %v10638_v11  ;;  %v4394_v11 = vld [vmem:[#allocation2 + $0x231] sm:$0xff] }
 0x42a   : > { %5589 = vmatprep.mubr.bf16.mxu1 %v10726_v47  ;;  %v10739_v28 = vpack.c.bf16 %v4394_v11, %v4393_v63  ;;  %v8528_v63 = vld [vmem:[#allocation3 + $0x220] sm:$0xff]   ;;  %v4613_v11 = vpack.c.bf16 %v4536_v49, %v4535_v32 }
 0x430   : > { %5437 = vmatmul.mubr.bf16.gmra.mxu0 %v10726_v47 }
 0x431   : > { %5590 = vmatmul.mubr.bf16.gmra.mxu1 %v10731_v16  ;;  %5444 = vmatprep.mubr.bf16.mxu0 %v10673_v62  ;;  %v4396_v62 = vld [vmem:[#allocation2 + $0x251] sm:$0xff] }
 0x432   : > { %5597 = vmatprep.mubr.bf16.mxu1 %v10734_v59  ;;  %v10747_v57 = vpack.c.bf16 %v4396_v62, %v4395_v10  ;;  %v4539_v62 = vld [vmem:[#allocation2 + $0x188] sm:$0xff] }
 0x438   : > { %5445 = vmatmul.mubr.bf16.gmra.mxu0 %v10734_v59 }
 0x439   : > { %5598 = vmatmul.mubr.bf16.gmra.mxu1 %v10739_v28  ;;  %5452 = vmatprep.mubr.bf16.mxu0 %v10665_v25  ;;  %v4398_v25 = vld [vmem:[#allocation2 + $0x271] sm:$0xff] }
 0x43a   : > { %5605 = vmatprep.mubr.bf16.mxu1 %v10742_v53  ;;  %v10755_v31 = vpack.c.bf16 %v4398_v25, %v4397_v33  ;;  %v4544_v25 = vld [vmem:[#allocation2 + $0x1d0] sm:$0xff] }
 0x43b   : > { %v4649_v4 = vpack.c.bf16 %v4544_v25, %v4543_v51 }
 0x440   : > { %5453 = vmatmul.mubr.bf16.gmra.mxu0 %v10742_v53 }
 0x441   : > { %5606 = vmatmul.mubr.bf16.gmra.mxu1 %v10747_v57  ;;  %5460 = vmatprep.mubr.bf16.mxu0 %v10694_v56  ;;  %v4400_v56 = vld [vmem:[#allocation2 + $0x291] sm:$0xff] }
 0x442   : > { %5613 = vmatprep.mubr.bf16.mxu1 %v10750_v3  ;;  %v10763_v40 = vpack.c.bf16 %v4400_v56, %v4399_v58 }
 0x448   : > { %5461 = vmatmul.mubr.bf16.gmra.mxu0 %v10750_v3 }
 0x449   : > { %5614 = vmatmul.mubr.bf16.gmra.mxu1 %v10755_v31  ;;  %5468 = vmatprep.mubr.bf16.mxu0 %v10690_v0  ;;  %v4402_v0 = vld [vmem:[#allocation2 + $0x2b1] sm:$0xff] }
 0x44a   : > { %5621 = vmatprep.mubr.bf16.mxu1 %v10758_v15  ;;  %v10771_v29 = vpack.c.bf16 %v4402_v0, %v4401_v45  ;;  %v4551_v45 = vld [vmem:[#allocation2 + $0x248] sm:$0xff] }
 0x450   : > { %5469 = vmatmul.mubr.bf16.gmra.mxu0 %v10758_v15 }
 0x451   : > { %5622 = vmatmul.mubr.bf16.gmra.mxu1 %v10763_v40  ;;  %5476 = vmatprep.mubr.bf16.mxu0 %v10703_v38  ;;  %v4403_v38 = vld [vmem:[#allocation2 + $0x2c9] sm:$0xff] }
 0x452   : > { %5629 = vmatprep.mubr.bf16.mxu1 %v10766_v6  ;;  %v10779_v48 = vpack.c.bf16 %v4404_v9, %v4403_v38 }
 0x458   : > { %5477 = vmatmul.mubr.bf16.gmra.mxu0 %v10766_v6 }
 0x459   : > { %5630 = vmatmul.mubr.bf16.gmra.mxu1 %v10771_v29  ;;  %5678 = vmatprep.mubr.bf16.mxu0 %v10593_v7  ;;  %v8527_v7 = vld [vmem:[#allocation3 + $0x228] sm:$0xff]  }
 0x45a   : > { %5637 = vmatprep.mubr.bf16.mxu1 %v10774_v8 }
 0x460   : > { %5679 = vmatmul.mubr.bf16.vlgmr.msra.gmra.mxu0 %v4601_v41  ;;  %v4554_v41 = vld [vmem:[#allocation2 + $0x270] sm:$0xff] }
 0x461   : > { %5638 = vmatmul.mubr.bf16.gmra.mxu1 %v10779_v48  ;;  %5686 = vmatprep.mubr.bf16.mxu0 %v10620_v61  ;;  %v8529_v61 = vld [vmem:[#allocation3 + $0x218] sm:$0xff]  }
 0x462   : > { %5839 = vmatprep.mubr.bf16.mxu1 %v4604_v44  ;;  %8180 = vmatpush3.bf16.msra.mxu0 %v10556_v54  ;;  %v4537_v54 = vld [vmem:[#allocation2 + $0x168] sm:$0xff] }
 0x463   : > { %8181 = vmatprep.subr.bf16.mxu0 %v8526_v30  ;;  %v4622_v10 = vpack.c.bf16 %v4538_v52, %v4537_v54 }
 0x466   : > { %8182 = vmatpush3.bf16.msra.mxu0 %v8526_v30 }
 0x467   : > { %8183 = vmatprep.subr.bf16.mxu0 %v8527_v7 }
 0x468   : > { %5687 = vmatmul.mubr.bf16.gmra.mxu0 %v4604_v44 }
 0x469   : > { %5840 = vmatmul.mubr.bf16.vlgmr.msra.gmra.mxu1 %v10574_v42  ;;  %5694 = vmatprep.mubr.bf16.mxu0 %v10644_v55  ;;  %v8531_v42 = vld [vmem:[#allocation3 + $0x208] sm:$0xff]   ;;  %v4540_v55 = vld [vmem:[#allocation2 + $0x190] sm:$0xff] }
 0x46a   : > { %5847 = vmatprep.mubr.bf16.mxu1 %v4613_v11  ;;  %8184 = vmatpush3.bf16.msra.mxu0 %v8527_v7  ;;  %v4631_v2 = vpack.c.bf16 %v4540_v55, %v4539_v62  ;;  %v4556_v62 = vld [vmem:[#allocation2 + $0x290] sm:$0xff] }
 0x46b   : > { %8185 = vmatprep.subr.bf16.mxu0 %v8528_v63 }
 0x46e   : > { %8186 = vmatpush3.bf16.msra.mxu0 %v8528_v63 }
 0x46f   : > { %8187 = vmatprep.subr.bf16.mxu0 %v8529_v61 }
 0x470   : > { %5695 = vmatmul.mubr.bf16.gmra.mxu0 %v4613_v11 }
 0x471   : > { %5848 = vmatmul.mubr.bf16.gmra.mxu1 %v10600_v14  ;;  %5702 = vmatprep.mubr.bf16.mxu0 %v10671_v24  ;;  %v4542_v14 = vld [vmem:[#allocation2 + $0x1b0] sm:$0xff]  ;;  %v4541_v24 = vld [vmem:[#allocation2 + $0x1a8] sm:$0xff] }
 0x472   : > { %5855 = vmatprep.mubr.bf16.mxu1 %v4622_v10  ;;  %8188 = vmatpush3.bf16.msra.mxu0 %v8529_v61  ;;  %v4640_v33 = vpack.c.bf16 %v4542_v14, %v4541_v24 }
 0x473   : > { %8189 = vmatprep.subr.bf16.mxu0 %v8530_v13 }
 0x476   : > { %8190 = vmatpush3.bf16.msra.mxu0 %v8530_v13 }
 0x477   : > { %8191 = vmatprep.subr.bf16.mxu0 %v8531_v42 }
 0x478   : > { %5703 = vmatmul.mubr.bf16.gmra.mxu0 %v4622_v10 }
 0x479   : > { %5856 = vmatmul.mubr.bf16.gmra.mxu1 %v10627_v1  ;;  %5710 = vmatprep.mubr.bf16.mxu0 %v10692_v20  ;;  %v4546_v1 = vld [vmem:[#allocation2 + $0x1f0] sm:$0xff]  ;;  %v4545_v20 = vld [vmem:[#allocation2 + $0x1e8] sm:$0xff] }
 0x47a   : > { %5863 = vmatprep.mubr.bf16.mxu1 %v4631_v2  ;;  %8192 = vmatpush3.bf16.msra.mxu0 %v8531_v42  ;;  %v4658_v58 = vpack.c.bf16 %v4546_v1, %v4545_v20 }
 0x47b   : > { %8193 = vmatprep.subr.bf16.mxu0 %v8532_v5 }
 0x47e   : > { %8194 = vmatpush3.bf16.msra.mxu0 %v8532_v5 }
 0x480   : > { %5711 = vmatmul.mubr.bf16.gmra.mxu0 %v4631_v2 }
 0x481   : > { %5864 = vmatmul.mubr.bf16.gmra.mxu1 %v10651_v34  ;;  %5718 = vmatprep.mubr.bf16.mxu0 %v10705_v23  ;;  %v4548_v34 = vld [vmem:[#allocation2 + $0x210] sm:$0xff]  ;;  %v4547_v23 = vld [vmem:[#allocation2 + $0x208] sm:$0xff] }
 0x482   : > { %5871 = vmatprep.mubr.bf16.mxu1 %v4640_v33  ;;  %v4667_v56 = vpack.c.bf16 %v4548_v34, %v4547_v23 }
 0x488   : > { %5719 = vmatmul.mubr.bf16.gmra.mxu0 %v4640_v33 }
 0x489   : > { %5872 = vmatmul.mubr.bf16.gmra.mxu1 %v10681_v19  ;;  %5726 = vmatprep.mubr.bf16.mxu0 %v10713_v12  ;;  %v4550_v19 = vld [vmem:[#allocation2 + $0x230] sm:$0xff]  ;;  %v4549_v12 = vld [vmem:[#allocation2 + $0x228] sm:$0xff] }
 0x48a   : > { %5879 = vmatprep.mubr.bf16.mxu1 %v4649_v4  ;;  %v4676_v22 = vpack.c.bf16 %v4550_v19, %v4549_v12 }
 0x490   : > { %5727 = vmatmul.mubr.bf16.gmra.mxu0 %v4649_v4 }
 0x491   : > { %5880 = vmatmul.mubr.bf16.gmra.mxu1 %v10698_v46  ;;  %5734 = vmatprep.mubr.bf16.mxu0 %v10723_v50  ;;  %v7621_v46 = vpop.f32.mrf.mxu0  ;;  %v4552_v50 = vld [vmem:[#allocation2 + $0x250] sm:$0xff] }
 0x492   : > { %5887 = vmatprep.mubr.bf16.mxu1 %v4658_v58  ;;  %v4685_v60 = vpack.c.bf16 %v4552_v50, %v4551_v45 }
 0x493   : > { %v7622_v39 = vpop.f32.mrf.mxu0 }
 0x494   : > { %v7623_v38 = vadd.f32 %v7622_v39, %v7621_v46 }
 0x498   : > { %5735 = vmatmul.mubr.bf16.gmra.mxu0 %v4658_v58 }
 0x499   : > { %5888 = vmatmul.mubr.bf16.gmra.mxu1 %v10708_v26  ;;  %5742 = vmatprep.mubr.bf16.mxu0 %v10731_v16  ;;  %v10803_v26 = vld [vmem:[%s11345_s6] ss:$0 sm:$0xff] }
 0x49a   : > { %5895 = vmatprep.mubr.bf16.mxu1 %v4667_v56  ;;  %v5359_v35 = vadd.f32 %v10721_v36, %v10803_v26 }
 0x4a0   : > { %5743 = vmatmul.mubr.bf16.gmra.mxu0 %v4667_v56 }
 0x4a1   : > { %5896 = vmatmul.mubr.bf16.gmra.mxu1 %v10716_v43  ;;  %5750 = vmatprep.mubr.bf16.mxu0 %v10739_v28 }
 0x4a2   : > { %5903 = vmatprep.mubr.bf16.mxu1 %v4676_v22 }
 0x4a8   : > { %v7624_v0 = vpop.f32.mrf.mxu0  ;;  %5751 = vmatmul.mubr.bf16.gmra.mxu0 %v4676_v22  ;;  %v4558_v22 = vld [vmem:[#allocation2 + $0x2b0] sm:$0xff] }
 0x4a9   : > { %v7730_v16 = vpop.f32.mrf.mxu1  ;;  %5904 = vmatmul.mubr.bf16.gmra.mxu1 %v10726_v47  ;;  %5758 = vmatprep.mubr.bf16.mxu0 %v10747_v57  ;;  %v4553_v47 = vld [vmem:[#allocation2 + $0x268] sm:$0xff]  ;;  %v5362_v57 = vadd.f32 %v7623_v38, %v10803_v26 }
 0x4aa   : > { %5911 = vmatprep.mubr.bf16.mxu1 %v4685_v60  ;;  %v7625_v43 = vpop.f32.mrf.mxu0  ;;  %v4694_v63 = vpack.c.bf16 %v4554_v41, %v4553_v47 }
 0x4ab   : > { %v7626_v28 = vadd.f32 %v7625_v43, %v7624_v0  ;;  %v7731_v21 = vpop.f32.mrf.mxu1 }
 0x4ac   : > { %v7732_v9 = vadd.f32 %v7731_v21, %v7730_v16  ;;  %v7627_v27 = vpop.f32.mrf.mxu0 }
 0x4ad   : > { %v7733_v17 = vpop.f32.mrf.mxu1  ;;  %v5367_v13 = vadd.f32 %v7626_v28, %v10803_v26 }
 0x4ae   : > { %v10809_v18 = vadd.f32 %v7732_v9, %v5359_v35  ;;  %v7628_v30 = vpop.f32.mrf.mxu0 }
 0x4af   : > { %v7629_v44 = vadd.f32 %v7628_v30, %v7627_v27  ;;  %v7734_v7 = vpop.f32.mrf.mxu1  ;;  %v4560_v30 = vld [vmem:[#allocation2 + $0x2d0] sm:$0xff] }
 0x4b0   : > { %v7735_v49 = vadd.f32 %v7734_v7, %v7733_v17  ;;  %v7630_v32 = vpop.f32.mrf.mxu0  ;;  %5759 = vmatmul.mubr.bf16.gmra.mxu0 %v4685_v60 }
 0x4b1   : > { %v7736_v11 = vpop.f32.mrf.mxu1  ;;  %5912 = vmatmul.mubr.bf16.gmra.mxu1 %v10734_v59  ;;  %5766 = vmatprep.mubr.bf16.mxu0 %v10755_v31  ;;  %v4555_v59 = vld [vmem:[#allocation2 + $0x288] sm:$0xff]  ;;  %v5370_v31 = vadd.f32 %v7629_v44, %v10803_v26 }
 0x4b2   : > { %v10814_v36 = vadd.f32 %v7735_v49, %v5362_v57  ;;  %5919 = vmatprep.mubr.bf16.mxu1 %v4694_v63  ;;  %v7631_v61 = vpop.f32.mrf.mxu0  ;;  %v4703_v51 = vpack.c.bf16 %v4556_v62, %v4555_v59  ;;  %v4499_v62 = vld [vmem:[#allocation2 + $0x2e9] sm:$0xff] }
 0x4b3   : > { %v7632_v52 = vadd.f32 %v7631_v61, %v7630_v32  ;;  %v7737_v54 = vpop.f32.mrf.mxu1 }
 0x4b4   : > { %v7738_v10 = vadd.f32 %v7737_v54, %v7736_v11  ;;  %v7633_v42 = vpop.f32.mrf.mxu0 }
 0x4b5   : > { %v7739_v55 = vpop.f32.mrf.mxu1  ;;  %v5375_v23 = vadd.f32 %v7632_v52, %v10803_v26 }
 0x4b6   : > { %v10817_v5 = vadd.f32 %v7738_v10, %v5367_v13  ;;  %v7634_v2 = vpop.f32.mrf.mxu0 }
 0x4b7   : > { %v7635_v14 = vadd.f32 %v7634_v2, %v7633_v42  ;;  %v7740_v24 = vpop.f32.mrf.mxu1  ;;  %v4500_v2 = vld [vmem:[#allocation2 + $0x2f1] sm:$0xff] }
 0x4b8   : > { %v7741_v33 = vadd.f32 %v7740_v24, %v7739_v55  ;;  %v7636_v25 = vpop.f32.mrf.mxu0  ;;  %5767 = vmatmul.mubr.bf16.gmra.mxu0 %v4694_v63  ;;  %v4562_v24 = vld [vmem:[#allocation2 + $0x2f0] sm:$0xff] }
 0x4b9   : > { %v7742_v4 = vpop.f32.mrf.mxu1  ;;  %5920 = vmatmul.mubr.bf16.gmra.mxu1 %v10742_v53  ;;  %5774 = vmatprep.mubr.bf16.mxu0 %v10763_v40  ;;  %v4557_v53 = vld [vmem:[#allocation2 + $0x2a8] sm:$0xff]  ;;  %v5378_v40 = vadd.f32 %v7635_v14, %v10803_v26 }
 0x4ba   : > { %v10822_v1 = vadd.f32 %v7741_v33, %v5370_v31  ;;  %5927 = vmatprep.mubr.bf16.mxu1 %v4703_v51  ;;  %v7637_v20 = vpop.f32.mrf.mxu0  ;;  %v4712_v16 = vpack.c.bf16 %v4558_v22, %v4557_v53  ;;  %v4566_v53 = vld [vmem:[#allocation2 + $0x131] sm:$0xff] }
 0x4bb   : > { %v7638_v58 = vadd.f32 %v7637_v20, %v7636_v25  ;;  %v7743_v34 = vpop.f32.mrf.mxu1  ;;  %v4561_v25 = vld [vmem:[#allocation2 + $0x2e8] sm:$0xff] }
 0x4bc   : > { %v7744_v56 = vadd.f32 %v7743_v34, %v7742_v4  ;;  %v7639_v19 = vpop.f32.mrf.mxu0 }
 0x4bd   : > { %v7745_v12 = vpop.f32.mrf.mxu1  ;;  %v5383_v9 = vadd.f32 %v7638_v58, %v10803_v26  ;;  %v4730_v58 = vpack.c.bf16 %v4562_v24, %v4561_v25 }
 0x4be   : > { %v10825_v46 = vadd.f32 %v7744_v56, %v5375_v23  ;;  %v7640_v50 = vpop.f32.mrf.mxu0 }
 0x4bf   : > { %v7641_v39 = vadd.f32 %v7640_v50, %v7639_v19  ;;  %v7746_v45 = vpop.f32.mrf.mxu1 }
 0x4c0   : > { %v7747_v0 = vadd.f32 %v7746_v45, %v7745_v12  ;;  %v7642_v60 = vpop.f32.mrf.mxu0  ;;  %5775 = vmatmul.mubr.bf16.gmra.mxu0 %v4703_v51  ;;  %v4565_v45 = vld [vmem:[#allocation2 + $0x129] sm:$0xff] }
 0x4c1   : > { %v7748_v43 = vpop.f32.mrf.mxu1  ;;  %5928 = vmatmul.mubr.bf16.gmra.mxu1 %v10750_v3  ;;  %5782 = vmatprep.mubr.bf16.mxu0 %v10771_v29  ;;  %v4559_v3 = vld [vmem:[#allocation2 + $0x2c8] sm:$0xff]  ;;  %v5386_v29 = vadd.f32 %v7641_v39, %v10803_v26 }
 0x4c2   : > { %v10830_v28 = vadd.f32 %v7747_v0, %v5378_v40  ;;  %5935 = vmatprep.mubr.bf16.mxu1 %v4712_v16  ;;  %v7643_v21 = vpop.f32.mrf.mxu0  ;;  %v4721_v63 = vpack.c.bf16 %v4560_v30, %v4559_v3  ;;  %v4531_v30 = vld [vmem:[#allocation2 + $0x307] sm:$0xff]  ;;  %v4568_v3 = vld [vmem:[#allocation2 + $0x151] sm:$0xff] }
 0x4c3   : > { %v7644_v35 = vadd.f32 %v7643_v21, %v7642_v60  ;;  %v7749_v38 = vpop.f32.mrf.mxu1  ;;  %v4605_v21 = vpack.c.bf16 %v4566_v53, %v4565_v45 }
 0x4c4   : > { %v7750_v27 = vadd.f32 %v7749_v38, %v7748_v43  ;;  %v7645_v17 = vpop.f32.mrf.mxu0 }
 0x4c5   : > { %v7751_v41 = vpop.f32.mrf.mxu1  ;;  %v5391_v10 = vadd.f32 %v7644_v35, %v10803_v26 }
 0x4c6   : > { %v10833_v44 = vadd.f32 %v7750_v27, %v5383_v9  ;;  %v7646_v7 = vpop.f32.mrf.mxu0 }
 0x4c7   : > { %v7647_v47 = vadd.f32 %v7646_v7, %v7645_v17  ;;  %v7752_v57 = vpop.f32.mrf.mxu1  ;;  %v4532_v7 = vld [vmem:[#allocation2 + $0x30f] sm:$0xff] }
 0x4c8   : > { %v7753_v49 = vadd.f32 %v7752_v57, %v7751_v41  ;;  %v7648_v32 = vpop.f32.mrf.mxu0  ;;  %5783 = vmatmul.mubr.bf16.gmra.mxu0 %v4712_v16  ;;  %v4567_v57 = vld [vmem:[#allocation2 + $0x149] sm:$0xff] }
 0x4c9   : > { %v7754_v11 = vpop.f32.mrf.mxu1  ;;  %5936 = vmatmul.mubr.bf16.gmra.mxu1 %v10758_v15  ;;  %5790 = vmatprep.mubr.bf16.mxu0 %v10779_v48  ;;  %v10843_v48 = vpack.c.bf16 %v4500_v2, %v4499_v62  ;;  %v5394_v51 = vadd.f32 %v7647_v47, %v10803_v26 }
 0x4ca   : > { %v10838_v61 = vadd.f32 %v7753_v49, %v5386_v29  ;;  %5943 = vmatprep.mubr.bf16.mxu1 %v4721_v63  ;;  %v7649_v52 = vpop.f32.mrf.mxu0 }
 0x4cb   : > { %v7650_v54 = vadd.f32 %v7649_v52, %v7648_v32  ;;  %v7755_v13 = vpop.f32.mrf.mxu1 }
 0x4cc   : > { %v7756_v42 = vadd.f32 %v7755_v13, %v7754_v11  ;;  %v7651_v55 = vpop.f32.mrf.mxu0  ;;  %v4570_v11 = vld [vmem:[#allocation2 + $0x171] sm:$0xff] }
 0x4cd   : > { %v7757_v14 = vpop.f32.mrf.mxu1  ;;  %v5399_v22 = vadd.f32 %v7650_v54, %v10803_v26  ;;  %v4738_v54 = vpack.c.bf16 %v4532_v7, %v4531_v30  ;;  %v4576_v30 = vld [vmem:[#allocation2 + $0x1d1] sm:$0xff] }
 0x4ce   : > { %v10841_v59 = vadd.f32 %v7756_v42, %v5391_v10  ;;  %v7652_v31 = vpop.f32.mrf.mxu0  ;;  %v4614_v10 = vpack.c.bf16 %v4568_v3, %v4567_v57  ;;  %v4577_v57 = vld [vmem:[#allocation2 + $0x1e9] sm:$0xff]  ;;  %v4578_v3 = vld [vmem:[#allocation2 + $0x1f1] sm:$0xff] }
 0x4cf   : > { %v7653_v15 = vadd.f32 %v7652_v31, %v7651_v55  ;;  %v7758_v33 = vpop.f32.mrf.mxu1 }
 0x4d0   : > { %v7759_v4 = vadd.f32 %v7758_v33, %v7757_v14  ;;  %v7654_v20 = vpop.f32.mrf.mxu0  ;;  %5791 = vmatmul.mubr.bf16.gmra.mxu0 %v4721_v63  ;;  %v4569_v63 = vld [vmem:[#allocation2 + $0x169] sm:$0xff] }
 0x4d1   : > { %v7760_v34 = vpop.f32.mrf.mxu1  ;;  %5944 = vmatmul.mubr.bf16.gmra.mxu1 %v10766_v6  ;;  %5798 = vmatprep.mubr.bf16.mxu0 %v10843_v48  ;;  %v4739_v6 = vpack.c.bf16 %v10675_v37, %v10675_v37  ;;  %v5402_v35 = vadd.f32 %v7653_v15, %v10803_v26  ;;  %v4623_v62 = vpack.c.bf16 %v4570_v11, %v4569_v63 }
 0x4d2   : > { %v10848_v23 = vadd.f32 %v7759_v4, %v5394_v51  ;;  %5951 = vmatprep.mubr.bf16.mxu1 %v4730_v58  ;;  %v7655_v56 = vpop.f32.mrf.mxu0  ;;  %v4571_v4 = vld [vmem:[#allocation2 + $0x189] sm:$0xff] }
 0x4d3   : > { %v7656_v19 = vadd.f32 %v7655_v56, %v7654_v20  ;;  %v7761_v12 = vpop.f32.mrf.mxu1  ;;  %v4572_v20 = vld [vmem:[#allocation2 + $0x191] sm:$0xff] }
 0x4d4   : > { %v7762_v50 = vadd.f32 %v7761_v12, %v7760_v34  ;;  %v7657_v39 = vpop.f32.mrf.mxu0  ;;  %v4574_v12 = vld [vmem:[#allocation2 + $0x1b1] sm:$0xff]  ;;  %v4632_v45 = vpack.c.bf16 %v4572_v20, %v4571_v4  ;;  %v4581_v20 = vld [vmem:[#allocation2 + $0x229] sm:$0xff] }
 0x4d5   : > { %v7763_v40 = vpop.f32.mrf.mxu1  ;;  %v5407_v29 = vadd.f32 %v7656_v19, %v10803_v26  ;;  %v4573_v19 = vld [vmem:[#allocation2 + $0x1a9] sm:$0xff] }
 0x4d6   : > { %v10851_v0 = vadd.f32 %v7762_v50, %v5399_v22  ;;  %v7658_v60 = vpop.f32.mrf.mxu0 }
 0x4d7   : > { %v7659_v16 = vadd.f32 %v7658_v60, %v7657_v39  ;;  %v7764_v43 = vpop.f32.mrf.mxu1  ;;  %v4641_v60 = vpack.c.bf16 %v4574_v12, %v4573_v19 }
 0x4d8   : > { %v7765_v38 = vadd.f32 %v7764_v43, %v7763_v40  ;;  %v7660_v9 = vpop.f32.mrf.mxu0  ;;  %5799 = vmatmul.mubr.bf16.gmra.mxu0 %v4730_v58 }
 0x4d9   : > { %v7766_v27 = vpop.f32.mrf.mxu1  ;;  %5952 = vmatmul.mubr.bf16.gmra.mxu1 %v10774_v8  ;;  %8195 = vmatprep.mubr.bf16.mxu0 %v4605_v21  ;;  %v5410_v2 = vadd.f32 %v7659_v16, %v10803_v26 }
 0x4da   : > { %v10857_v17 = vadd.f32 %v7765_v38, %v5402_v35  ;;  %v7661_v41 = vpop.f32.mrf.mxu0  ;;  %5959 = vmatprep.mubr.bf16.mxu1 %v4739_v6 }
 0x4db   : > { %v7662_v47 = vadd.f32 %v7661_v41, %v7660_v9  ;;  %v7767_v37 = vpop.f32.mrf.mxu1  ;;  %v4575_v41 = vld [vmem:[#allocation2 + $0x1c9] sm:$0xff] }
 0x4dc   : > { %v7768_v49 = vadd.f32 %v7767_v37, %v7766_v27  ;;  %v7663_v32 = vpop.f32.mrf.mxu0  ;;  %v4650_v63 = vpack.c.bf16 %v4576_v30, %v4575_v41 }
 0x4dd   : > { %v7769_v52 = vpop.f32.mrf.mxu1  ;;  %v5415_v58 = vadd.f32 %v7662_v47, %v10803_v26 }
 0x4de   : > { %v10860_v8 = vadd.f32 %v7768_v49, %v5407_v29  ;;  %v7664_v13 = vpop.f32.mrf.mxu0 }
 0x4df   : > { %v7665_v42 = vadd.f32 %v7664_v13, %v7663_v32  ;;  %v7770_v55 = vpop.f32.mrf.mxu1 }
 0x4e0   : > { %v7771_v14 = vadd.f32 %v7770_v55, %v7769_v52  ;;  %v7666_v24 = vpop.f32.mrf.mxu0  ;;  %8196 = vmatmul.mubr.bf16.vlgmr.msra.gmra.mxu0 %v4614_v10 }
 0x4e1   : > { %v7772_v31 = vpop.f32.mrf.mxu1  ;;  %5960 = vmatmul.mubr.bf16.gmra.mxu1 %v4738_v54  ;;  %8199 = vmatprep.mubr.bf16.mxu0 %v4623_v62  ;;  %v5418_v6 = vadd.f32 %v7665_v42, %v10803_v26  ;;  %v4659_v54 = vpack.c.bf16 %v4578_v3, %v4577_v57  ;;  %v8533_v3 = vld [vmem:[%s11346_s7 + $0x38] sm:$0xff]  }
 0x4e2   : > { %v10863_v15 = vadd.f32 %v7771_v14, %v5410_v2  ;;  %v7667_v33 = vpop.f32.mrf.mxu0  ;;  %8228 = vmatpush3.bf16.msra.mxu1 %v8533_v3 }
 0x4e3   : > { %v7668_v25 = vadd.f32 %v7667_v33, %v7666_v24  ;;  %v7773_v51 = vpop.f32.mrf.mxu1  ;;  %v4580_v33 = vld [vmem:[#allocation2 + $0x211] sm:$0xff] }
 0x4e4   : > { %v7774_v34 = vadd.f32 %v7773_v51, %v7772_v31  ;;  %v7669_v56 = vpop.f32.mrf.mxu0  ;;  %v4579_v31 = vld [vmem:[#allocation2 + $0x209] sm:$0xff] }
 0x4e5   : > { %v7775_v22 = vpop.f32.mrf.mxu1  ;;  %v5423_v7 = vadd.f32 %v7668_v25, %v10803_v26  ;;  %v4668_v12 = vpack.c.bf16 %v4580_v33, %v4579_v31 }
 0x4e6   : > { %v10866_v50 = vadd.f32 %v7774_v34, %v5415_v58  ;;  %v7670_v39 = vpop.f32.mrf.mxu0  ;;  %v4582_v58 = vld [vmem:[#allocation2 + $0x231] sm:$0xff] }
 0x4e7   : > { %v7671_v53 = vadd.f32 %v7670_v39, %v7669_v56  ;;  %v7776_v40 = vpop.f32.mrf.mxu1 }
 0x4e8   : > { %v7777_v16 = vadd.f32 %v7776_v40, %v7775_v22  ;;  %v7672_v43 = vpop.f32.mrf.mxu0  ;;  %8200 = vmatmul.mubr.bf16.gmra.mxu0 %v4632_v45  ;;  %v4677_v45 = vpack.c.bf16 %v4582_v58, %v4581_v20 }
 0x4e9   : > { %v7778_v21 = vpop.f32.mrf.mxu1  ;;  %8203 = vmatprep.mubr.bf16.mxu0 %v4641_v60  ;;  %v5426_v13 = vadd.f32 %v7671_v53, %v10803_v26 }
 0x4ea   : > { %v10869_v35 = vadd.f32 %v7777_v16, %v5418_v6  ;;  %v7673_v38 = vpop.f32.mrf.mxu0 }
 0x4eb   : > { %v7674_v9 = vadd.f32 %v7673_v38, %v7672_v43  ;;  %v7779_v27 = vpop.f32.mrf.mxu1 }
 0x4ec   : > { %v7780_v47 = vadd.f32 %v7779_v27, %v7778_v21  ;;  %v7675_v37 = vpop.f32.mrf.mxu0  ;;  %v4584_v27 = vld [vmem:[#allocation2 + $0x251] sm:$0xff] }
 0x4ed   : > { %v7781_v29 = vpop.f32.mrf.mxu1  ;;  %v5431_v25 = vadd.f32 %v7674_v9, %v10803_v26  ;;  %v4583_v9 = vld [vmem:[#allocation2 + $0x249] sm:$0xff] }
 0x4ee   : > { %v10872_v49 = vadd.f32 %v7780_v47, %v5423_v7  ;;  %v7676_v32 = vpop.f32.mrf.mxu0  ;;  %v4585_v47 = vld [vmem:[#allocation2 + $0x269] sm:$0xff] }
 0x4ef   : > { %v7677_v11 = vadd.f32 %v7676_v32, %v7675_v37  ;;  %v7782_v52 = vpop.f32.mrf.mxu1  ;;  %v4586_v37 = vld [vmem:[#allocation2 + $0x271] sm:$0xff] }
 0x4f0   : > { %v7783_v10 = vadd.f32 %v7782_v52, %v7781_v29  ;;  %v7678_v42 = vpop.f32.mrf.mxu0  ;;  %8204 = vmatmul.mubr.bf16.gmra.mxu0 %v4650_v63  ;;  %v4686_v63 = vpack.c.bf16 %v4584_v27, %v4583_v9 }
 0x4f1   : > { %v7784_v55 = vpop.f32.mrf.mxu1  ;;  %8207 = vmatprep.mubr.bf16.mxu0 %v4659_v54  ;;  %v5434_v53 = vadd.f32 %v7677_v11, %v10803_v26  ;;  %v4695_v54 = vpack.c.bf16 %v4586_v37, %v4585_v47  ;;  %v4592_v47 = vld [vmem:[#allocation2 + $0x2d1] sm:$0xff] }
 0x4f2   : > { %v10875_v62 = vadd.f32 %v7783_v10, %v5426_v13  ;;  %v7679_v2 = vpop.f32.mrf.mxu0 }
 0x4f3   : > { %v7680_v14 = vadd.f32 %v7679_v2, %v7678_v42  ;;  %v7785_v24 = vpop.f32.mrf.mxu1 }
 0x4f4   : > { %v7786_v51 = vadd.f32 %v7785_v24, %v7784_v55  ;;  %v7681_v4 = vpop.f32.mrf.mxu0  ;;  %v10890_v55 = vld [vmem:[#allocation2] sm:$0xff] }
 0x4f5   : > { %v7787_v34 = vpop.f32.mrf.mxu1  ;;  %v5439_v41 = vadd.f32 %v7680_v14, %v10803_v26  ;;  %8229 = vmatprep.subr.bf16.mxu1 %v10890_v55  ;;  %8243 = vmatprep.mubr.msk.bf16.mxu1 %vm8642_vm0, %v10890_v55 }
 0x4f6   : > { %v10878_v56 = vadd.f32 %v7786_v51, %v5431_v25  ;;  %v7682_v19 = vpop.f32.mrf.mxu0  ;;  %v4587_v25 = vld [vmem:[#allocation2 + $0x289] sm:$0xff]  ;;  %v4588_v51 = vld [vmem:[#allocation2 + $0x291] sm:$0xff] }
 0x4f7   : > { %v7683_v22 = vadd.f32 %v7682_v19, %v7681_v4  ;;  %v7788_v39 = vpop.f32.mrf.mxu1  ;;  %v4590_v19 = vld [vmem:[#allocation2 + $0x2b1] sm:$0xff] }
 0x4f8   : > { %v7789_v40 = vadd.f32 %v7788_v39, %v7787_v34  ;;  %v7684_v60 = vpop.f32.mrf.mxu0  ;;  %8208 = vmatmul.mubr.bf16.gmra.mxu0 %v4668_v12  ;;  %v4589_v34 = vld [vmem:[#allocation2 + $0x2a9] sm:$0xff] }
 0x4f9   : > { %v7790_v6 = vpop.f32.mrf.mxu1  ;;  %8211 = vmatprep.mubr.bf16.mxu0 %v4677_v45  ;;  %v5442_v13 = vadd.f32 %v7683_v22, %v10803_v26  ;;  %v4704_v45 = vpack.c.bf16 %v4588_v51, %v4587_v25  ;;  %v4596_v25 = vld [vmem:[#allocation2 + $0x311] sm:$0xff] }
 0x4fa   : > { %v10881_v16 = vadd.f32 %v7789_v40, %v5434_v53  ;;  %v7685_v43 = vpop.f32.mrf.mxu0 }
 0x4fb   : > { %v7686_v21 = vadd.f32 %v7685_v43, %v7684_v60  ;;  %v7791_v38 = vpop.f32.mrf.mxu1  ;;  %v4713_v60 = vpack.c.bf16 %v4590_v19, %v4589_v34 }
 0x4fc   : > { %v7792_v30 = vadd.f32 %v7791_v38, %v7790_v6  ;;  %v7687_v7 = vpop.f32.mrf.mxu0 }
 0x4fd   : > { %v7793_v57 = vpop.f32.mrf.mxu1  ;;  %v5447_v4 = vadd.f32 %v7686_v21, %v10803_v26 }
 0x4fe   : > { %v10887_v29 = vadd.f32 %v7792_v30, %v5439_v41  ;;  %v7688_v32 = vpop.f32.mrf.mxu0 }
 0x4ff   : > { %v7689_v11 = vadd.f32 %v7688_v32, %v7687_v7  ;;  %v7794_v52 = vpop.f32.mrf.mxu1  ;;  %v4591_v7 = vld [vmem:[#allocation2 + $0x2c9] sm:$0xff] }
 0x500   : > { %v7795_v10 = vadd.f32 %v7794_v52, %v7793_v57  ;;  %v7690_v42 = vpop.f32.mrf.mxu0  ;;  %8212 = vmatmul.mubr.bf16.gmra.mxu0 %v4686_v63  ;;  %v8534_v63 = vld [vmem:[%s11346_s7 + $0x30] sm:$0xff]  }
 0x501   : > { %v7796_v2 = vpop.f32.mrf.mxu1  ;;  %8215 = vmatprep.mubr.bf16.mxu0 %v4695_v54  ;;  %v5450_v6 = vadd.f32 %v7689_v11, %v10803_v26  ;;  %v4722_v54 = vpack.c.bf16 %v4592_v47, %v4591_v7  ;;  %8230 = vmatpush3.bf16.msra.mxu1 %v8534_v63 }
 0x502   : > { %v10893_v14 = vadd.f32 %v7795_v10, %v5442_v13  ;;  %v7691_v24 = vpop.f32.mrf.mxu0  ;;  %8231 = vmatprep.subr.bf16.mxu1 %v10890_v55 }
 0x503   : > { %v7692_v31 = vadd.f32 %v7691_v24, %v7690_v42  ;;  %v7797_v33 = vpop.f32.mrf.mxu1 }
 0x504   : > { %v7798_v20 = vadd.f32 %v7797_v33, %v7796_v2  ;;  %v7693_v58 = vpop.f32.mrf.mxu0  ;;  %v4595_v33 = vld [vmem:[#allocation2 + $0x309] sm:$0xff] }
 0x505   : > { %v7799_v12 = vpop.f32.mrf.mxu1  ;;  %v5455_v37 = vadd.f32 %v7692_v31, %v10803_v26 }
 0x506   : > { %v10896_v22 = vadd.f32 %v7798_v20, %v5447_v4  ;;  %v7694_v39 = vpop.f32.mrf.mxu0 }
 0x507   : > { %v7695_v53 = vadd.f32 %v7694_v39, %v7693_v58  ;;  %v7800_v40 = vpop.f32.mrf.mxu1  ;;  %v4740_v39 = vpack.c.bf16 %v4596_v25, %v4595_v33 }
 0x508   : > { %v7801_v43 = vadd.f32 %v7800_v40, %v7799_v12  ;;  %v7696_v38 = vpop.f32.mrf.mxu0  ;;  %8216 = vmatmul.mubr.bf16.gmra.mxu0 %v4704_v45 }
 0x509   : > { %v7802_v9 = vpop.f32.mrf.mxu1  ;;  %8219 = vmatprep.mubr.bf16.mxu0 %v4713_v60  ;;  %v5458_v42 = vadd.f32 %v7695_v53, %v10803_v26 }
 0x50a   : > { %v10899_v21 = vadd.f32 %v7801_v43, %v5450_v6  ;;  %v7697_v27 = vpop.f32.mrf.mxu0 }
 0x50b   : > { %v7698_v41 = vadd.f32 %v7697_v27, %v7696_v38  ;;  %v7803_v30 = vpop.f32.mrf.mxu1 }
 0x50c   : > { %v7804_v57 = vadd.f32 %v7803_v30, %v7802_v9  ;;  %v7699_v3 = vpop.f32.mrf.mxu0 }
 0x50d   : > { %v7805_v32 = vpop.f32.mrf.mxu1  ;;  %v5463_v34 = vadd.f32 %v7698_v41, %v10803_v26 }
 0x50e   : > { %v10905_v11 = vadd.f32 %v7804_v57, %v5455_v37  ;;  %v7700_v52 = vpop.f32.mrf.mxu0 }
 0x50f   : > { %v7701_v13 = vadd.f32 %v7700_v52, %v7699_v3  ;;  %v7806_v10 = vpop.f32.mrf.mxu1 }
 0x510   : > { %v7807_v2 = vadd.f32 %v7806_v10, %v7805_v32  ;;  %v7702_v24 = vpop.f32.mrf.mxu0  ;;  %8220 = vmatmul.mubr.bf16.gmra.mxu0 %v4722_v54  ;;  %v8535_v32 = vld [vmem:[%s11346_s7 + $0x28] sm:$0xff]  }
 0x511   : > { %v7808_v31 = vpop.f32.mrf.mxu1  ;;  %8223 = vmatprep.mubr.bf16.mxu0 %v10843_v48  ;;  %v5466_v48 = vadd.f32 %v7701_v13, %v10803_v26  ;;  %8232 = vmatpush3.bf16.msra.mxu1 %v8535_v32 }
 0x512   : > { %v10910_v51 = vadd.f32 %v7807_v2, %v5458_v42  ;;  %v7703_v4 = vpop.f32.mrf.mxu0  ;;  %8233 = vmatprep.subr.bf16.mxu1 %v10890_v55 }
 0x513   : > { %v7704_v20 = vadd.f32 %v7703_v4, %v7702_v24  ;;  %v7809_v58 = vpop.f32.mrf.mxu1 }
 0x514   : > { %v7810_v19 = vadd.f32 %v7809_v58, %v7808_v31  ;;  %v7705_v12 = vpop.f32.mrf.mxu0 }
 0x515   : > { %v7811_v45 = vpop.f32.mrf.mxu1  ;;  %v5471_v47 = vadd.f32 %v7704_v20, %v10803_v26 }
 0x516   : > { %v10913_v53 = vadd.f32 %v7810_v19, %v5463_v34  ;;  %v7706_v40 = vpop.f32.mrf.mxu0 }
 0x517   : > { %v7707_v60 = vadd.f32 %v7706_v40, %v7705_v12  ;;  %v7812_v6 = vpop.f32.mrf.mxu1 }
 0x518   : > { %v7813_v43 = vadd.f32 %v7812_v6, %v7811_v45  ;;  %v7708_v38 = vpop.f32.mrf.mxu0  ;;  %8224 = vmatmul.mubr.bf16.gmra.mxu0 %v4740_v39 }
 0x519   : > { %v7814_v9 = vpop.f32.mrf.mxu1  ;;  %v5474_v10 = vadd.f32 %v7707_v60, %v10803_v26 }
 0x51a   : > { %v10916_v27 = vadd.f32 %v7813_v43, %v5466_v48  ;;  %v7709_v30 = vpop.f32.mrf.mxu0 }
 0x51b   : > { %v7710_v7 = vadd.f32 %v7709_v30, %v7708_v38  ;;  %v7815_v41 = vpop.f32.mrf.mxu1 }
 0x51c   : > { %v7816_v37 = vadd.f32 %v7815_v41, %v7814_v9  ;;  %v7711_v57 = vpop.f32.mrf.mxu0 }
 0x51d   : > { %v7817_v3 = vpop.f32.mrf.mxu1  ;;  %v5479_v20 = vadd.f32 %v7710_v7, %v10803_v26 }
 0x51e   : > { %v10922_v63 = vadd.f32 %v7816_v37, %v5471_v47  ;;  %v7712_v52 = vpop.f32.mrf.mxu0 }
 0x51f   : > { %v7713_v54 = vadd.f32 %v7712_v52, %v7711_v57  ;;  %v7818_v13 = vpop.f32.mrf.mxu1 }
 0x520   : > { %v7819_v42 = vadd.f32 %v7818_v13, %v7817_v3  ;;  %v7842_v2 = vpop.f32.mrf.mxu0 }
 0x521   : > { %v7820_v24 = vpop.f32.mrf.mxu1  ;;  %v5482_v6 = vadd.f32 %v7713_v54, %v10803_v26 }
 0x522   : > { %v10926_v31 = vadd.f32 %v7819_v42, %v5474_v10  ;;  %v7843_v33 = vpop.f32.mrf.mxu0 }
 0x523   : > { %v7821_v25 = vpop.f32.mrf.mxu1  ;;  %v7844_v4 = vadd.f32 %v7843_v33, %v7842_v2 }
 0x524   : > { %v7822_v58 = vadd.f32 %v7821_v25, %v7820_v24  ;;  %v7845_v34 = vpop.f32.mrf.mxu0 }
 0x525   : > { %v5681_v19 = vadd.f32 %v7844_v4, %v10809_v18  ;;  %v7823_v12 = vpop.f32.mrf.mxu1 }
 0x526   : > { %v10930_v39 = vadd.f32 %v7822_v58, %v5479_v20  ;;  %v7846_v45 = vpop.f32.mrf.mxu0 }
 0x527   : > { %v7824_v40 = vpop.f32.mrf.mxu1  ;;  %v7847_v60 = vadd.f32 %v7846_v45, %v7845_v34 }
 0x528   : > { %v7825_v48 = vadd.f32 %v7824_v40, %v7823_v12  ;;  %v7848_v43 = vpop.f32.mrf.mxu0 }
 0x529   : > { %v10934_v38 = vadd.f32 %v7847_v60, %v10814_v36  ;;  %v7954_v9 = vpop.f32.mrf.mxu1 }
 0x52a   : > { %v10936_v30 = vadd.f32 %v7825_v48, %v5482_v6  ;;  %v7849_v7 = vpop.f32.mrf.mxu0 }
 0x52b   : > { %v7850_v41 = vadd.f32 %v7849_v7, %v7848_v43  ;;  %v7955_v47 = vpop.f32.mrf.mxu1 }
 0x52c   : > { %v7956_v18 = vadd.f32 %v7955_v47, %v7954_v9  ;;  %v7851_v37 = vpop.f32.mrf.mxu0 }
 0x52d   : > { %v10939_v57 = vadd.f32 %v7850_v41, %v10817_v5  ;;  %v10941_v3 = vpop.f32.mrf.mxu1  ;;  %v8536_v5 = vld [vmem:[%s11346_s7 + $0x20] sm:$0xff]  }
 0x52e   : > { %v7852_v32 = vpop.f32.mrf.mxu0  ;;  %v10943_v26 = vadd.f32 %v7956_v18, %v5681_v19  ;;  %8234 = vmatpush3.bf16.msra.mxu1 %v8536_v5 }
 0x52f   : > { %v7853_v52 = vadd.f32 %v7852_v32, %v7851_v37  ;;  %v10945_v54 = vpop.f32.mrf.mxu1  ;;  %8235 = vmatprep.subr.bf16.mxu1 %v10890_v55 }
 0x530   : > { %v7854_v36 = vpop.f32.mrf.mxu0 }
 0x531   : > { %v10948_v13 = vadd.f32 %v7853_v52, %v10822_v1  ;;  %v10950_v10 = vpop.f32.mrf.mxu1 }
 0x532   : > { %v7855_v42 = vpop.f32.mrf.mxu0 }
 0x533   : > { %v7856_v2 = vadd.f32 %v7855_v42, %v7854_v36  ;;  %v10952_v24 = vpop.f32.mrf.mxu1 }
 0x534   : > { %v7857_v33 = vpop.f32.mrf.mxu0 }
 0x535   : > { %v10958_v25 = vadd.f32 %v7856_v2, %v10825_v46  ;;  %v10960_v4 = vpop.f32.mrf.mxu1 }
 0x536   : > { %v7858_v20 = vpop.f32.mrf.mxu0 }
 0x537   : > { %v7859_v1 = vadd.f32 %v7858_v20, %v7857_v33  ;;  %v10963_v58 = vpop.f32.mrf.mxu1 }
 0x538   : > { %v7860_v34 = vpop.f32.mrf.mxu0 }
 0x539   : > { %v10966_v19 = vadd.f32 %v7859_v1, %v10830_v28  ;;  %v10968_v12 = vpop.f32.mrf.mxu1 }
 0x53a   : > { %v7861_v45 = vpop.f32.mrf.mxu0 }
 0x53b   : > { %v7862_v40 = vadd.f32 %v7861_v45, %v7860_v34  ;;  %v10970_v60 = vpop.f32.mrf.mxu1 }
 0x53c   : > { %v7863_v46 = vpop.f32.mrf.mxu0 }
 0x53d   : > { %v10973_v6 = vadd.f32 %v7862_v40, %v10833_v44  ;;  %v10975_v48 = vpop.f32.mrf.mxu1  ;;  %v8537_v44 = vld [vmem:[%s11346_s7 + $0x18] sm:$0xff]  }
 0x53e   : > { %v7864_v43 = vpop.f32.mrf.mxu0  ;;  %8236 = vmatpush3.bf16.msra.mxu1 %v8537_v44 }
 0x53f   : > { %v7865_v9 = vadd.f32 %v7864_v43, %v7863_v46  ;;  %v10977_v7 = vpop.f32.mrf.mxu1  ;;  %8237 = vmatprep.subr.bf16.mxu1 %v10890_v55 }
 0x540   : > { %v7866_v41 = vpop.f32.mrf.mxu0 }
 0x541   : > { %v10980_v28 = vadd.f32 %v7865_v9, %v10838_v61  ;;  %v10982_v47 = vpop.f32.mrf.mxu1 }
 0x542   : > { %v7867_v18 = vpop.f32.mrf.mxu0 }
 0x543   : > { %v7868_v37 = vadd.f32 %v7867_v18, %v7866_v41  ;;  %v10984_v32 = vpop.f32.mrf.mxu1 }
 0x544   : > { %v7869_v52 = vpop.f32.mrf.mxu0 }
 0x545   : > { %v10990_v36 = vadd.f32 %v7868_v37, %v10841_v59  ;;  %v10992_v42 = vpop.f32.mrf.mxu1 }
 0x546   : > { %v7870_v2 = vpop.f32.mrf.mxu0 }
 0x547   : > { %11544 = vst [vmem:[#allocation32_spill] sm:$0xff] %v10990_v36  ;;  %v7871_v61 = vadd.f32 %v7870_v2, %v7869_v52  ;;  %v10995_v5 = vpop.f32.mrf.mxu1 }
 0x548   : > { %v7872_v33 = vpop.f32.mrf.mxu0 }
 0x549   : > { %v10998_v20 = vadd.f32 %v7871_v61, %v10848_v23  ;;  %v11000_v1 = vpop.f32.mrf.mxu1 }
 0x54a   : > { %v7873_v34 = vpop.f32.mrf.mxu0 }
 0x54b   : > { %11545 = vst [vmem:[#allocation38_spill] sm:$0xff] %v10998_v20  ;;  %v7874_v45 = vadd.f32 %v7873_v34, %v7872_v33  ;;  %v11002_v40 = vpop.f32.mrf.mxu1 }
 0x54c   : > { %v7875_v59 = vpop.f32.mrf.mxu0 }
 0x54d   : > { %v11005_v46 = vadd.f32 %v7874_v45, %v10851_v0  ;;  %v11007_v43 = vpop.f32.mrf.mxu1  ;;  %v8538_v0 = vld [vmem:[%s11346_s7 + $0x10] sm:$0xff]  }
 0x54e   : > { %v7876_v9 = vpop.f32.mrf.mxu0  ;;  %8238 = vmatpush3.bf16.msra.mxu1 %v8538_v0 }
 0x54f   : > { %11546 = vst [vmem:[#allocation34_spill] sm:$0xff] %v11005_v46  ;;  %v7877_v41 = vadd.f32 %v7876_v9, %v7875_v59  ;;  %v11009_v18 = vpop.f32.mrf.mxu1  ;;  %8239 = vmatprep.subr.bf16.mxu1 %v10890_v55 }
 0x550   : > { %v7878_v37 = vpop.f32.mrf.mxu0 }
 0x551   : > { %v11012_v23 = vadd.f32 %v7877_v41, %v10857_v17  ;;  %v11014_v44 = vpop.f32.mrf.mxu1 }
 0x552   : > { %v7879_v52 = vpop.f32.mrf.mxu0 }
 0x553   : > { %11547 = vst [vmem:[#allocation22_spill] sm:$0xff] %v11012_v23  ;;  %v7880_v2 = vadd.f32 %v7879_v52, %v7878_v37  ;;  %v11016_v61 = vpop.f32.mrf.mxu1 }
 0x554   : > { %v7881_v33 = vpop.f32.mrf.mxu0 }
 0x555   : > { %v11022_v34 = vadd.f32 %v7880_v2, %v10860_v8  ;;  %v11024_v45 = vpop.f32.mrf.mxu1 }
 0x556   : > { %v7882_v59 = vpop.f32.mrf.mxu0 }
 0x557   : > { %11548 = vst [vmem:[#allocation14_spill] sm:$0xff] %v11022_v34  ;;  %v7883_v17 = vadd.f32 %v7882_v59, %v7881_v33  ;;  %v11027_v9 = vpop.f32.mrf.mxu1 }
 0x558   : > { %v7884_v41 = vpop.f32.mrf.mxu0 }
 0x559   : > { %v11030_v37 = vadd.f32 %v7883_v17, %v10863_v15  ;;  %v11032_v52 = vpop.f32.mrf.mxu1 }
 0x55a   : > { %v7885_v20 = vpop.f32.mrf.mxu0 }
 0x55b   : > { %11549 = vst [vmem:[#allocation35_spill] sm:$0xff] %v11030_v37  ;;  %v7886_v23 = vadd.f32 %v7885_v20, %v7884_v41  ;;  %v11034_v46 = vpop.f32.mrf.mxu1 }
 0x55c   : > { %v7887_v8 = vpop.f32.mrf.mxu0 }
 0x55d   : > { %v11037_v2 = vadd.f32 %v7886_v23, %v10866_v50  ;;  %v11039_v0 = vpop.f32.mrf.mxu1  ;;  %v8539_v50 = vld [vmem:[%s11346_s7 + $0x8] sm:$0xff]  }
 0x55e   : > { %11551 = vst [vmem:[#allocation36_spill] sm:$0xff] %v11039_v0  ;;  %v7888_v34 = vpop.f32.mrf.mxu0  ;;  %8240 = vmatpush3.bf16.msra.mxu1 %v8539_v50 }
 0x55f   : > { %11550 = vst [vmem:[#allocation20_spill] sm:$0xff] %v11037_v2  ;;  %v7889_v33 = vadd.f32 %v7888_v34, %v7887_v8  ;;  %v11041_v59 = vpop.f32.mrf.mxu1  ;;  %8241 = vmatprep.subr.bf16.mxu1 %v10890_v55 }
 0x560   : > { %11552 = vst [vmem:[#allocation58_spill] sm:$0xff] %v11041_v59  ;;  %v7890_v36 = vpop.f32.mrf.mxu0 }
 0x561   : > { %v11044_v15 = vadd.f32 %v7889_v33, %v10869_v35  ;;  %v11046_v17 = vpop.f32.mrf.mxu1 }
 0x562   : > { %v7891_v37 = vpop.f32.mrf.mxu0 }
 0x563   : > { %11553 = vst [vmem:[#allocation59_spill] sm:$0xff] %v11044_v15  ;;  %v7892_v20 = vadd.f32 %v7891_v37, %v7890_v36  ;;  %v11048_v41 = vpop.f32.mrf.mxu1 }
 0x564   : > { %11554 = vst [vmem:[#allocation53_spill] sm:$0xff] %v11048_v41  ;;  %v7893_v23 = vpop.f32.mrf.mxu0 }
 0x565   : > { %v11054_v2 = vadd.f32 %v7892_v20, %v10872_v49  ;;  %v11056_v34 = vpop.f32.mrf.mxu1 }
 0x566   : > { %v7894_v8 = vpop.f32.mrf.mxu0 }
 0x567   : > { %11555 = vst [vmem:[#allocation54_spill] sm:$0xff] %v11054_v2  ;;  %v7895_v35 = vadd.f32 %v7894_v8, %v7893_v23  ;;  %v11059_v33 = vpop.f32.mrf.mxu1 }
 0x568   : > { %11556 = vst [vmem:[#allocation55_spill] sm:$0xff] %v11059_v33  ;;  %v7896_v36 = vpop.f32.mrf.mxu0 }
 0x569   : > { %v11062_v37 = vadd.f32 %v7895_v35, %v10875_v62  ;;  %v11064_v15 = vpop.f32.mrf.mxu1 }
 0x56a   : > { %v7897_v59 = vpop.f32.mrf.mxu0 }
 0x56b   : > { %11557 = vst [vmem:[#allocation12_spill] sm:$0xff] %v11062_v37  ;;  %v7898_v0 = vadd.f32 %v7897_v59, %v7896_v36  ;;  %v11066_v41 = vpop.f32.mrf.mxu1 }
 0x56c   : > { %11558 = vst [vmem:[#allocation56_spill] sm:$0xff] %v11066_v41  ;;  %v7899_v49 = vpop.f32.mrf.mxu0 }
 0x56d   : > { %v11069_v20 = vadd.f32 %v7898_v0, %v10878_v56  ;;  %v11071_v50 = vpop.f32.mrf.mxu1 }
 0x56e   : > { %v7900_v2 = vpop.f32.mrf.mxu0 }
 0x56f   : > { %11559 = vst [vmem:[#allocation40_spill] sm:$0xff] %v11069_v20  ;;  %v7901_v23 = vadd.f32 %v7900_v2, %v7899_v49  ;;  %v11073_v8 = vpop.f32.mrf.mxu1 }
 0x570   : > { %11560 = vst [vmem:[#allocation61_spill] sm:$0xff] %v11073_v8  ;;  %v7902_v33 = vpop.f32.mrf.mxu0 }
 0x571   : > { %v11076_v62 = vadd.f32 %v7901_v23, %v10881_v16  ;;  %v11078_v35 = vpop.f32.mrf.mxu1 }
 0x572   : > { %v7903_v37 = vpop.f32.mrf.mxu0 }
 0x573   : > { %11561 = vst [vmem:[#allocation62_spill] sm:$0xff] %v11076_v62  ;;  %v7904_v59 = vadd.f32 %v7903_v37, %v7902_v33  ;;  %v11080_v36 = vpop.f32.mrf.mxu1  ;;  %v8540_v33 = vld [vmem:[%s11346_s7] sm:$0xff]  }
 0x574   : > { %v7905_v41 = vpop.f32.mrf.mxu0  ;;  %8242 = vmatpush3.bf16.msra.mxu1 %v8540_v33 }
 0x575   : > { %v11083_v56 = vadd.f32 %v7904_v59, %v10887_v29  ;;  %v11085_v0 = vpop.f32.mrf.mxu1 }
 0x576   : > { %11563 = vst [vmem:[#allocation63_spill] sm:$0xff] %v11085_v0  ;;  %v7906_v20 = vpop.f32.mrf.mxu0 }
 0x577   : > { %11562 = vst [vmem:[#allocation57_spill] sm:$0xff] %v11083_v56  ;;  %v7907_v2 = vadd.f32 %v7906_v20, %v7905_v41  ;;  %v11087_v49 = vpop.f32.mrf.mxu1 }
 0x578   : > { %11564 = vst [vmem:[#allocation60_spill] sm:$0xff] %v11087_v49  ;;  %v7908_v8 = vpop.f32.mrf.mxu0 }
 0x579   : > { %v11090_v16 = vadd.f32 %v7907_v2, %v10893_v14  ;;  %v11092_v23 = vpop.f32.mrf.mxu1 }
 0x57a   : > { %11566 = vst [vmem:[#allocation65_spill] sm:$0xff] %v11092_v23  ;;  %v7909_v37 = vpop.f32.mrf.mxu0 }
 0x57b   : > { %11565 = vst [vmem:[#allocation64_spill] sm:$0xff] %v11090_v16  ;;  %v7910_v29 = vadd.f32 %v7909_v37, %v7908_v8  ;;  %v11101_v20 = vpop.f32.mrf.mxu1 }
 0x57c   : > { %v7911_v59 = vpop.f32.mrf.mxu0 }
 0x57d   : > { %v11099_v41 = vadd.f32 %v7910_v29, %v10896_v22  ;;  %v11103_v56 = vpop.f32.mrf.mxu1 }
 0x57e   : > { %v7912_v14 = vpop.f32.mrf.mxu0 }
 0x57f   : > { %11567 = vst [vmem:[#allocation41_spill] sm:$0xff] %v11099_v41  ;;  %v7913_v2 = vadd.f32 %v7912_v14, %v7911_v59  ;;  %v11108_v55 = vpop.f32.mrf.mxu1 }
 0x580   : > { %v7914_v16 = vpop.f32.mrf.mxu0 }
 0x581   : > { %v11106_v62 = vadd.f32 %v7913_v2, %v10899_v21  ;;  %v11113_v29 = vpop.f32.mrf.mxu1 }
 0x582   : > { %v7915_v23 = vpop.f32.mrf.mxu0 }
 0x583   : > { %11568 = vst [vmem:[#allocation68_spill] sm:$0xff] %v11106_v62  ;;  %v7916_v49 = vadd.f32 %v7915_v23, %v7914_v16  ;;  %v11118_v2 = vpop.f32.mrf.mxu1 }
 0x584   : > { %v7917_v0 = vpop.f32.mrf.mxu0 }
 0x585   : > { %v11111_v8 = vadd.f32 %v7916_v49, %v10905_v11  ;;  %v11123_v49 = vpop.f32.mrf.mxu1 }
 0x586   : > { %v7918_v22 = vpop.f32.mrf.mxu0 }
 0x587   : > { %11569 = vst [vmem:[#allocation69_spill] sm:$0xff] %v11111_v8  ;;  %v7919_v33 = vadd.f32 %v7918_v22, %v7917_v0 }
 0x588   : > { %v7920_v37 = vpop.f32.mrf.mxu0 }
 0x589   : > { %v11116_v59 = vadd.f32 %v7919_v33, %v10910_v51  ;;  %v11128_v33 = vpop.f32.mrf.mxu1 }
 0x58a   : > { %v7921_v14 = vpop.f32.mrf.mxu0 }
 0x58b   : > { %11570 = vst [vmem:[#allocation66_spill] sm:$0xff] %v11116_v59  ;;  %v7922_v41 = vadd.f32 %v7921_v14, %v7920_v37 }
 0x58c   : > { %v7923_v21 = vpop.f32.mrf.mxu0 }
 0x58d   : > { %v11121_v16 = vadd.f32 %v7922_v41, %v10913_v53  ;;  %v11133_v41 = vpop.f32.mrf.mxu1 }
 0x58e   : > { %v7924_v23 = vpop.f32.mrf.mxu0 }
 0x58f   : > { %11571 = vst [vmem:[#allocation19_spill] sm:$0xff] %v11121_v16  ;;  %v7925_v62 = vadd.f32 %v7924_v23, %v7923_v21 }
 0x590   : > { %v7926_v11 = vpop.f32.mrf.mxu0 }
 0x591   : > { %v11126_v0 = vadd.f32 %v7925_v62, %v10916_v27  ;;  %v11138_v62 = vpop.f32.mrf.mxu1 }
 0x592   : > { %v7927_v22 = vpop.f32.mrf.mxu0 }
 0x593   : > { %v7928_v8 = vadd.f32 %v7927_v22, %v7926_v11 }
 0x594   : > { %v7929_v51 = vpop.f32.mrf.mxu0 }
 0x595   : > { %v11131_v37 = vadd.f32 %v7928_v8, %v10922_v63  ;;  %v7962_v63 = vadd.f32 %v10952_v24, %v10950_v10  ;;  %v7968_v10 = vadd.f32 %v10970_v60, %v10968_v12  ;;  %v7977_v12 = vadd.f32 %v10995_v5, %v10992_v42 }
 0x596   : > { %v7930_v14 = vpop.f32.mrf.mxu0 }
 0x597   : > { %v7931_v59 = vadd.f32 %v7930_v14, %v7929_v51  ;;  %v7959_v14 = vadd.f32 %v10945_v54, %v10941_v3  ;;  %v5869_v42 = vadd.f32 %v7977_v12, %v10980_v28  ;;  %v7983_v28 = vadd.f32 %v11009_v18, %v11007_v43 }
 0x598   : > { %v7932_v53 = vpop.f32.mrf.mxu0 }
 0x599   : > { %v11136_v21 = vadd.f32 %v7931_v59, %v10926_v31  ;;  %v7965_v31 = vadd.f32 %v10963_v58, %v10960_v4  ;;  %v11149_v59 = vpop.f32.mrf.mxu1  ;;  %v5845_v4 = vadd.f32 %v7959_v14, %v10934_v38  ;;  %v11575_v38 = vld [vmem:[#allocation46_spill] sm:$0xff] }
 0x59a   : > { %v7933_v23 = vpop.f32.mrf.mxu0 }
 0x59b   : > { %11572 = vst [vmem:[#allocation67_spill] sm:$0xff] %v11136_v21  ;;  %v7934_v16 = vadd.f32 %v7933_v23, %v7932_v53  ;;  %v11158_v24 = vpop.f32.mrf.mxu1  ;;  %v5853_v54 = vadd.f32 %v7965_v31, %v10948_v13  ;;  %v11574_v13 = vld [vmem:[#allocation43_spill] sm:$0xff] }
 0x59c   : > { %v7935_v27 = vpop.f32.mrf.mxu0 }
 0x59d   : > { %v11141_v11 = vadd.f32 %v7934_v16, %v10930_v39  ;;  %v5850_v39 = vadd.f32 %v7962_v63, %v10939_v57 }
 0x59e   : > { %v7936_v22 = vpop.f32.mrf.mxu0 }
 0x59f   : > { %v7937_v8 = vadd.f32 %v7936_v22, %v7935_v27  ;;  %v11573_v27 = vld [vmem:[#allocation44_spill] sm:$0xff] }
 0x5a0   : > { %v8197_v51 = vpop.f32.mrf.mxu0 }
 0x5a1   : > { %v11152_v53 = vadd.f32 %v7937_v8, %v10936_v30  ;;  %v6011_v3 = vadd.f32 %v8197_v51, %v5850_v39  ;;  %v7974_v30 = vadd.f32 %v10984_v32, %v10982_v47  ;;  %v11169_v8 = vpop.f32.mrf.mxu1  ;;  %v5858_v47 = vadd.f32 %v7968_v10, %v10958_v25 }
 0x5a2   : > { %v6002_v23 = vpop.f32.mrf.mxu0 }
 0x5a3   : > { %v6003_v16 = vadd.f32 %v6002_v23, %v10943_v26  ;;  %v7971_v26 = vadd.f32 %v10977_v7, %v10975_v48  ;;  %v6131_v51 = vadd.f32 %v6011_v3, %v11574_v13  ;;  %v5866_v32 = vadd.f32 %v7974_v30, %v10973_v6  ;;  %v11576_v23 = vld [vmem:[#allocation45_spill] sm:$0xff]  ;;  %v11577_v6 = vld [vmem:[#allocation50_spill] sm:$0xff]  ;;  %v11579_v13 = vld [vmem:[#allocation48_spill] sm:$0xff] }
 0x5a4   : > { %v8198_v21 = vpop.f32.mrf.mxu0  ;;  %v7980_v7 = vadd.f32 %v11002_v40, %v11000_v1 }
 0x5a5   : > { %v6129_v22 = vadd.f32 %v6003_v16, %v11573_v27  ;;  %v6014_v57 = vadd.f32 %v8198_v21, %v5853_v54  ;;  %v5861_v3 = vadd.f32 %v7971_v26, %v10966_v19  ;;  %v11180_v54 = vpop.f32.mrf.mxu1  ;;  %v7989_v19 = vadd.f32 %v11027_v9, %v11024_v45  ;;  %v11578_v26 = vld [vmem:[#allocation32_spill] sm:$0xff]  ;;  %v11583_v9 = vld [vmem:[#allocation22_spill] sm:$0xff] }
 0x5a6   : > { %v6005_v58 = vpop.f32.mrf.mxu0  ;;  %v5874_v12 = vadd.f32 %v7980_v7, %v11578_v26  ;;  %v7992_v45 = vadd.f32 %v11034_v46, %v11032_v52  ;;  %v11584_v7 = vld [vmem:[#allocation38_spill] sm:$0xff]  ;;  %v11587_v52 = vld [vmem:[#allocation36_spill] sm:$0xff] }
 0x5a7   : > { %v6006_v63 = vadd.f32 %v6005_v58, %v5845_v4  ;;  %v6161_v21 = vmax.f32 %v6129_v22, 0.0  ;;  %v6132_v39 = vadd.f32 %v6014_v57, %v11576_v23  ;;  %v6163_v4 = vmax.f32 %v6131_v51, 0.0  ;;  %v11582_v23 = vld [vmem:[#allocation52_spill] sm:$0xff] }
 0x5a8   : > { %v8201_v60 = vpop.f32.mrf.mxu0  ;;  %v7986_v58 = vadd.f32 %v11016_v61, %v11014_v44  ;;  %v11580_v61 = vld [vmem:[#allocation27_spill] sm:$0xff] }
 0x5a9   : > { %v6130_v14 = vadd.f32 %v6006_v63, %v11575_v38  ;;  %v6027_v10 = vadd.f32 %v8201_v60, %v5866_v32  ;;  %v6164_v22 = vmax.f32 %v6132_v39, 0.0  ;;  %v11190_v60 = vpop.f32.mrf.mxu1 }
 0x5aa   : > { %v6018_v31 = vpop.f32.mrf.mxu0 }
 0x5ab   : > { %v6162_v16 = vmax.f32 %v6130_v14, 0.0  ;;  %v6019_v48 = vadd.f32 %v6018_v31, %v5858_v47  ;;  %v6135_v51 = vadd.f32 %v6027_v10, %v11579_v13  ;;  %v11581_v47 = vld [vmem:[#allocation34_spill] sm:$0xff]  ;;  %v11585_v10 = vld [vmem:[#allocation24_spill] sm:$0xff] }
 0x5ac   : > { %v8202_v5 = vpop.f32.mrf.mxu0  ;;  %v5882_v32 = vadd.f32 %v7986_v58, %v11581_v47  ;;  %v11590_v13 = vld [vmem:[#allocation14_spill] sm:$0xff] }
 0x5ad   : > { %v6193_v25 = vadd.f32 %v6162_v16, %v6161_v21  ;;  %v6133_v30 = vadd.f32 %v6019_v48, %v11577_v6  ;;  %v6030_v63 = vadd.f32 %v8202_v5, %v5869_v42  ;;  %v5885_v16 = vadd.f32 %v7989_v19, %v11583_v9  ;;  %v11200_v5 = vpop.f32.mrf.mxu1 }
 0x5ae   : > { %v6021_v27 = vpop.f32.mrf.mxu0  ;;  %v5877_v42 = vadd.f32 %v7983_v28, %v11584_v7  ;;  %v11589_v28 = vld [vmem:[#allocation55_spill] sm:$0xff] }
 0x5af   : > { %v6194_v57 = vadd.f32 %v6193_v25, %v6163_v4  ;;  %v6022_v1 = vadd.f32 %v6021_v27, %v5861_v3  ;;  %v6165_v38 = vmax.f32 %v6133_v30, 0.0  ;;  %v6136_v43 = vadd.f32 %v6030_v63, %v11582_v23  ;;  %v11586_v30 = vld [vmem:[#allocation53_spill] sm:$0xff] }
 0x5b0   : > { %v8205_v40 = vpop.f32.mrf.mxu0  ;;  %v6167_v3 = vmax.f32 %v6135_v51, 0.0  ;;  %v7998_v58 = vadd.f32 %v11586_v30, %v11046_v17  ;;  %v8001_v26 = vadd.f32 %v11589_v28, %v11056_v34  ;;  %v5890_v51 = vadd.f32 %v7992_v45, %v11590_v13  ;;  %v11595_v34 = vld [vmem:[#allocation56_spill] sm:$0xff]  ;;  %v11596_v45 = vld [vmem:[#allocation59_spill] sm:$0xff] }
 0x5b1   : > { %v6195_v44 = vadd.f32 %v6194_v57, %v6164_v22  ;;  %v6134_v14 = vadd.f32 %v6022_v1, %v11580_v61  ;;  %v6043_v25 = vadd.f32 %v8205_v40, %v5882_v32  ;;  %v6168_v22 = vmax.f32 %v6136_v43, 0.0  ;;  %v11588_v1 = vld [vmem:[#allocation58_spill] sm:$0xff]  ;;  %v11210_v40 = vpop.f32.mrf.mxu1  ;;  %v11593_v32 = vld [vmem:[#allocation20_spill] sm:$0xff]  ;;  %v11598_v30 = vld [vmem:[#allocation31_spill] sm:$0xff] }
 0x5b2   : > { %v6034_v31 = vpop.f32.mrf.mxu0  ;;  %v7995_v19 = vadd.f32 %v11588_v1, %v11587_v52  ;;  %v11594_v43 = vld [vmem:[#allocation26_spill] sm:$0xff]  ;;  %v11599_v52 = vld [vmem:[#allocation61_spill] sm:$0xff]  ;;  %v11600_v28 = vld [vmem:[#allocation63_spill] sm:$0xff] }
 0x5b3   : > { %v6196_v21 = vadd.f32 %v6195_v44, %v6165_v38  ;;  %v6166_v18 = vmax.f32 %v6134_v14, 0.0  ;;  %v6035_v39 = vadd.f32 %v6034_v31, %v5874_v12  ;;  %v11591_v38 = vld [vmem:[#allocation17_spill] sm:$0xff]  ;;  %v11592_v14 = vld [vmem:[#allocation15_spill] sm:$0xff]  ;;  %v5898_v31 = vadd.f32 %v7998_v58, %v11593_v32 }
 0x5b4   : > { %v8206_v48 = vpop.f32.mrf.mxu0  ;;  %v6139_v44 = vadd.f32 %v6043_v25, %v11591_v38  ;;  %v8007_v1 = vadd.f32 %v11599_v52, %v11071_v50 }
 0x5b5   : > { %v6197_v4 = vadd.f32 %v6196_v21, %v6166_v18  ;;  %v6137_v6 = vadd.f32 %v6035_v39, %v11585_v10  ;;  %v6046_v63 = vadd.f32 %v8206_v48, %v5885_v16  ;;  %v8004_v16 = vadd.f32 %v11595_v34, %v11064_v15  ;;  %v11608_v34 = vld [vmem:[#allocation62_spill] sm:$0xff] }
 0x5b6   : > { %v6037_v27 = vpop.f32.mrf.mxu0  ;;  %v5901_v48 = vadd.f32 %v8001_v26, %v11596_v45  ;;  %v6171_v25 = vmax.f32 %v6139_v44, 0.0  ;;  %v11603_v44 = vld [vmem:[#allocation30_spill] sm:$0xff] }
 0x5b7   : > { %v6198_v57 = vadd.f32 %v6197_v4, %v6167_v3  ;;  %v6038_v46 = vadd.f32 %v6037_v27, %v5877_v42  ;;  %v6169_v61 = vmax.f32 %v6137_v6, 0.0  ;;  %v6140_v18 = vadd.f32 %v6046_v63, %v11594_v43  ;;  %v11597_v42 = vld [vmem:[#allocation35_spill] sm:$0xff]  ;;  %v11220_v4 = vpop.f32.mrf.mxu1 }
 0x5b8   : > { %v8209_v12 = vpop.f32.mrf.mxu0  ;;  %v5893_v3 = vadd.f32 %v7995_v19, %v11597_v42  ;;  %v8010_v27 = vadd.f32 %v11080_v36, %v11078_v35  ;;  %v11601_v19 = vld [vmem:[#allocation60_spill] sm:$0xff]  ;;  %v11604_v36 = vld [vmem:[#allocation21_spill] sm:$0xff] }
 0x5b9   : > { %v6199_v17 = vadd.f32 %v6198_v57, %v6168_v22  ;;  %v6138_v47 = vadd.f32 %v6038_v46, %v11592_v14  ;;  %v6059_v6 = vadd.f32 %v8209_v12, %v5898_v31  ;;  %v6172_v57 = vmax.f32 %v6140_v18, 0.0  ;;  %v11230_v12 = vpop.f32.mrf.mxu1 }
 0x5ba   : > { %v6050_v21 = vpop.f32.mrf.mxu0  ;;  %v8013_v26 = vadd.f32 %v11601_v19, %v11600_v28 }
 0x5bb   : > { %v6200_v23 = vadd.f32 %v6199_v17, %v6169_v61  ;;  %v6170_v39 = vmax.f32 %v6138_v47, 0.0  ;;  %v6051_v9 = vadd.f32 %v6050_v21, %v5890_v51  ;;  %v11602_v51 = vld [vmem:[#allocation54_spill] sm:$0xff]  ;;  %v6143_v61 = vadd.f32 %v6059_v6, %v11603_v44  ;;  %v11605_v47 = vld [vmem:[#allocation40_spill] sm:$0xff]  ;;  %v11240_v42 = vpop.f32.mrf.mxu1  ;;  %v11610_v6 = vld [vmem:[#allocation49_spill] sm:$0xff] }
 0x5bc   : > { %v8210_v7 = vpop.f32.mrf.mxu0  ;;  %v5906_v38 = vadd.f32 %v8004_v16, %v11602_v51  ;;  %v5914_v32 = vadd.f32 %v8010_v27, %v11605_v47  ;;  %v5917_v16 = vadd.f32 %v8013_v26, %v11608_v34  ;;  %v11612_v26 = vld [vmem:[#allocation47_spill] sm:$0xff]  ;;  %v11614_v44 = vld [vmem:[#allocation41_spill] sm:$0xff]  ;;  %v8034_v34 = vadd.f32 %v11180_v54, %v11169_v8  ;;  %v11621_v8 = vld [vmem:[#allocation10_spill] sm:$0xff] }
 0x5bd   : > { %v6201_v10 = vadd.f32 %v6200_v23, %v6170_v39  ;;  %v6141_v58 = vadd.f32 %v6051_v9, %v11598_v30  ;;  %v6062_v46 = vadd.f32 %v8210_v7, %v5901_v48  ;;  %v11606_v23 = vld [vmem:[#allocation37_spill] sm:$0xff]  ;;  %v11609_v48 = vld [vmem:[#allocation12_spill] sm:$0xff]  ;;  %v8044_v19 = vpop.f32.mrf.mxu1 }
 0x5be   : > { %v6053_v22 = vpop.f32.mrf.mxu0  ;;  %v11607_v39 = vld [vmem:[#allocation65_spill] sm:$0xff]  ;;  %v5909_v7 = vadd.f32 %v8007_v1, %v11609_v48 }
 0x5bf   : > { %v6202_v63 = vadd.f32 %v6201_v10, %v6171_v25  ;;  %v6054_v15 = vadd.f32 %v6053_v22, %v5893_v3  ;;  %v6173_v17 = vmax.f32 %v6141_v58, 0.0  ;;  %v6144_v50 = vadd.f32 %v6062_v46, %v11606_v23  ;;  %v11611_v1 = vld [vmem:[#allocation57_spill] sm:$0xff]  ;;  %v8045_v23 = vpop.f32.mrf.mxu1 }
 0x5c0   : > { %v8213_v13 = vpop.f32.mrf.mxu0  ;;  %v8016_v9 = vadd.f32 %v11101_v20, %v11607_v39  ;;  %v6175_v3 = vmax.f32 %v6143_v61, 0.0  ;;  %v8022_v58 = vadd.f32 %v11118_v2, %v11113_v29  ;;  %v8019_v46 = vadd.f32 %v11108_v55, %v11103_v56  ;;  %v11613_v29 = vld [vmem:[#allocation9_spill] sm:$0xff]  ;;  %v11618_v39 = vld [vmem:[#allocation23_spill] sm:$0xff] }
 0x5c1   : > { %v6203_v35 = vadd.f32 %v6202_v63, %v6172_v57  ;;  %v6142_v14 = vadd.f32 %v6054_v15, %v11604_v36  ;;  %v6075_v10 = vadd.f32 %v8213_v13, %v5914_v32  ;;  %v6176_v22 = vmax.f32 %v6144_v50, 0.0  ;;  %v11615_v36 = vld [vmem:[#allocation51_spill] sm:$0xff] }
 0x5c2   : > { %v6066_v31 = vpop.f32.mrf.mxu0  ;;  %v8025_v15 = vadd.f32 %v11128_v33, %v11123_v49  ;;  %v5922_v28 = vadd.f32 %v8016_v9, %v11611_v1  ;;  %v5930_v61 = vadd.f32 %v8022_v58, %v11614_v44  ;;  %v8028_v49 = vadd.f32 %v11138_v62, %v11133_v41  ;;  %v11616_v33 = vld [vmem:[#allocation68_spill] sm:$0xff]  ;;  %v11620_v58 = vld [vmem:[#allocation29_spill] sm:$0xff]  ;;  %v11625_v44 = vld [vmem:[#allocation18_spill] sm:$0xff] }
 0x5c3   : > { %v6204_v21 = vadd.f32 %v6203_v35, %v6173_v17  ;;  %v6174_v43 = vmax.f32 %v6142_v14, 0.0  ;;  %v6067_v18 = vadd.f32 %v6066_v31, %v5906_v38  ;;  %v6147_v13 = vadd.f32 %v6075_v10, %v11612_v26  ;;  %v11617_v31 = vld [vmem:[#allocation64_spill] sm:$0xff]  ;;  %v11619_v10 = vld [vmem:[#allocation69_spill] sm:$0xff]  ;;  %v11624_v26 = vld [vmem:[#allocation66_spill] sm:$0xff] }
 0x5c4   : > { %v8214_v45 = vpop.f32.mrf.mxu0  ;;  %v5933_v47 = vadd.f32 %v8025_v15, %v11616_v33  ;;  %v8031_v41 = vadd.f32 %v11158_v24, %v11149_v59  ;;  %v8037_v62 = vadd.f32 %v11200_v5, %v11190_v60  ;;  %v8040_v60 = vadd.f32 %v11220_v4, %v11210_v40  ;;  %v11626_v33 = vld [vmem:[#allocation28_spill] sm:$0xff] }
 0x5c5   : > { %v6205_v25 = vadd.f32 %v6204_v21, %v6174_v43  ;;  %v6145_v30 = vadd.f32 %v6067_v18, %v11610_v6  ;;  %v6078_v63 = vadd.f32 %v8214_v45, %v5917_v16  ;;  %v5925_v21 = vadd.f32 %v8019_v46, %v11617_v31 }
 0x5c6   : > { %v6069_v27 = vpop.f32.mrf.mxu0  ;;  %v6179_v50 = vmax.f32 %v6147_v13, 0.0  ;;  %v5938_v6 = vadd.f32 %v8028_v49, %v11619_v10  ;;  %v5949_v5 = vadd.f32 %v8037_v62, %v11126_v0  ;;  %v5941_v13 = vadd.f32 %v8031_v41, %v11624_v26 }
 0x5c7   : > { %v6206_v57 = vadd.f32 %v6205_v25, %v6175_v3  ;;  %v6070_v20 = vadd.f32 %v6069_v27, %v5909_v7  ;;  %v6177_v51 = vmax.f32 %v6145_v30, 0.0  ;;  %v6148_v14 = vadd.f32 %v6078_v63, %v11615_v36  ;;  %v8047_v30 = vpop.f32.mrf.mxu1  ;;  %v11622_v63 = vld [vmem:[#allocation19_spill] sm:$0xff] }
 0x5c8   : > { %v8217_v52 = vpop.f32.mrf.mxu0  ;;  %v8043_v40 = vadd.f32 %v11240_v42, %v11230_v12  ;;  %v5954_v49 = vadd.f32 %v8040_v60, %v11131_v37 }
 0x5c9   : > { %v6207_v38 = vadd.f32 %v6206_v57, %v6176_v22  ;;  %v6146_v2 = vadd.f32 %v6070_v20, %v11613_v29  ;;  %v6091_v18 = vadd.f32 %v8217_v52, %v5930_v61  ;;  %v6180_v45 = vmax.f32 %v6148_v14, 0.0  ;;  %v11623_v52 = vld [vmem:[#allocation25_spill] sm:$0xff] }
 0x5ca   : > { %v6082_v17 = vpop.f32.mrf.mxu0  ;;  %v5946_v20 = vadd.f32 %v8034_v34, %v11622_v63  ;;  %v11634_v63 = vld [vmem:[#allocation42_spill] sm:$0xff] }
 0x5cb   : > { %v6208_v35 = vadd.f32 %v6207_v38, %v6177_v51  ;;  %v6178_v56 = vmax.f32 %v6146_v2, 0.0  ;;  %v6083_v55 = vadd.f32 %v6082_v17, %v5922_v28  ;;  %v6151_v27 = vadd.f32 %v6091_v18, %v11620_v58  ;;  %v8048_v51 = vpop.f32.mrf.mxu1  ;;  %v11628_v18 = vld [vmem:[#allocation33_spill] sm:$0xff] }
 0x5cc   : > { %v8218_v32 = vpop.f32.mrf.mxu0  ;;  %v8046_v17 = vadd.f32 %v8045_v23, %v8044_v19  ;;  %v8049_v4 = vadd.f32 %v8048_v51, %v8047_v30  ;;  %v11631_v30 = vld [vmem:[#allocation11_spill] sm:$0xff] }
 0x5cd   : > { %v6209_v43 = vadd.f32 %v6208_v35, %v6178_v56  ;;  %v6149_v9 = vadd.f32 %v6083_v55, %v11618_v39  ;;  %v6094_v7 = vadd.f32 %v8218_v32, %v5933_v47  ;;  %v6183_v38 = vmax.f32 %v6151_v27, 0.0 }
 0x5ce   : > { %v6085_v16 = vpop.f32.mrf.mxu0  ;;  %v5962_v19 = vadd.f32 %v8046_v17, %v11141_v11  ;;  %v5965_v12 = vadd.f32 %v8049_v4, %v11152_v53  ;;  %v11632_v58 = vmax.f32 %v11631_v30, 0.0 }
 0x5cf   : > { %v6210_v48 = vadd.f32 %v6209_v43, %v6179_v50  ;;  %v6086_v3 = vadd.f32 %v6085_v16, %v5925_v21  ;;  %v6181_v22 = vmax.f32 %v6149_v9, 0.0  ;;  %v6152_v1 = vadd.f32 %v6094_v7, %v11623_v52  ;;  %v11627_v21 = vld [vmem:[#allocation16_spill] sm:$0xff]  ;;  %v11629_v16 = vld [vmem:[#allocation67_spill] sm:$0xff] }
 0x5d0   : > { %v8221_v25 = vpop.f32.mrf.mxu0 }
 0x5d1   : > { %v6211_v57 = vadd.f32 %v6210_v48, %v6180_v45  ;;  %v6150_v54 = vadd.f32 %v6086_v3, %v11621_v8  ;;  %v6107_v2 = vadd.f32 %v8221_v25, %v5946_v20  ;;  %v6184_v36 = vmax.f32 %v6152_v1, 0.0  ;;  %v11630_v3 = vld [vmem:[#allocation13_spill] sm:$0xff]  ;;  %v11633_v8 = vld [vmem:[#allocation39_spill] sm:$0xff] }
 0x5d2   : > { %v6098_v46 = vpop.f32.mrf.mxu0  ;;  %v5957_v45 = vadd.f32 %v8043_v40, %v11629_v16  ;;  %v11635_v20 = vmax.f32 %v11634_v63, 0.0 }
 0x5d3   : > { %v6212_v15 = vadd.f32 %v6211_v57, %v6181_v22  ;;  %v6182_v59 = vmax.f32 %v6150_v54, 0.0  ;;  %v6099_v24 = vadd.f32 %v6098_v46, %v5938_v6  ;;  %v6155_v47 = vadd.f32 %v6107_v2, %v11626_v33 }
 0x5d4   : > { %v8222_v28 = vpop.f32.mrf.mxu0 }
 0x5d5   : > { %v6213_v29 = vadd.f32 %v6212_v15, %v6182_v59  ;;  %v6153_v61 = vadd.f32 %v6099_v24, %v11625_v44  ;;  %v6110_v56 = vadd.f32 %v8222_v28, %v5949_v5  ;;  %v6187_v37 = vmax.f32 %v6155_v47, 0.0  ;;  %v6249_v44 = vld [vmem:[%s11347_s8] sm:$0x1] }
 0x5d6   : > { %v6101_v35 = vpop.f32.mrf.mxu0 }
 0x5d7   : > { %v6214_v14 = vadd.f32 %v6213_v29, %v6183_v38  ;;  %v6102_v55 = vadd.f32 %v6101_v35, %v5941_v13  ;;  %v6185_v32 = vmax.f32 %v6153_v61, 0.0  ;;  %v6156_v39 = vadd.f32 %v6110_v56, %v11628_v18 }
 0x5d8   : > { %v8225_v0 = vpop.f32.mrf.mxu0 }
 0x5d9   : > { %v6215_v31 = vadd.f32 %v6214_v14, %v6184_v36  ;;  %v6154_v50 = vadd.f32 %v6102_v55, %v11627_v21  ;;  %v6123_v7 = vadd.f32 %v8225_v0, %v5962_v19  ;;  %v6188_v25 = vmax.f32 %v6156_v39, 0.0 }
 0x5da   : > { %v6114_v23 = vpop.f32.mrf.mxu0 }
 0x5db   : > { %v6216_v43 = vadd.f32 %v6215_v31, %v6185_v32  ;;  %v6186_v9 = vmax.f32 %v6154_v50, 0.0  ;;  %v6115_v34 = vadd.f32 %v6114_v23, %v5954_v49  ;;  %v6159_v27 = vadd.f32 %v6123_v7, %v11632_v58 }
 0x5dc   : > { %v8226_v42 = vpop.f32.mrf.mxu0 }
 0x5dd   : > { %v6217_v48 = vadd.f32 %v6216_v43, %v6186_v9  ;;  %v6157_v41 = vadd.f32 %v6115_v34, %v11630_v3  ;;  %v6126_v11 = vadd.f32 %v8226_v42, %v5965_v12  ;;  %v6191_v52 = vmax.f32 %v6159_v27, 0.0 }
 0x5de   : > { %v6117_v62 = vpop.f32.mrf.mxu0 }
 0x5df   : > { %v6218_v10 = vadd.f32 %v6217_v48, %v6187_v37  ;;  %v6118_v6 = vadd.f32 %v6117_v62, %v5957_v45  ;;  %v6189_v22 = vmax.f32 %v6157_v41, 0.0  ;;  %v6160_v46 = vadd.f32 %v6126_v11, %v11635_v20 }
 0x5e1   : > { %v6219_v57 = vadd.f32 %v6218_v10, %v6188_v25  ;;  %v6158_v53 = vadd.f32 %v6118_v6, %v11633_v8  ;;  %v6192_v59 = vmax.f32 %v6160_v46, 0.0 }
 0x5e3   : > { %v6220_v54 = vadd.f32 %v6219_v57, %v6189_v22  ;;  %v6190_v15 = vmax.f32 %v6158_v53, 0.0 }
 0x5e5   : > { %v6221_v1 = vadd.f32 %v6220_v54, %v6190_v15 }
 0x5e7   : > { %v6222_v24 = vadd.f32 %v6221_v1, %v6191_v52 }
 0x5e9   : > { %v6223_v60 = vadd.f32 %v6222_v24, %v6192_v59 }
 0x5eb   : > { %v6224_v5 = vrot.slane %v6223_v60, 4 }
 0x5ed   : > { %v6225_v28 = vadd.f32 %v6224_v5, %v6223_v60 }
 0x5ef   : > { %v6226_v26 = vrot.slane %v6225_v28, 2 }
 0x5f1   : > { %v6227_v13 = vadd.f32 %v6226_v26, %v6225_v28 }
 0x5f3   : > { %v6228_v51 = vrot.slane %v6227_v13, 1 }
 0x5f5   : > { %v6229_v38 = vadd.f32 %v6228_v51, %v6227_v13 }
 0x5f7   : > { %v6231_v29 = vmul.f32 0.00390625, %v6229_v38 }
 0x5f9   : > { %v6232_v2 = vpack.c.bf16 %v6231_v29, %v6231_v29 }
 0x5fb   : > { %8244 = vmatmul.mubr.bf16.vlgmr.msra.gmra.mxu1 %v6232_v2 }
 0x6bb   : > { %v6332_v61 = vpop.f32.mrf.mxu1 }
 0x6bc   : > { %v6333_v17 = vadd.f32 %v6332_v61, %v6249_v44 }
 0x6bd   : > { %v8245_v35 = vpop.f32.mrf.mxu1 }
 0x6be   : > { %6338 = vst [vmem:[%s339_s22] sm:$0x1] %v6333_v17 }
 0x6bf   : > { %v6335_v36 = vpop.f32.mrf.mxu1 }
 0x6c0   : > { %8584 = shalt.err (!%p8581_p0)
}
 0x6c1   : > { %s8585_s28 = scalar_lea.hbm %s11298_s21, 16  ;;  %s8589_s22 = scalar_lea.hbm %s11348_s9, 32 }
 0x6c2   : > { %p8586_p1 = scmp.ne.s32.totalorder %s11298_s21, %s8585_s28  ;;  %p8590_p4 = scmp.lt.s32.totalorder %s11298_s21, %s11348_s9 }
 0x6c3   : > { %p8591_p7 = scmp.lt.s32.totalorder %s8589_s22, %s8585_s28 }
 0x6c4   : > { %p8587_p2 = pnand %p8586_p1, %p8732_p5 }
 0x6c5   : > { %p8592_p6 = por %p8591_p7, %p8590_p4 }
 0x6c6   : > { %p8588_p3 = pneg %p8587_p2 }
 0x6c8   : > { %p8593_p8 = pnand %p8592_p6, %p8588_p3 }
 0x6ca   : > { %8596 = shalt.err (!%p8593_p8)
}
 0x6cb   : > { %8267 = dma.vmem_to_hbm [thread:$0]  (%p8732_p5), %s11300_s14, 16, %s11298_s21, %s6340_s27   ;;  %v8246_v14 = vpop.f32.mrf.mxu1 }
 0x6cc PF: > { %p8279_p9 = scmp.ge.s32.totalorder %s8635_s12, 2  ;;  %s6364_s23 = sand.u32 1, %s8623_s30  }
 0x6cd   : > { %p11636_p10 = scmp.ne.s32.totalorder %s11384_s20, 0  ;;  %s6365_s13 = scalar_lea.sflag [#allocation5], %s6364_s23 }
 0x6cf   : > { %p8274_p11 = pnand %p8279_p9, %p11636_p10 }
 0x6d1   : > { %p8275_p12 = pneg %p8274_p11 }
 0x6d3   : > { %8618 = dma.done.wait (%p8275_p12), %s6365_s13, 16  }
 0x6d4   : > { %8620 = vsyncadd (%p8275_p12), %s6365_s13, 4294967280  ;;  %p20_p13 = scmp.ge.s32.totalorder %s8719_s15, 4   ;;  %s11637_s30 = smov %s8627_s10 }
 0x6d5   : > { %s11638_s10 = smov %s8631_s11  ;;  %s11639_s11 = smov %s8730_s18 }
 0x6d6   : > { %s11640_s12 = smov %s8719_s15  ;;  %22 = sbr.rel (!%p20_p13) target bundleno = 4 (0x4), region = 99 }
 0x6db   :  { %6369 = vsyncpa [#allocation4], 1 }
 0x6dc   :  { %6371 = vsyncpa [#allocation4 + $0x1], 1 }
 0x6dd   :  { %6372 = vsyncpa [#allocation5], 1 }
 0x6de   :  { %6374 = vsyncpa [#allocation5 + $0x1], 1 }

</bundles_post_ra>
